<compile_context>
chip_gen: v5e
topology: v5e:2x2
jax: 0.10.0
libtpu: 0.0.40
codegen_flags: <defaults>
</compile_context>

<pallas_src>
import functools

import jax
import jax.numpy as jnp
from jax.experimental import pallas as pl
from jax.experimental.pallas import tpu as pltpu  # noqa: F401  (TPU backend)


NUM_LAYER = 2


# ----------------------------------------------------------------------------
# K2: generic fused linear (used only for gv_net)
# ----------------------------------------------------------------------------
def _linear_kernel(x_ref, w_ref, b_ref, o_ref, *, act):
    y = jnp.dot(x_ref[...], w_ref[...], preferred_element_type=jnp.float32)
    y = y + b_ref[...]
    if act == "relu":
        y = jnp.maximum(y, 0.0)
    elif act == "sigmoid":
        y = jax.nn.sigmoid(y)
    elif act == "tanh":
        y = jnp.tanh(y)
    o_ref[...] = y


def pallas_linear(x, w, b, act="none"):
    """y = act(x @ w + b).  x:[M,Din], w:[Din,Dout], b:[1,Dout]."""
    m = x.shape[0]
    dout = w.shape[1]
    return pl.pallas_call(
        functools.partial(_linear_kernel, act=act),
        out_shape=jax.ShapeDtypeStruct((m, dout), jnp.float32),
    )(x, w, b)


# ----------------------------------------------------------------------------
# K1: question encoder = LSTM (last hidden) + q_net (Linear+ReLU), fused.
#     Input projection is hoisted out of the recurrence (one [T*B,300]x[300,4H]
#     matmul) and the T-step recurrence is statically unrolled.
# ----------------------------------------------------------------------------
def _encoder_kernel(x_ref, wih_ref, whh_ref, b_ref, wq_ref, bq_ref,
                    qemb_ref, qrepr_ref, *, seq_len, batch, hidden):
    T, B, H = seq_len, batch, hidden
    # One MXU call for all time steps: [T*B, Din] @ [Din, 4H] + bias.
    gates_x = jnp.dot(x_ref[...], wih_ref[...],
                      preferred_element_type=jnp.float32) + b_ref[...]
    whh = whh_ref[...]

    h = jnp.zeros((B, H), jnp.float32)
    c = jnp.zeros((B, H), jnp.float32)
    # Static unroll: gives the scheduler visibility to overlap the next step's
    # MXU push with the current step's sigmoid/tanh EUP work.
    for t in range(T):
        g_t = gates_x[t * B:(t + 1) * B, :]                       # [B, 4H]
        gates = g_t + jnp.dot(h, whh, preferred_element_type=jnp.float32)
        i = jax.nn.sigmoid(gates[:, 0:H])
        f = jax.nn.sigmoid(gates[:, H:2 * H])
        g = jnp.tanh(gates[:, 2 * H:3 * H])
        o = jax.nn.sigmoid(gates[:, 3 * H:4 * H])
        c = f * c + i * g
        h = o * jnp.tanh(c)

    qemb_ref[...] = h
    # q_net: FCNet single layer with ReLU, fused here.
    qrepr_ref[...] = jnp.maximum(
        jnp.dot(h, wq_ref[...], preferred_element_type=jnp.float32) + bq_ref[...],
        0.0)


def pallas_encoder(x_flat, p, *, seq_len, batch):
    """x_flat: [T*B, emb_dim] time-major.  Returns (q_emb, q_repr), both [B, H]."""
    H = p["lstm_w_hh"].shape[0]
    return pl.pallas_call(
        functools.partial(_encoder_kernel, seq_len=seq_len, batch=batch, hidden=H),
        out_shape=(jax.ShapeDtypeStruct((batch, H), jnp.float32),
                   jax.ShapeDtypeStruct((batch, H), jnp.float32)),
    )(x_flat, p["lstm_w_ih"], p["lstm_w_hh"], p["lstm_b"],
      p["q_net_w"], p["q_net_b"])


# ----------------------------------------------------------------------------
# K3: stacked attention (2 layers) + SimpleClassifier, fused; runs on the
#     3-way-batched (pos, neg_v, neg_q) inputs in one launch.
# ----------------------------------------------------------------------------
def _san_cls_kernel(gv_ref, q_ref, wg_ref, bg_ref, wq_ref, bq_ref, wa_ref, ba_ref,
                    w1_ref, b1_ref, w2_ref, b2_ref,
                    fea_ref, logits_ref, *, num_layer, num_k):
    B, H = q_ref.shape
    K = num_k
    gv2 = gv_ref[...]                       # [B*K, H]  (flattened in the wrapper)
    gv3 = gv2.reshape(B, K, H)
    u = q_ref[...]                          # [B, H]

    for l in range(num_layer):
        gproj = jnp.dot(gv2, wg_ref[l],
                        preferred_element_type=jnp.float32) + bg_ref[l][None, :]
        qproj = jnp.dot(u, wq_ref[l],
                        preferred_element_type=jnp.float32) + bq_ref[l][None, :]
        h = jnp.tanh(gproj.reshape(B, K, H) + qproj[:, None, :])
        att = jnp.sum(h * wa_ref[l][None, None, :], axis=-1) + ba_ref[l]   # [B, K]
        att = att - jnp.max(att, axis=-1, keepdims=True)
        e = jnp.exp(att)
        p = e * pl.reciprocal(jnp.sum(e, axis=-1, keepdims=True), approx=True)
        fusion = jnp.sum(p[:, :, None] * gv3, axis=1)                      # [B, H]
        u = u + fusion

    fea_ref[...] = u
    # SimpleClassifier: Linear -> ReLU -> Linear
    hid = jnp.maximum(
        jnp.dot(u, w1_ref[...], preferred_element_type=jnp.float32) + b1_ref[...],
        0.0)
    logits_ref[...] = (
        jnp.dot(hid, w2_ref[...], preferred_element_type=jnp.float32) + b2_ref[...])


def pallas_san_classifier(gv_flat, q, p, *, num_layer, num_k):
    B, H = q.shape
    ans_dim = p["cls_w2"].shape[1]
    return pl.pallas_call(
        functools.partial(_san_cls_kernel, num_layer=num_layer, num_k=num_k),
        out_shape=(jax.ShapeDtypeStruct((B, H), jnp.float32),
                   jax.ShapeDtypeStruct((B, ans_dim), jnp.float32)),
    )(gv_flat, q, p["san_wg"], p["san_bg"], p["san_wq"], p["san_bq"],
      p["san_wa"], p["san_ba"], p["cls_w1"], p["cls_b1"], p["cls_w2"], p["cls_b2"])


# ----------------------------------------------------------------------------
# K4: fused bias branch (q_only / v_only chains, detect heads as VPU
#     reductions, 2-way debias softmax, debias_only + debias_cls)
# ----------------------------------------------------------------------------
def _bias_branch_kernel(qemb_ref, vmean_ref, fea_ref,
                        qo_w1, qo_b1, qo_w2, qo_b2, qcls_w, qcls_b, qdet_w, qdet_b,
                        vo_w1, vo_b1, vo_w2, vo_b2, vcls_w, vcls_b, vdet_w, vdet_b,
                        bd_w, bd_b,
                        deb_w, deb_b, dcls_w, dcls_b,
                        q_logits_ref, v_logits_ref, deb_logits_ref,
                        pos_fea_ref, neg_fea_ref):
    def dot(a, b):
        return jnp.dot(a, b, preferred_element_type=jnp.float32)

    def relu(z):
        return jnp.maximum(z, 0.0)

    # --- question-only branch ---
    q1 = relu(dot(qemb_ref[...], qo_w1[...]) + qo_b1[...])
    q_only = relu(dot(q1, qo_w2[...]) + qo_b2[...])
    q_logits_ref[...] = dot(q_only, qcls_w[...]) + qcls_b[...]
    # Dout=1 detect head: VPU reduction + sigmoid (avoids a [H,1] MXU matmul).
    q_det = jax.nn.sigmoid(
        jnp.sum(q_only * qdet_w[...], axis=-1, keepdims=True) + qdet_b[...])  # [B,1]

    # --- visual-only branch ---
    v1 = relu(dot(vmean_ref[...], vo_w1[...]) + vo_b1[...])
    v_only = relu(dot(v1, vo_w2[...]) + vo_b2[...])
    v_logits_ref[...] = dot(v_only, vcls_w[...]) + vcls_b[...]
    v_det = jax.nn.sigmoid(
        jnp.sum(v_only * vdet_w[...], axis=-1, keepdims=True) + vdet_b[...])  # [B,1]

    # --- 2-way bias softmax + debias ---
    bad_q = q_det * q_only                                                    # [B,H]
    bad_v = v_det * v_only                                                    # [B,H]
    s_q = jnp.sum(bad_q * bd_w[...], axis=-1, keepdims=True) + bd_b[...]      # [B,1]
    s_v = jnp.sum(bad_v * bd_w[...], axis=-1, keepdims=True) + bd_b[...]      # [B,1]
    m = jnp.maximum(s_q, s_v)
    e_q = jnp.exp(s_q - m)
    e_v = jnp.exp(s_v - m)
    inv = pl.reciprocal(e_q + e_v, approx=True)
    bad_bias = bad_q * (e_q * inv) + bad_v * (e_v * inv)                      # [B,H]
    neg_fea_ref[...] = bad_bias

    debias_raw = fea_ref[...] - bad_bias
    debias_emb = relu(dot(debias_raw, deb_w[...]) + deb_b[...])
    pos_fea_ref[...] = debias_emb
    deb_logits_ref[...] = dot(debias_emb, dcls_w[...]) + dcls_b[...]


def pallas_bias_branch(q_emb, v_mean, fea, p):
    B, H = q_emb.shape
    ans_dim = p["q_cls_w"].shape[1]
    return pl.pallas_call(
        _bias_branch_kernel,
        out_shape=(
            jax.ShapeDtypeStruct((B, ans_dim), jnp.float32),   # q_logits
            jax.ShapeDtypeStruct((B, ans_dim), jnp.float32),   # v_logits
            jax.ShapeDtypeStruct((B, ans_dim), jnp.float32),   # debias_logits
            jax.ShapeDtypeStruct((B, H), jnp.float32),         # pos_fea (debias_emb)
            jax.ShapeDtypeStruct((B, H), jnp.float32),         # neg_fea (bad_bias_)
        ),
    )(q_emb, v_mean, fea,
      p["q_only_w1"], p["q_only_b1"], p["q_only_w2"], p["q_only_b2"],
      p["q_cls_w"], p["q_cls_b"], p["q_det_w"], p["q_det_b"],
      p["v_only_w1"], p["v_only_b1"], p["v_only_w2"], p["v_only_b2"],
      p["v_cls_w"], p["v_cls_b"], p["v_det_w"], p["v_det_b"],
      p["qv_bd_w"], p["qv_bd_b"],
      p["deb_w"], p["deb_b"], p["deb_cls_w"], p["deb_cls_b"])


# ----------------------------------------------------------------------------
# Parameter construction (deterministic)
# ----------------------------------------------------------------------------
def init_params(key, *, ntokens, emb_dim, num_hid, v_dim, ans_dim, num_layer):
    def nxt():
        nonlocal key
        key, sub = jax.random.split(key)
        return sub

    def w(shape, scale=0.1):
        return jax.random.normal(nxt(), shape, jnp.float32) * scale

    H = num_hid
    p = {
        "emb_table": w((ntokens, emb_dim)),
        # LSTM (torch gate order i, f, g, o); weights stored [in, 4H]
        "lstm_w_ih": w((emb_dim, 4 * H)),
        "lstm_w_hh": w((H, 4 * H)),
        "lstm_b": w((1, 4 * H)),
        # q_net / gv_net (FCNet single layer, ReLU)
        "q_net_w": w((H, H)), "q_net_b": w((1, H)),
        "gv_net_w": w((v_dim, H)), "gv_net_b": w((1, H)),
        # stacked attention modules
        "san_wg": w((num_layer, H, H)), "san_bg": w((num_layer, H)),
        "san_wq": w((num_layer, H, H)), "san_bq": w((num_layer, H)),
        "san_wa": w((num_layer, H)), "san_ba": w((num_layer, 1)),
        # q_only (2-layer FCNet) + q_cls + q_detect (row-vector weight [1,H])
        "q_only_w1": w((H, H)), "q_only_b1": w((1, H)),
        "q_only_w2": w((H, H)), "q_only_b2": w((1, H)),
        "q_cls_w": w((H, ans_dim)), "q_cls_b": w((1, ans_dim)),
        "q_det_w": w((1, H)), "q_det_b": w((1, 1)),
        # v_only (2-layer FCNet) + v_cls + v_detect
        "v_only_w1": w((H, H)), "v_only_b1": w((1, H)),
        "v_only_w2": w((H, H)), "v_only_b2": w((1, H)),
        "v_cls_w": w((H, ans_dim)), "v_cls_b": w((1, ans_dim)),
        "v_det_w": w((1, H)), "v_det_b": w((1, 1)),
        # q_and_v_bias_detect (row-vector weight [1,H])
        "qv_bd_w": w((1, H)), "qv_bd_b": w((1, 1)),
        # debias_only + debias_cls
        "deb_w": w((H, H)), "deb_b": w((1, H)),
        "deb_cls_w": w((H, ans_dim)), "deb_cls_b": w((1, ans_dim)),
        # SimpleClassifier
        "cls_w1": w((H, 2 * H)), "cls_b1": w((1, 2 * H)),
        "cls_w2": w((2 * H, ans_dim)), "cls_b2": w((1, ans_dim)),
    }
    return p


# ----------------------------------------------------------------------------
# Model forward (mirrors Model.forward / compute_predict / san_att)
# ----------------------------------------------------------------------------
def model_forward(p, q_tokens, gv_pos, perm_v, perm_q, self_sup=True):
    B, T = q_tokens.shape
    _, K, v_dim = gv_pos.shape
    H = p["q_net_w"].shape[0]

    # word embedding lookup (glue), time-major flattened to [T*B, emb_dim]
    w_emb = jnp.take(p["emb_table"], q_tokens, axis=0)                 # [B,T,300]
    w_emb_flat = jnp.transpose(w_emb, (1, 0, 2)).reshape(T * B, -1)    # [T*B,300]
    w_emb_flat = w_emb_flat.astype(jnp.float32)

    # K1: LSTM last hidden + q_net, fused
    q_emb, q_repr = pallas_encoder(w_emb_flat, p, seq_len=T, batch=B)  # [B,H] x2

    # K2: gv_net on the flattened features; stays flat [B*K, H]
    gv_flat = pallas_linear(gv_pos.reshape(B * K, v_dim),
                            p["gv_net_w"], p["gv_net_b"], act="relu")
    gv3 = gv_flat.reshape(B, K, H)

    # batch the (pos, neg_v, neg_q) predict passes into a single SAN+classifier call
    if self_sup:
        q_all = jnp.concatenate([q_repr, q_repr, q_repr[perm_q]], axis=0)      # [3B,H]
        gv_all = jnp.concatenate([gv3, gv3[perm_v], gv3], axis=0)              # [3B,K,H]
        gv_all = gv_all.reshape(3 * B * K, H)
    else:
        q_all = q_repr
        gv_all = gv_flat

    # K3: stacked attention + classifier
    fea_all, logits_all = pallas_san_classifier(gv_all, q_all, p,
                                                num_layer=NUM_LAYER, num_k=K)
    fea = fea_all[:B]
    logits = logits_all[:B]

    # K4: fused bias branch (uses the positive fea / q_emb / mean-pooled gv)
    v_mean = jnp.mean(gv3, axis=1)                                     # [B,H] (glue)
    q_logits, v_logits, debias_logits, pos_fea, neg_fea = pallas_bias_branch(
        q_emb, v_mean, fea, p)

    out = {
        "logits": logits,
        "q_logits": q_logits,
        "v_logits": v_logits,
        "debias_logits": debias_logits,
        "fea": fea,
        "pos_fea": pos_fea,
        "neg_fea": neg_fea,
    }
    if not self_sup:
        return out

    out_neg_v = {"logits": logits_all[B:2 * B]}
    out_neg_q = {"logits": logits_all[2 * B:3 * B]}
    return out, out_neg_v, out_neg_q


# ----------------------------------------------------------------------------
if __name__ == "__main__":
    B, T, K = 2, 8, 6
    NTOKENS, EMB_DIM = 50, 300
    NUM_HID, V_DIM, ANS_DIM = 32, 64, 10

    root = jax.random.PRNGKey(0)
    k_param, k_q, k_v, k_pv, k_pq = jax.random.split(root, 5)

    params = init_params(k_param, ntokens=NTOKENS, emb_dim=EMB_DIM,
                         num_hid=NUM_HID, v_dim=V_DIM, ans_dim=ANS_DIM,
                         num_layer=NUM_LAYER)

    q_tokens = jax.random.randint(k_q, (B, T), 0, NTOKENS, dtype=jnp.int32)
    gv_pos = jax.random.normal(k_v, (B, K, V_DIM), jnp.float32)
    perm_v = jax.random.permutation(k_pv, B)
    perm_q = jax.random.permutation(k_pq, B)

    fwd = jax.jit(functools.partial(model_forward, self_sup=True))
    out, out_neg_v, out_neg_q = fwd(params, q_tokens, gv_pos, perm_v, perm_q)

    jax.block_until_ready((out, out_neg_v, out_neg_q))
    assert out["logits"].shape == (B, ANS_DIM)
    assert out["q_logits"].shape == (B, ANS_DIM)
    assert out["v_logits"].shape == (B, ANS_DIM)
    assert out["debias_logits"].shape == (B, ANS_DIM)
    assert out["fea"].shape == (B, NUM_HID)
    assert out["pos_fea"].shape == (B, NUM_HID)
    assert out["neg_fea"].shape == (B, NUM_HID)
    assert out_neg_v["logits"].shape == (B, ANS_DIM)
    assert out_neg_q["logits"].shape == (B, ANS_DIM)
    print("KERNEL_OK")
</pallas_src>

<mosaic_0001>
module attributes {stable_mosaic.version = 11 : i64} {
  func.func @_encoder_kernel(%arg0: memref<16x300xf32, #tpu.memory_space<vmem>>, %arg1: memref<300x128xf32, #tpu.memory_space<vmem>>, %arg2: memref<32x128xf32, #tpu.memory_space<vmem>>, %arg3: memref<1x128xf32, #tpu.memory_space<vmem>>, %arg4: memref<32x32xf32, #tpu.memory_space<vmem>>, %arg5: memref<1x32xf32, #tpu.memory_space<vmem>>, %arg6: memref<2x32xf32, #tpu.memory_space<vmem>>, %arg7: memref<2x32xf32, #tpu.memory_space<vmem>>) attributes {dimension_semantics = [], scalar_prefetch = 0 : i64, scratch_operands = 0 : i64, tpu.core_type = #tpu.core_type<tc>} {
    %c0 = arith.constant 0 : index
    %c0_0 = arith.constant 0 : index
    %0 = vector.load %arg0[%c0, %c0_0] : memref<16x300xf32, #tpu.memory_space<vmem>>, vector<16x300xf32>
    %c0_1 = arith.constant 0 : index
    %c0_2 = arith.constant 0 : index
    %1 = vector.load %arg1[%c0_1, %c0_2] : memref<300x128xf32, #tpu.memory_space<vmem>>, vector<300x128xf32>
    %cst = arith.constant dense<0.000000e+00> : vector<16x128xf32>
    %2 = tpu.matmul %0, %1, %cst {dimension_numbers = #tpu.dot_dimension_numbers<[1], [0], [0], [1], [0, 0, 1, 1], [], []>} : vector<16x300xf32>, vector<300x128xf32>, vector<16x128xf32> -> vector<16x128xf32>
    %c0_3 = arith.constant 0 : index
    %c0_4 = arith.constant 0 : index
    %3 = vector.load %arg3[%c0_3, %c0_4] : memref<1x128xf32, #tpu.memory_space<vmem>>, vector<1x128xf32>
    %4 = vector.broadcast %3 : vector<1x128xf32> to vector<16x128xf32>
    %5 = arith.addf %2, %4 : vector<16x128xf32>
    %c0_5 = arith.constant 0 : index
    %c0_6 = arith.constant 0 : index
    %6 = vector.load %arg2[%c0_5, %c0_6] : memref<32x128xf32, #tpu.memory_space<vmem>>, vector<32x128xf32>
    %cst_7 = arith.constant 0.000000e+00 : f32
    %7 = vector.broadcast %cst_7 : f32 to vector<2x32xf32>
    %cst_8 = arith.constant 0.000000e+00 : f32
    %8 = vector.broadcast %cst_8 : f32 to vector<2x32xf32>
    %9 = vector.extract_strided_slice %5 {offsets = [0, 0], sizes = [2, 128], strides = [1, 1]} : vector<16x128xf32> to vector<2x128xf32>
    %cst_9 = arith.constant dense<0.000000e+00> : vector<2x128xf32>
    %10 = tpu.matmul %7, %6, %cst_9 {dimension_numbers = #tpu.dot_dimension_numbers<[1], [0], [0], [1], [0, 0, 1, 1], [], []>} : vector<2x32xf32>, vector<32x128xf32>, vector<2x128xf32> -> vector<2x128xf32>
    %11 = arith.addf %9, %10 : vector<2x128xf32>
    %12 = vector.extract_strided_slice %11 {offsets = [0, 0], sizes = [2, 32], strides = [1, 1]} : vector<2x128xf32> to vector<2x32xf32>
    %13 = arith.negf %12 : vector<2x32xf32>
    %14 = math.exp %13 : vector<2x32xf32>
    %cst_10 = arith.constant 1.000000e+00 : f32
    %15 = vector.broadcast %cst_10 : f32 to vector<2x32xf32>
    %16 = arith.addf %15, %14 : vector<2x32xf32>
    %17 = arith.divf %15, %16 : vector<2x32xf32>
    %18 = vector.extract_strided_slice %11 {offsets = [0, 32], sizes = [2, 32], strides = [1, 1]} : vector<2x128xf32> to vector<2x32xf32>
    %19 = arith.negf %18 : vector<2x32xf32>
    %20 = math.exp %19 : vector<2x32xf32>
    %cst_11 = arith.constant 1.000000e+00 : f32
    %21 = vector.broadcast %cst_11 : f32 to vector<2x32xf32>
    %22 = arith.addf %21, %20 : vector<2x32xf32>
    %23 = arith.divf %21, %22 : vector<2x32xf32>
    %24 = vector.extract_strided_slice %11 {offsets = [0, 64], sizes = [2, 32], strides = [1, 1]} : vector<2x128xf32> to vector<2x32xf32>
    %25 = math.tanh %24 : vector<2x32xf32>
    %26 = vector.extract_strided_slice %11 {offsets = [0, 96], sizes = [2, 32], strides = [1, 1]} : vector<2x128xf32> to vector<2x32xf32>
    %27 = arith.negf %26 : vector<2x32xf32>
    %28 = math.exp %27 : vector<2x32xf32>
    %cst_12 = arith.constant 1.000000e+00 : f32
    %29 = vector.broadcast %cst_12 : f32 to vector<2x32xf32>
    %30 = arith.addf %29, %28 : vector<2x32xf32>
    %31 = arith.divf %29, %30 : vector<2x32xf32>
    %32 = arith.mulf %23, %8 : vector<2x32xf32>
    %33 = arith.mulf %17, %25 : vector<2x32xf32>
    %34 = arith.addf %32, %33 : vector<2x32xf32>
    %35 = math.tanh %34 : vector<2x32xf32>
    %36 = arith.mulf %31, %35 : vector<2x32xf32>
    %37 = vector.extract_strided_slice %5 {offsets = [2, 0], sizes = [2, 128], strides = [1, 1]} : vector<16x128xf32> to vector<2x128xf32>
    %cst_13 = arith.constant dense<0.000000e+00> : vector<2x128xf32>
    %38 = tpu.matmul %36, %6, %cst_13 {dimension_numbers = #tpu.dot_dimension_numbers<[1], [0], [0], [1], [0, 0, 1, 1], [], []>} : vector<2x32xf32>, vector<32x128xf32>, vector<2x128xf32> -> vector<2x128xf32>
    %39 = arith.addf %37, %38 : vector<2x128xf32>
    %40 = vector.extract_strided_slice %39 {offsets = [0, 0], sizes = [2, 32], strides = [1, 1]} : vector<2x128xf32> to vector<2x32xf32>
    %41 = arith.negf %40 : vector<2x32xf32>
    %42 = math.exp %41 : vector<2x32xf32>
    %cst_14 = arith.constant 1.000000e+00 : f32
    %43 = vector.broadcast %cst_14 : f32 to vector<2x32xf32>
    %44 = arith.addf %43, %42 : vector<2x32xf32>
    %45 = arith.divf %43, %44 : vector<2x32xf32>
    %46 = vector.extract_strided_slice %39 {offsets = [0, 32], sizes = [2, 32], strides = [1, 1]} : vector<2x128xf32> to vector<2x32xf32>
    %47 = arith.negf %46 : vector<2x32xf32>
    %48 = math.exp %47 : vector<2x32xf32>
    %cst_15 = arith.constant 1.000000e+00 : f32
    %49 = vector.broadcast %cst_15 : f32 to vector<2x32xf32>
    %50 = arith.addf %49, %48 : vector<2x32xf32>
    %51 = arith.divf %49, %50 : vector<2x32xf32>
    %52 = vector.extract_strided_slice %39 {offsets = [0, 64], sizes = [2, 32], strides = [1, 1]} : vector<2x128xf32> to vector<2x32xf32>
    %53 = math.tanh %52 : vector<2x32xf32>
    %54 = vector.extract_strided_slice %39 {offsets = [0, 96], sizes = [2, 32], strides = [1, 1]} : vector<2x128xf32> to vector<2x32xf32>
    %55 = arith.negf %54 : vector<2x32xf32>
    %56 = math.exp %55 : vector<2x32xf32>
    %cst_16 = arith.constant 1.000000e+00 : f32
    %57 = vector.broadcast %cst_16 : f32 to vector<2x32xf32>
    %58 = arith.addf %57, %56 : vector<2x32xf32>
    %59 = arith.divf %57, %58 : vector<2x32xf32>
    %60 = arith.mulf %51, %34 : vector<2x32xf32>
    %61 = arith.mulf %45, %53 : vector<2x32xf32>
    %62 = arith.addf %60, %61 : vector<2x32xf32>
    %63 = math.tanh %62 : vector<2x32xf32>
    %64 = arith.mulf %59, %63 : vector<2x32xf32>
    %65 = vector.extract_strided_slice %5 {offsets = [4, 0], sizes = [2, 128], strides = [1, 1]} : vector<16x128xf32> to vector<2x128xf32>
    %cst_17 = arith.constant dense<0.000000e+00> : vector<2x128xf32>
    %66 = tpu.matmul %64, %6, %cst_17 {dimension_numbers = #tpu.dot_dimension_numbers<[1], [0], [0], [1], [0, 0, 1, 1], [], []>} : vector<2x32xf32>, vector<32x128xf32>, vector<2x128xf32> -> vector<2x128xf32>
    %67 = arith.addf %65, %66 : vector<2x128xf32>
    %68 = vector.extract_strided_slice %67 {offsets = [0, 0], sizes = [2, 32], strides = [1, 1]} : vector<2x128xf32> to vector<2x32xf32>
    %69 = arith.negf %68 : vector<2x32xf32>
    %70 = math.exp %69 : vector<2x32xf32>
    %cst_18 = arith.constant 1.000000e+00 : f32
    %71 = vector.broadcast %cst_18 : f32 to vector<2x32xf32>
    %72 = arith.addf %71, %70 : vector<2x32xf32>
    %73 = arith.divf %71, %72 : vector<2x32xf32>
    %74 = vector.extract_strided_slice %67 {offsets = [0, 32], sizes = [2, 32], strides = [1, 1]} : vector<2x128xf32> to vector<2x32xf32>
    %75 = arith.negf %74 : vector<2x32xf32>
    %76 = math.exp %75 : vector<2x32xf32>
    %cst_19 = arith.constant 1.000000e+00 : f32
    %77 = vector.broadcast %cst_19 : f32 to vector<2x32xf32>
    %78 = arith.addf %77, %76 : vector<2x32xf32>
    %79 = arith.divf %77, %78 : vector<2x32xf32>
    %80 = vector.extract_strided_slice %67 {offsets = [0, 64], sizes = [2, 32], strides = [1, 1]} : vector<2x128xf32> to vector<2x32xf32>
    %81 = math.tanh %80 : vector<2x32xf32>
    %82 = vector.extract_strided_slice %67 {offsets = [0, 96], sizes = [2, 32], strides = [1, 1]} : vector<2x128xf32> to vector<2x32xf32>
    %83 = arith.negf %82 : vector<2x32xf32>
    %84 = math.exp %83 : vector<2x32xf32>
    %cst_20 = arith.constant 1.000000e+00 : f32
    %85 = vector.broadcast %cst_20 : f32 to vector<2x32xf32>
    %86 = arith.addf %85, %84 : vector<2x32xf32>
    %87 = arith.divf %85, %86 : vector<2x32xf32>
    %88 = arith.mulf %79, %62 : vector<2x32xf32>
    %89 = arith.mulf %73, %81 : vector<2x32xf32>
    %90 = arith.addf %88, %89 : vector<2x32xf32>
    %91 = math.tanh %90 : vector<2x32xf32>
    %92 = arith.mulf %87, %91 : vector<2x32xf32>
    %93 = vector.extract_strided_slice %5 {offsets = [6, 0], sizes = [2, 128], strides = [1, 1]} : vector<16x128xf32> to vector<2x128xf32>
    %cst_21 = arith.constant dense<0.000000e+00> : vector<2x128xf32>
    %94 = tpu.matmul %92, %6, %cst_21 {dimension_numbers = #tpu.dot_dimension_numbers<[1], [0], [0], [1], [0, 0, 1, 1], [], []>} : vector<2x32xf32>, vector<32x128xf32>, vector<2x128xf32> -> vector<2x128xf32>
    %95 = arith.addf %93, %94 : vector<2x128xf32>
    %96 = vector.extract_strided_slice %95 {offsets = [0, 0], sizes = [2, 32], strides = [1, 1]} : vector<2x128xf32> to vector<2x32xf32>
    %97 = arith.negf %96 : vector<2x32xf32>
    %98 = math.exp %97 : vector<2x32xf32>
    %cst_22 = arith.constant 1.000000e+00 : f32
    %99 = vector.broadcast %cst_22 : f32 to vector<2x32xf32>
    %100 = arith.addf %99, %98 : vector<2x32xf32>
    %101 = arith.divf %99, %100 : vector<2x32xf32>
    %102 = vector.extract_strided_slice %95 {offsets = [0, 32], sizes = [2, 32], strides = [1, 1]} : vector<2x128xf32> to vector<2x32xf32>
    %103 = arith.negf %102 : vector<2x32xf32>
    %104 = math.exp %103 : vector<2x32xf32>
    %cst_23 = arith.constant 1.000000e+00 : f32
    %105 = vector.broadcast %cst_23 : f32 to vector<2x32xf32>
    %106 = arith.addf %105, %104 : vector<2x32xf32>
    %107 = arith.divf %105, %106 : vector<2x32xf32>
    %108 = vector.extract_strided_slice %95 {offsets = [0, 64], sizes = [2, 32], strides = [1, 1]} : vector<2x128xf32> to vector<2x32xf32>
    %109 = math.tanh %108 : vector<2x32xf32>
    %110 = vector.extract_strided_slice %95 {offsets = [0, 96], sizes = [2, 32], strides = [1, 1]} : vector<2x128xf32> to vector<2x32xf32>
    %111 = arith.negf %110 : vector<2x32xf32>
    %112 = math.exp %111 : vector<2x32xf32>
    %cst_24 = arith.constant 1.000000e+00 : f32
    %113 = vector.broadcast %cst_24 : f32 to vector<2x32xf32>
    %114 = arith.addf %113, %112 : vector<2x32xf32>
    %115 = arith.divf %113, %114 : vector<2x32xf32>
    %116 = arith.mulf %107, %90 : vector<2x32xf32>
    %117 = arith.mulf %101, %109 : vector<2x32xf32>
    %118 = arith.addf %116, %117 : vector<2x32xf32>
    %119 = math.tanh %118 : vector<2x32xf32>
    %120 = arith.mulf %115, %119 : vector<2x32xf32>
    %121 = vector.extract_strided_slice %5 {offsets = [8, 0], sizes = [2, 128], strides = [1, 1]} : vector<16x128xf32> to vector<2x128xf32>
    %cst_25 = arith.constant dense<0.000000e+00> : vector<2x128xf32>
    %122 = tpu.matmul %120, %6, %cst_25 {dimension_numbers = #tpu.dot_dimension_numbers<[1], [0], [0], [1], [0, 0, 1, 1], [], []>} : vector<2x32xf32>, vector<32x128xf32>, vector<2x128xf32> -> vector<2x128xf32>
    %123 = arith.addf %121, %122 : vector<2x128xf32>
    %124 = vector.extract_strided_slice %123 {offsets = [0, 0], sizes = [2, 32], strides = [1, 1]} : vector<2x128xf32> to vector<2x32xf32>
    %125 = arith.negf %124 : vector<2x32xf32>
    %126 = math.exp %125 : vector<2x32xf32>
    %cst_26 = arith.constant 1.000000e+00 : f32
    %127 = vector.broadcast %cst_26 : f32 to vector<2x32xf32>
    %128 = arith.addf %127, %126 : vector<2x32xf32>
    %129 = arith.divf %127, %128 : vector<2x32xf32>
    %130 = vector.extract_strided_slice %123 {offsets = [0, 32], sizes = [2, 32], strides = [1, 1]} : vector<2x128xf32> to vector<2x32xf32>
    %131 = arith.negf %130 : vector<2x32xf32>
    %132 = math.exp %131 : vector<2x32xf32>
    %cst_27 = arith.constant 1.000000e+00 : f32
    %133 = vector.broadcast %cst_27 : f32 to vector<2x32xf32>
    %134 = arith.addf %133, %132 : vector<2x32xf32>
    %135 = arith.divf %133, %134 : vector<2x32xf32>
    %136 = vector.extract_strided_slice %123 {offsets = [0, 64], sizes = [2, 32], strides = [1, 1]} : vector<2x128xf32> to vector<2x32xf32>
    %137 = math.tanh %136 : vector<2x32xf32>
    %138 = vector.extract_strided_slice %123 {offsets = [0, 96], sizes = [2, 32], strides = [1, 1]} : vector<2x128xf32> to vector<2x32xf32>
    %139 = arith.negf %138 : vector<2x32xf32>
    %140 = math.exp %139 : vector<2x32xf32>
    %cst_28 = arith.constant 1.000000e+00 : f32
    %141 = vector.broadcast %cst_28 : f32 to vector<2x32xf32>
    %142 = arith.addf %141, %140 : vector<2x32xf32>
    %143 = arith.divf %141, %142 : vector<2x32xf32>
    %144 = arith.mulf %135, %118 : vector<2x32xf32>
    %145 = arith.mulf %129, %137 : vector<2x32xf32>
    %146 = arith.addf %144, %145 : vector<2x32xf32>
    %147 = math.tanh %146 : vector<2x32xf32>
    %148 = arith.mulf %143, %147 : vector<2x32xf32>
    %149 = vector.extract_strided_slice %5 {offsets = [10, 0], sizes = [2, 128], strides = [1, 1]} : vector<16x128xf32> to vector<2x128xf32>
    %cst_29 = arith.constant dense<0.000000e+00> : vector<2x128xf32>
    %150 = tpu.matmul %148, %6, %cst_29 {dimension_numbers = #tpu.dot_dimension_numbers<[1], [0], [0], [1], [0, 0, 1, 1], [], []>} : vector<2x32xf32>, vector<32x128xf32>, vector<2x128xf32> -> vector<2x128xf32>
    %151 = arith.addf %149, %150 : vector<2x128xf32>
    %152 = vector.extract_strided_slice %151 {offsets = [0, 0], sizes = [2, 32], strides = [1, 1]} : vector<2x128xf32> to vector<2x32xf32>
    %153 = arith.negf %152 : vector<2x32xf32>
    %154 = math.exp %153 : vector<2x32xf32>
    %cst_30 = arith.constant 1.000000e+00 : f32
    %155 = vector.broadcast %cst_30 : f32 to vector<2x32xf32>
    %156 = arith.addf %155, %154 : vector<2x32xf32>
    %157 = arith.divf %155, %156 : vector<2x32xf32>
    %158 = vector.extract_strided_slice %151 {offsets = [0, 32], sizes = [2, 32], strides = [1, 1]} : vector<2x128xf32> to vector<2x32xf32>
    %159 = arith.negf %158 : vector<2x32xf32>
    %160 = math.exp %159 : vector<2x32xf32>
    %cst_31 = arith.constant 1.000000e+00 : f32
    %161 = vector.broadcast %cst_31 : f32 to vector<2x32xf32>
    %162 = arith.addf %161, %160 : vector<2x32xf32>
    %163 = arith.divf %161, %162 : vector<2x32xf32>
    %164 = vector.extract_strided_slice %151 {offsets = [0, 64], sizes = [2, 32], strides = [1, 1]} : vector<2x128xf32> to vector<2x32xf32>
    %165 = math.tanh %164 : vector<2x32xf32>
    %166 = vector.extract_strided_slice %151 {offsets = [0, 96], sizes = [2, 32], strides = [1, 1]} : vector<2x128xf32> to vector<2x32xf32>
    %167 = arith.negf %166 : vector<2x32xf32>
    %168 = math.exp %167 : vector<2x32xf32>
    %cst_32 = arith.constant 1.000000e+00 : f32
    %169 = vector.broadcast %cst_32 : f32 to vector<2x32xf32>
    %170 = arith.addf %169, %168 : vector<2x32xf32>
    %171 = arith.divf %169, %170 : vector<2x32xf32>
    %172 = arith.mulf %163, %146 : vector<2x32xf32>
    %173 = arith.mulf %157, %165 : vector<2x32xf32>
    %174 = arith.addf %172, %173 : vector<2x32xf32>
    %175 = math.tanh %174 : vector<2x32xf32>
    %176 = arith.mulf %171, %175 : vector<2x32xf32>
    %177 = vector.extract_strided_slice %5 {offsets = [12, 0], sizes = [2, 128], strides = [1, 1]} : vector<16x128xf32> to vector<2x128xf32>
    %cst_33 = arith.constant dense<0.000000e+00> : vector<2x128xf32>
    %178 = tpu.matmul %176, %6, %cst_33 {dimension_numbers = #tpu.dot_dimension_numbers<[1], [0], [0], [1], [0, 0, 1, 1], [], []>} : vector<2x32xf32>, vector<32x128xf32>, vector<2x128xf32> -> vector<2x128xf32>
    %179 = arith.addf %177, %178 : vector<2x128xf32>
    %180 = vector.extract_strided_slice %179 {offsets = [0, 0], sizes = [2, 32], strides = [1, 1]} : vector<2x128xf32> to vector<2x32xf32>
    %181 = arith.negf %180 : vector<2x32xf32>
    %182 = math.exp %181 : vector<2x32xf32>
    %cst_34 = arith.constant 1.000000e+00 : f32
    %183 = vector.broadcast %cst_34 : f32 to vector<2x32xf32>
    %184 = arith.addf %183, %182 : vector<2x32xf32>
    %185 = arith.divf %183, %184 : vector<2x32xf32>
    %186 = vector.extract_strided_slice %179 {offsets = [0, 32], sizes = [2, 32], strides = [1, 1]} : vector<2x128xf32> to vector<2x32xf32>
    %187 = arith.negf %186 : vector<2x32xf32>
    %188 = math.exp %187 : vector<2x32xf32>
    %cst_35 = arith.constant 1.000000e+00 : f32
    %189 = vector.broadcast %cst_35 : f32 to vector<2x32xf32>
    %190 = arith.addf %189, %188 : vector<2x32xf32>
    %191 = arith.divf %189, %190 : vector<2x32xf32>
    %192 = vector.extract_strided_slice %179 {offsets = [0, 64], sizes = [2, 32], strides = [1, 1]} : vector<2x128xf32> to vector<2x32xf32>
    %193 = math.tanh %192 : vector<2x32xf32>
    %194 = vector.extract_strided_slice %179 {offsets = [0, 96], sizes = [2, 32], strides = [1, 1]} : vector<2x128xf32> to vector<2x32xf32>
    %195 = arith.negf %194 : vector<2x32xf32>
    %196 = math.exp %195 : vector<2x32xf32>
    %cst_36 = arith.constant 1.000000e+00 : f32
    %197 = vector.broadcast %cst_36 : f32 to vector<2x32xf32>
    %198 = arith.addf %197, %196 : vector<2x32xf32>
    %199 = arith.divf %197, %198 : vector<2x32xf32>
    %200 = arith.mulf %191, %174 : vector<2x32xf32>
    %201 = arith.mulf %185, %193 : vector<2x32xf32>
    %202 = arith.addf %200, %201 : vector<2x32xf32>
    %203 = math.tanh %202 : vector<2x32xf32>
    %204 = arith.mulf %199, %203 : vector<2x32xf32>
    %205 = vector.extract_strided_slice %5 {offsets = [14, 0], sizes = [2, 128], strides = [1, 1]} : vector<16x128xf32> to vector<2x128xf32>
    %cst_37 = arith.constant dense<0.000000e+00> : vector<2x128xf32>
    %206 = tpu.matmul %204, %6, %cst_37 {dimension_numbers = #tpu.dot_dimension_numbers<[1], [0], [0], [1], [0, 0, 1, 1], [], []>} : vector<2x32xf32>, vector<32x128xf32>, vector<2x128xf32> -> vector<2x128xf32>
    %207 = arith.addf %205, %206 : vector<2x128xf32>
    %208 = vector.extract_strided_slice %207 {offsets = [0, 0], sizes = [2, 32], strides = [1, 1]} : vector<2x128xf32> to vector<2x32xf32>
    %209 = arith.negf %208 : vector<2x32xf32>
    %210 = math.exp %209 : vector<2x32xf32>
    %cst_38 = arith.constant 1.000000e+00 : f32
    %211 = vector.broadcast %cst_38 : f32 to vector<2x32xf32>
    %212 = arith.addf %211, %210 : vector<2x32xf32>
    %213 = arith.divf %211, %212 : vector<2x32xf32>
    %214 = vector.extract_strided_slice %207 {offsets = [0, 32], sizes = [2, 32], strides = [1, 1]} : vector<2x128xf32> to vector<2x32xf32>
    %215 = arith.negf %214 : vector<2x32xf32>
    %216 = math.exp %215 : vector<2x32xf32>
    %cst_39 = arith.constant 1.000000e+00 : f32
    %217 = vector.broadcast %cst_39 : f32 to vector<2x32xf32>
    %218 = arith.addf %217, %216 : vector<2x32xf32>
    %219 = arith.divf %217, %218 : vector<2x32xf32>
    %220 = vector.extract_strided_slice %207 {offsets = [0, 64], sizes = [2, 32], strides = [1, 1]} : vector<2x128xf32> to vector<2x32xf32>
    %221 = math.tanh %220 : vector<2x32xf32>
    %222 = vector.extract_strided_slice %207 {offsets = [0, 96], sizes = [2, 32], strides = [1, 1]} : vector<2x128xf32> to vector<2x32xf32>
    %223 = arith.negf %222 : vector<2x32xf32>
    %224 = math.exp %223 : vector<2x32xf32>
    %cst_40 = arith.constant 1.000000e+00 : f32
    %225 = vector.broadcast %cst_40 : f32 to vector<2x32xf32>
    %226 = arith.addf %225, %224 : vector<2x32xf32>
    %227 = arith.divf %225, %226 : vector<2x32xf32>
    %228 = arith.mulf %219, %202 : vector<2x32xf32>
    %229 = arith.mulf %213, %221 : vector<2x32xf32>
    %230 = arith.addf %228, %229 : vector<2x32xf32>
    %231 = math.tanh %230 : vector<2x32xf32>
    %232 = arith.mulf %227, %231 : vector<2x32xf32>
    %c0_41 = arith.constant 0 : index
    %c0_42 = arith.constant 0 : index
    %233 = vector.load %arg6[%c0_41, %c0_42] : memref<2x32xf32, #tpu.memory_space<vmem>>, vector<2x32xf32>
    tpu.vector_store %arg6[%c0_41, %c0_42], %232 {strides = array<i32>} : memref<2x32xf32, #tpu.memory_space<vmem>>, vector<2x32xf32>,
    %c0_43 = arith.constant 0 : index
    %c0_44 = arith.constant 0 : index
    %234 = vector.load %arg4[%c0_43, %c0_44] : memref<32x32xf32, #tpu.memory_space<vmem>>, vector<32x32xf32>
    %cst_45 = arith.constant dense<0.000000e+00> : vector<2x32xf32>
    %235 = tpu.matmul %232, %234, %cst_45 {dimension_numbers = #tpu.dot_dimension_numbers<[1], [0], [0], [1], [0, 0, 1, 1], [], []>} : vector<2x32xf32>, vector<32x32xf32>, vector<2x32xf32> -> vector<2x32xf32>
    %c0_46 = arith.constant 0 : index
    %c0_47 = arith.constant 0 : index
    %236 = vector.load %arg5[%c0_46, %c0_47] : memref<1x32xf32, #tpu.memory_space<vmem>>, vector<1x32xf32>
    %237 = vector.broadcast %236 : vector<1x32xf32> to vector<2x32xf32>
    %238 = arith.addf %235, %237 : vector<2x32xf32>
    %cst_48 = arith.constant 0.000000e+00 : f32
    %239 = vector.broadcast %cst_48 : f32 to vector<2x32xf32>
    %240 = arith.maximumf %238, %239 : vector<2x32xf32>
    %c0_49 = arith.constant 0 : index
    %c0_50 = arith.constant 0 : index
    %241 = vector.load %arg7[%c0_49, %c0_50] : memref<2x32xf32, #tpu.memory_space<vmem>>, vector<2x32xf32>
    tpu.vector_store %arg7[%c0_49, %c0_50], %240 {strides = array<i32>} : memref<2x32xf32, #tpu.memory_space<vmem>>, vector<2x32xf32>,
    return
  }
}

module attributes {stable_mosaic.version = 11 : i64} {
  func.func @_linear_kernel(%arg0: memref<12x64xf32, #tpu.memory_space<vmem>>, %arg1: memref<64x32xf32, #tpu.memory_space<vmem>>, %arg2: memref<1x32xf32, #tpu.memory_space<vmem>>, %arg3: memref<12x32xf32, #tpu.memory_space<vmem>>) attributes {dimension_semantics = [], scalar_prefetch = 0 : i64, scratch_operands = 0 : i64, tpu.core_type = #tpu.core_type<tc>} {
    %c0 = arith.constant 0 : index
    %c0_0 = arith.constant 0 : index
    %0 = vector.load %arg0[%c0, %c0_0] : memref<12x64xf32, #tpu.memory_space<vmem>>, vector<12x64xf32>
    %c0_1 = arith.constant 0 : index
    %c0_2 = arith.constant 0 : index
    %1 = vector.load %arg1[%c0_1, %c0_2] : memref<64x32xf32, #tpu.memory_space<vmem>>, vector<64x32xf32>
    %cst = arith.constant dense<0.000000e+00> : vector<12x32xf32>
    %2 = tpu.matmul %0, %1, %cst {dimension_numbers = #tpu.dot_dimension_numbers<[1], [0], [0], [1], [0, 0, 1, 1], [], []>} : vector<12x64xf32>, vector<64x32xf32>, vector<12x32xf32> -> vector<12x32xf32>
    %c0_3 = arith.constant 0 : index
    %c0_4 = arith.constant 0 : index
    %3 = vector.load %arg2[%c0_3, %c0_4] : memref<1x32xf32, #tpu.memory_space<vmem>>, vector<1x32xf32>
    %4 = vector.broadcast %3 : vector<1x32xf32> to vector<12x32xf32>
    %5 = arith.addf %2, %4 : vector<12x32xf32>
    %cst_5 = arith.constant 0.000000e+00 : f32
    %6 = vector.broadcast %cst_5 : f32 to vector<12x32xf32>
    %7 = arith.maximumf %5, %6 : vector<12x32xf32>
    %c0_6 = arith.constant 0 : index
    %c0_7 = arith.constant 0 : index
    %8 = vector.load %arg3[%c0_6, %c0_7] : memref<12x32xf32, #tpu.memory_space<vmem>>, vector<12x32xf32>
    tpu.vector_store %arg3[%c0_6, %c0_7], %7 {strides = array<i32>} : memref<12x32xf32, #tpu.memory_space<vmem>>, vector<12x32xf32>,
    return
  }
}

module attributes {stable_mosaic.version = 11 : i64} {
  func.func @_san_cls_kernel(%arg0: memref<36x32xf32, #tpu.memory_space<vmem>>, %arg1: memref<6x32xf32, #tpu.memory_space<vmem>>, %arg2: memref<2x32x32xf32, #tpu.memory_space<vmem>>, %arg3: memref<2x32xf32, #tpu.memory_space<vmem>>, %arg4: memref<2x32x32xf32, #tpu.memory_space<vmem>>, %arg5: memref<2x32xf32, #tpu.memory_space<vmem>>, %arg6: memref<2x32xf32, #tpu.memory_space<vmem>>, %arg7: memref<2x1xf32, #tpu.memory_space<vmem>>, %arg8: memref<32x64xf32, #tpu.memory_space<vmem>>, %arg9: memref<1x64xf32, #tpu.memory_space<vmem>>, %arg10: memref<64x10xf32, #tpu.memory_space<vmem>>, %arg11: memref<1x10xf32, #tpu.memory_space<vmem>>, %arg12: memref<6x32xf32, #tpu.memory_space<vmem>>, %arg13: memref<6x10xf32, #tpu.memory_space<vmem>>) attributes {dimension_semantics = [], scalar_prefetch = 0 : i64, scratch_operands = 0 : i64, tpu.core_type = #tpu.core_type<tc>} {
    %c0 = arith.constant 0 : index
    %c0_0 = arith.constant 0 : index
    %0 = vector.load %arg0[%c0, %c0_0] : memref<36x32xf32, #tpu.memory_space<vmem>>, vector<36x32xf32>
    %1 = vector.shape_cast %0 : vector<36x32xf32> to vector<6x6x32xf32>
    %c0_1 = arith.constant 0 : index
    %c0_2 = arith.constant 0 : index
    %2 = vector.load %arg1[%c0_1, %c0_2] : memref<6x32xf32, #tpu.memory_space<vmem>>, vector<6x32xf32>
    %c0_3 = arith.constant 0 : index
    %c0_4 = arith.constant 0 : index
    %c0_5 = arith.constant 0 : index
    %3 = vector.load %arg2[%c0_3, %c0_4, %c0_5] : memref<2x32x32xf32, #tpu.memory_space<vmem>>, vector<1x32x32xf32>
    %4 = vector.shape_cast %3 : vector<1x32x32xf32> to vector<32x32xf32>
    %cst = arith.constant dense<0.000000e+00> : vector<36x32xf32>
    %5 = tpu.matmul %0, %4, %cst {dimension_numbers = #tpu.dot_dimension_numbers<[1], [0], [0], [1], [0, 0, 1, 1], [], []>} : vector<36x32xf32>, vector<32x32xf32>, vector<36x32xf32> -> vector<36x32xf32>
    %c0_6 = arith.constant 0 : index
    %c0_7 = arith.constant 0 : index
    %6 = vector.load %arg3[%c0_6, %c0_7] : memref<2x32xf32, #tpu.memory_space<vmem>>, vector<1x32xf32>
    %7 = vector.shape_cast %6 : vector<1x32xf32> to vector<32xf32>
    %8 = vector.shape_cast %7 : vector<32xf32> to vector<1x32xf32>
    %9 = vector.broadcast %8 : vector<1x32xf32> to vector<36x32xf32>
    %10 = arith.addf %5, %9 : vector<36x32xf32>
    %c0_8 = arith.constant 0 : index
    %c0_9 = arith.constant 0 : index
    %c0_10 = arith.constant 0 : index
    %11 = vector.load %arg4[%c0_8, %c0_9, %c0_10] : memref<2x32x32xf32, #tpu.memory_space<vmem>>, vector<1x32x32xf32>
    %12 = vector.shape_cast %11 : vector<1x32x32xf32> to vector<32x32xf32>
    %cst_11 = arith.constant dense<0.000000e+00> : vector<6x32xf32>
    %13 = tpu.matmul %2, %12, %cst_11 {dimension_numbers = #tpu.dot_dimension_numbers<[1], [0], [0], [1], [0, 0, 1, 1], [], []>} : vector<6x32xf32>, vector<32x32xf32>, vector<6x32xf32> -> vector<6x32xf32>
    %c0_12 = arith.constant 0 : index
    %c0_13 = arith.constant 0 : index
    %14 = vector.load %arg5[%c0_12, %c0_13] : memref<2x32xf32, #tpu.memory_space<vmem>>, vector<1x32xf32>
    %15 = vector.shape_cast %14 : vector<1x32xf32> to vector<32xf32>
    %16 = vector.shape_cast %15 : vector<32xf32> to vector<1x32xf32>
    %17 = vector.broadcast %16 : vector<1x32xf32> to vector<6x32xf32>
    %18 = arith.addf %13, %17 : vector<6x32xf32>
    %19 = vector.shape_cast %10 : vector<36x32xf32> to vector<6x6x32xf32>
    %20 = vector.shape_cast %18 : vector<6x32xf32> to vector<6x1x32xf32>
    %21 = vector.broadcast %20 : vector<6x1x32xf32> to vector<6x6x32xf32>
    %22 = arith.addf %19, %21 : vector<6x6x32xf32>
    %23 = math.tanh %22 : vector<6x6x32xf32>
    %c0_14 = arith.constant 0 : index
    %c0_15 = arith.constant 0 : index
    %24 = vector.load %arg6[%c0_14, %c0_15] : memref<2x32xf32, #tpu.memory_space<vmem>>, vector<1x32xf32>
    %25 = vector.shape_cast %24 : vector<1x32xf32> to vector<32xf32>
    %26 = vector.shape_cast %25 : vector<32xf32> to vector<1x1x32xf32>
    %27 = vector.broadcast %26 : vector<1x1x32xf32> to vector<6x6x32xf32>
    %28 = arith.mulf %23, %27 : vector<6x6x32xf32>
    %cst_16 = arith.constant dense<0.000000e+00> : vector<6x6xf32>
    %29 = vector.multi_reduction <add>, %28, %cst_16 [2] : vector<6x6x32xf32> to vector<6x6xf32>
    %c0_17 = arith.constant 0 : index
    %c0_18 = arith.constant 0 : index
    %30 = vector.load %arg7[%c0_17, %c0_18] : memref<2x1xf32, #tpu.memory_space<vmem>>, vector<1x1xf32>
    %31 = vector.shape_cast %30 : vector<1x1xf32> to vector<1xf32>
    %32 = vector.shape_cast %31 : vector<1xf32> to vector<1x1xf32>
    %33 = vector.broadcast %32 : vector<1x1xf32> to vector<6x6xf32>
    %34 = arith.addf %29, %33 : vector<6x6xf32>
    %cst_19 = arith.constant dense<0xFF800000> : vector<6xf32>
    %35 = vector.multi_reduction <maximumf>, %34, %cst_19 [1] : vector<6x6xf32> to vector<6xf32>
    %36 = vector.shape_cast %35 : vector<6xf32> to vector<6x1xf32>
    %37 = vector.broadcast %36 : vector<6x1xf32> to vector<6x6xf32>
    %38 = arith.subf %34, %37 : vector<6x6xf32>
    %39 = math.exp %38 : vector<6x6xf32>
    %cst_20 = arith.constant dense<0.000000e+00> : vector<6xf32>
    %40 = vector.multi_reduction <add>, %39, %cst_20 [1] : vector<6x6xf32> to vector<6xf32>
    %41 = vector.shape_cast %40 : vector<6xf32> to vector<6x1xf32>
    %42 = tpu.reciprocal %41 {approx = true} : vector<6x1xf32> -> vector<6x1xf32>
    %43 = vector.broadcast %42 : vector<6x1xf32> to vector<6x6xf32>
    %44 = arith.mulf %39, %43 : vector<6x6xf32>
    %45 = vector.shape_cast %44 : vector<6x6xf32> to vector<6x6x1xf32>
    %46 = vector.broadcast %45 : vector<6x6x1xf32> to vector<6x6x32xf32>
    %47 = arith.mulf %46, %1 : vector<6x6x32xf32>
    %cst_21 = arith.constant dense<0.000000e+00> : vector<6x32xf32>
    %48 = vector.multi_reduction <add>, %47, %cst_21 [1] : vector<6x6x32xf32> to vector<6x32xf32>
    %49 = arith.addf %2, %48 : vector<6x32xf32>
    %c1 = arith.constant 1 : index
    %c0_22 = arith.constant 0 : index
    %c0_23 = arith.constant 0 : index
    %50 = vector.load %arg2[%c1, %c0_22, %c0_23] : memref<2x32x32xf32, #tpu.memory_space<vmem>>, vector<1x32x32xf32>
    %51 = vector.shape_cast %50 : vector<1x32x32xf32> to vector<32x32xf32>
    %cst_24 = arith.constant dense<0.000000e+00> : vector<36x32xf32>
    %52 = tpu.matmul %0, %51, %cst_24 {dimension_numbers = #tpu.dot_dimension_numbers<[1], [0], [0], [1], [0, 0, 1, 1], [], []>} : vector<36x32xf32>, vector<32x32xf32>, vector<36x32xf32> -> vector<36x32xf32>
    %c1_25 = arith.constant 1 : index
    %c0_26 = arith.constant 0 : index
    %53 = vector.load %arg3[%c1_25, %c0_26] : memref<2x32xf32, #tpu.memory_space<vmem>>, vector<1x32xf32>
    %54 = vector.shape_cast %53 : vector<1x32xf32> to vector<32xf32>
    %55 = vector.shape_cast %54 : vector<32xf32> to vector<1x32xf32>
    %56 = vector.broadcast %55 : vector<1x32xf32> to vector<36x32xf32>
    %57 = arith.addf %52, %56 : vector<36x32xf32>
    %c1_27 = arith.constant 1 : index
    %c0_28 = arith.constant 0 : index
    %c0_29 = arith.constant 0 : index
    %58 = vector.load %arg4[%c1_27, %c0_28, %c0_29] : memref<2x32x32xf32, #tpu.memory_space<vmem>>, vector<1x32x32xf32>
    %59 = vector.shape_cast %58 : vector<1x32x32xf32> to vector<32x32xf32>
    %cst_30 = arith.constant dense<0.000000e+00> : vector<6x32xf32>
    %60 = tpu.matmul %49, %59, %cst_30 {dimension_numbers = #tpu.dot_dimension_numbers<[1], [0], [0], [1], [0, 0, 1, 1], [], []>} : vector<6x32xf32>, vector<32x32xf32>, vector<6x32xf32> -> vector<6x32xf32>
    %c1_31 = arith.constant 1 : index
    %c0_32 = arith.constant 0 : index
    %61 = vector.load %arg5[%c1_31, %c0_32] : memref<2x32xf32, #tpu.memory_space<vmem>>, vector<1x32xf32>
    %62 = vector.shape_cast %61 : vector<1x32xf32> to vector<32xf32>
    %63 = vector.shape_cast %62 : vector<32xf32> to vector<1x32xf32>
    %64 = vector.broadcast %63 : vector<1x32xf32> to vector<6x32xf32>
    %65 = arith.addf %60, %64 : vector<6x32xf32>
    %66 = vector.shape_cast %57 : vector<36x32xf32> to vector<6x6x32xf32>
    %67 = vector.shape_cast %65 : vector<6x32xf32> to vector<6x1x32xf32>
    %68 = vector.broadcast %67 : vector<6x1x32xf32> to vector<6x6x32xf32>
    %69 = arith.addf %66, %68 : vector<6x6x32xf32>
    %70 = math.tanh %69 : vector<6x6x32xf32>
    %c1_33 = arith.constant 1 : index
    %c0_34 = arith.constant 0 : index
    %71 = vector.load %arg6[%c1_33, %c0_34] : memref<2x32xf32, #tpu.memory_space<vmem>>, vector<1x32xf32>
    %72 = vector.shape_cast %71 : vector<1x32xf32> to vector<32xf32>
    %73 = vector.shape_cast %72 : vector<32xf32> to vector<1x1x32xf32>
    %74 = vector.broadcast %73 : vector<1x1x32xf32> to vector<6x6x32xf32>
    %75 = arith.mulf %70, %74 : vector<6x6x32xf32>
    %cst_35 = arith.constant dense<0.000000e+00> : vector<6x6xf32>
    %76 = vector.multi_reduction <add>, %75, %cst_35 [2] : vector<6x6x32xf32> to vector<6x6xf32>
    %c1_36 = arith.constant 1 : index
    %c0_37 = arith.constant 0 : index
    %77 = vector.load %arg7[%c1_36, %c0_37] : memref<2x1xf32, #tpu.memory_space<vmem>>, vector<1x1xf32>
    %78 = vector.shape_cast %77 : vector<1x1xf32> to vector<1xf32>
    %79 = vector.shape_cast %78 : vector<1xf32> to vector<1x1xf32>
    %80 = vector.broadcast %79 : vector<1x1xf32> to vector<6x6xf32>
    %81 = arith.addf %76, %80 : vector<6x6xf32>
    %cst_38 = arith.constant dense<0xFF800000> : vector<6xf32>
    %82 = vector.multi_reduction <maximumf>, %81, %cst_38 [1] : vector<6x6xf32> to vector<6xf32>
    %83 = vector.shape_cast %82 : vector<6xf32> to vector<6x1xf32>
    %84 = vector.broadcast %83 : vector<6x1xf32> to vector<6x6xf32>
    %85 = arith.subf %81, %84 : vector<6x6xf32>
    %86 = math.exp %85 : vector<6x6xf32>
    %cst_39 = arith.constant dense<0.000000e+00> : vector<6xf32>
    %87 = vector.multi_reduction <add>, %86, %cst_39 [1] : vector<6x6xf32> to vector<6xf32>
    %88 = vector.shape_cast %87 : vector<6xf32> to vector<6x1xf32>
    %89 = tpu.reciprocal %88 {approx = true} : vector<6x1xf32> -> vector<6x1xf32>
    %90 = vector.broadcast %89 : vector<6x1xf32> to vector<6x6xf32>
    %91 = arith.mulf %86, %90 : vector<6x6xf32>
    %92 = vector.shape_cast %91 : vector<6x6xf32> to vector<6x6x1xf32>
    %93 = vector.broadcast %92 : vector<6x6x1xf32> to vector<6x6x32xf32>
    %94 = arith.mulf %93, %1 : vector<6x6x32xf32>
    %cst_40 = arith.constant dense<0.000000e+00> : vector<6x32xf32>
    %95 = vector.multi_reduction <add>, %94, %cst_40 [1] : vector<6x6x32xf32> to vector<6x32xf32>
    %96 = arith.addf %49, %95 : vector<6x32xf32>
    %c0_41 = arith.constant 0 : index
    %c0_42 = arith.constant 0 : index
    %97 = vector.load %arg12[%c0_41, %c0_42] : memref<6x32xf32, #tpu.memory_space<vmem>>, vector<6x32xf32>
    tpu.vector_store %arg12[%c0_41, %c0_42], %96 {strides = array<i32>} : memref<6x32xf32, #tpu.memory_space<vmem>>, vector<6x32xf32>,
    %c0_43 = arith.constant 0 : index
    %c0_44 = arith.constant 0 : index
    %98 = vector.load %arg8[%c0_43, %c0_44] : memref<32x64xf32, #tpu.memory_space<vmem>>, vector<32x64xf32>
    %cst_45 = arith.constant dense<0.000000e+00> : vector<6x64xf32>
    %99 = tpu.matmul %96, %98, %cst_45 {dimension_numbers = #tpu.dot_dimension_numbers<[1], [0], [0], [1], [0, 0, 1, 1], [], []>} : vector<6x32xf32>, vector<32x64xf32>, vector<6x64xf32> -> vector<6x64xf32>
    %c0_46 = arith.constant 0 : index
    %c0_47 = arith.constant 0 : index
    %100 = vector.load %arg9[%c0_46, %c0_47] : memref<1x64xf32, #tpu.memory_space<vmem>>, vector<1x64xf32>
    %101 = vector.broadcast %100 : vector<1x64xf32> to vector<6x64xf32>
    %102 = arith.addf %99, %101 : vector<6x64xf32>
    %cst_48 = arith.constant 0.000000e+00 : f32
    %103 = vector.broadcast %cst_48 : f32 to vector<6x64xf32>
    %104 = arith.maximumf %102, %103 : vector<6x64xf32>
    %c0_49 = arith.constant 0 : index
    %c0_50 = arith.constant 0 : index
    %105 = vector.load %arg10[%c0_49, %c0_50] : memref<64x10xf32, #tpu.memory_space<vmem>>, vector<64x10xf32>
    %cst_51 = arith.constant dense<0.000000e+00> : vector<6x10xf32>
    %106 = tpu.matmul %104, %105, %cst_51 {dimension_numbers = #tpu.dot_dimension_numbers<[1], [0], [0], [1], [0, 0, 1, 1], [], []>} : vector<6x64xf32>, vector<64x10xf32>, vector<6x10xf32> -> vector<6x10xf32>
    %c0_52 = arith.constant 0 : index
    %c0_53 = arith.constant 0 : index
    %107 = vector.load %arg11[%c0_52, %c0_53] : memref<1x10xf32, #tpu.memory_space<vmem>>, vector<1x10xf32>
    %108 = vector.broadcast %107 : vector<1x10xf32> to vector<6x10xf32>
    %109 = arith.addf %106, %108 : vector<6x10xf32>
    %c0_54 = arith.constant 0 : index
    %c0_55 = arith.constant 0 : index
    %110 = vector.load %arg13[%c0_54, %c0_55] : memref<6x10xf32, #tpu.memory_space<vmem>>, vector<6x10xf32>
    tpu.vector_store %arg13[%c0_54, %c0_55], %109 {strides = array<i32>} : memref<6x10xf32, #tpu.memory_space<vmem>>, vector<6x10xf32>,
    return
  }
}

module attributes {stable_mosaic.version = 11 : i64} {
  func.func @_bias_branch_kernel(%arg0: memref<2x32xf32, #tpu.memory_space<vmem>>, %arg1: memref<2x32xf32, #tpu.memory_space<vmem>>, %arg2: memref<2x32xf32, #tpu.memory_space<vmem>>, %arg3: memref<32x32xf32, #tpu.memory_space<vmem>>, %arg4: memref<1x32xf32, #tpu.memory_space<vmem>>, %arg5: memref<32x32xf32, #tpu.memory_space<vmem>>, %arg6: memref<1x32xf32, #tpu.memory_space<vmem>>, %arg7: memref<32x10xf32, #tpu.memory_space<vmem>>, %arg8: memref<1x10xf32, #tpu.memory_space<vmem>>, %arg9: memref<1x32xf32, #tpu.memory_space<vmem>>, %arg10: memref<1x1xf32, #tpu.memory_space<vmem>>, %arg11: memref<32x32xf32, #tpu.memory_space<vmem>>, %arg12: memref<1x32xf32, #tpu.memory_space<vmem>>, %arg13: memref<32x32xf32, #tpu.memory_space<vmem>>, %arg14: memref<1x32xf32, #tpu.memory_space<vmem>>, %arg15: memref<32x10xf32, #tpu.memory_space<vmem>>, %arg16: memref<1x10xf32, #tpu.memory_space<vmem>>, %arg17: memref<1x32xf32, #tpu.memory_space<vmem>>, %arg18: memref<1x1xf32, #tpu.memory_space<vmem>>, %arg19: memref<1x32xf32, #tpu.memory_space<vmem>>, %arg20: memref<1x1xf32, #tpu.memory_space<vmem>>, %arg21: memref<32x32xf32, #tpu.memory_space<vmem>>, %arg22: memref<1x32xf32, #tpu.memory_space<vmem>>, %arg23: memref<32x10xf32, #tpu.memory_space<vmem>>, %arg24: memref<1x10xf32, #tpu.memory_space<vmem>>, %arg25: memref<2x10xf32, #tpu.memory_space<vmem>>, %arg26: memref<2x10xf32, #tpu.memory_space<vmem>>, %arg27: memref<2x10xf32, #tpu.memory_space<vmem>>, %arg28: memref<2x32xf32, #tpu.memory_space<vmem>>, %arg29: memref<2x32xf32, #tpu.memory_space<vmem>>) attributes {dimension_semantics = [], scalar_prefetch = 0 : i64, scratch_operands = 0 : i64, tpu.core_type = #tpu.core_type<tc>} {
    %c0 = arith.constant 0 : index
    %c0_0 = arith.constant 0 : index
    %0 = vector.load %arg0[%c0, %c0_0] : memref<2x32xf32, #tpu.memory_space<vmem>>, vector<2x32xf32>
    %c0_1 = arith.constant 0 : index
    %c0_2 = arith.constant 0 : index
    %1 = vector.load %arg3[%c0_1, %c0_2] : memref<32x32xf32, #tpu.memory_space<vmem>>, vector<32x32xf32>
    %cst = arith.constant dense<0.000000e+00> : vector<2x32xf32>
    %2 = tpu.matmul %0, %1, %cst {dimension_numbers = #tpu.dot_dimension_numbers<[1], [0], [0], [1], [0, 0, 1, 1], [], []>} : vector<2x32xf32>, vector<32x32xf32>, vector<2x32xf32> -> vector<2x32xf32>
    %c0_3 = arith.constant 0 : index
    %c0_4 = arith.constant 0 : index
    %3 = vector.load %arg4[%c0_3, %c0_4] : memref<1x32xf32, #tpu.memory_space<vmem>>, vector<1x32xf32>
    %4 = vector.broadcast %3 : vector<1x32xf32> to vector<2x32xf32>
    %5 = arith.addf %2, %4 : vector<2x32xf32>
    %cst_5 = arith.constant 0.000000e+00 : f32
    %6 = vector.broadcast %cst_5 : f32 to vector<2x32xf32>
    %7 = arith.maximumf %5, %6 : vector<2x32xf32>
    %c0_6 = arith.constant 0 : index
    %c0_7 = arith.constant 0 : index
    %8 = vector.load %arg5[%c0_6, %c0_7] : memref<32x32xf32, #tpu.memory_space<vmem>>, vector<32x32xf32>
    %cst_8 = arith.constant dense<0.000000e+00> : vector<2x32xf32>
    %9 = tpu.matmul %7, %8, %cst_8 {dimension_numbers = #tpu.dot_dimension_numbers<[1], [0], [0], [1], [0, 0, 1, 1], [], []>} : vector<2x32xf32>, vector<32x32xf32>, vector<2x32xf32> -> vector<2x32xf32>
    %c0_9 = arith.constant 0 : index
    %c0_10 = arith.constant 0 : index
    %10 = vector.load %arg6[%c0_9, %c0_10] : memref<1x32xf32, #tpu.memory_space<vmem>>, vector<1x32xf32>
    %11 = vector.broadcast %10 : vector<1x32xf32> to vector<2x32xf32>
    %12 = arith.addf %9, %11 : vector<2x32xf32>
    %cst_11 = arith.constant 0.000000e+00 : f32
    %13 = vector.broadcast %cst_11 : f32 to vector<2x32xf32>
    %14 = arith.maximumf %12, %13 : vector<2x32xf32>
    %c0_12 = arith.constant 0 : index
    %c0_13 = arith.constant 0 : index
    %15 = vector.load %arg7[%c0_12, %c0_13] : memref<32x10xf32, #tpu.memory_space<vmem>>, vector<32x10xf32>
    %cst_14 = arith.constant dense<0.000000e+00> : vector<2x10xf32>
    %16 = tpu.matmul %14, %15, %cst_14 {dimension_numbers = #tpu.dot_dimension_numbers<[1], [0], [0], [1], [0, 0, 1, 1], [], []>} : vector<2x32xf32>, vector<32x10xf32>, vector<2x10xf32> -> vector<2x10xf32>
    %c0_15 = arith.constant 0 : index
    %c0_16 = arith.constant 0 : index
    %17 = vector.load %arg8[%c0_15, %c0_16] : memref<1x10xf32, #tpu.memory_space<vmem>>, vector<1x10xf32>
    %18 = vector.broadcast %17 : vector<1x10xf32> to vector<2x10xf32>
    %19 = arith.addf %16, %18 : vector<2x10xf32>
    %c0_17 = arith.constant 0 : index
    %c0_18 = arith.constant 0 : index
    %20 = vector.load %arg25[%c0_17, %c0_18] : memref<2x10xf32, #tpu.memory_space<vmem>>, vector<2x10xf32>
    tpu.vector_store %arg25[%c0_17, %c0_18], %19 {strides = array<i32>} : memref<2x10xf32, #tpu.memory_space<vmem>>, vector<2x10xf32>,
    %c0_19 = arith.constant 0 : index
    %c0_20 = arith.constant 0 : index
    %21 = vector.load %arg9[%c0_19, %c0_20] : memref<1x32xf32, #tpu.memory_space<vmem>>, vector<1x32xf32>
    %22 = vector.broadcast %21 : vector<1x32xf32> to vector<2x32xf32>
    %23 = arith.mulf %14, %22 : vector<2x32xf32>
    %cst_21 = arith.constant dense<0.000000e+00> : vector<2xf32>
    %24 = vector.multi_reduction <add>, %23, %cst_21 [1] : vector<2x32xf32> to vector<2xf32>
    %25 = vector.shape_cast %24 : vector<2xf32> to vector<2x1xf32>
    %c0_22 = arith.constant 0 : index
    %c0_23 = arith.constant 0 : index
    %26 = vector.load %arg10[%c0_22, %c0_23] : memref<1x1xf32, #tpu.memory_space<vmem>>, vector<1x1xf32>
    %27 = vector.broadcast %26 : vector<1x1xf32> to vector<2x1xf32>
    %28 = arith.addf %25, %27 : vector<2x1xf32>
    %29 = arith.negf %28 : vector<2x1xf32>
    %30 = math.exp %29 : vector<2x1xf32>
    %cst_24 = arith.constant 1.000000e+00 : f32
    %31 = vector.broadcast %cst_24 : f32 to vector<2x1xf32>
    %32 = arith.addf %31, %30 : vector<2x1xf32>
    %33 = arith.divf %31, %32 : vector<2x1xf32>
    %c0_25 = arith.constant 0 : index
    %c0_26 = arith.constant 0 : index
    %34 = vector.load %arg1[%c0_25, %c0_26] : memref<2x32xf32, #tpu.memory_space<vmem>>, vector<2x32xf32>
    %c0_27 = arith.constant 0 : index
    %c0_28 = arith.constant 0 : index
    %35 = vector.load %arg11[%c0_27, %c0_28] : memref<32x32xf32, #tpu.memory_space<vmem>>, vector<32x32xf32>
    %cst_29 = arith.constant dense<0.000000e+00> : vector<2x32xf32>
    %36 = tpu.matmul %34, %35, %cst_29 {dimension_numbers = #tpu.dot_dimension_numbers<[1], [0], [0], [1], [0, 0, 1, 1], [], []>} : vector<2x32xf32>, vector<32x32xf32>, vector<2x32xf32> -> vector<2x32xf32>
    %c0_30 = arith.constant 0 : index
    %c0_31 = arith.constant 0 : index
    %37 = vector.load %arg12[%c0_30, %c0_31] : memref<1x32xf32, #tpu.memory_space<vmem>>, vector<1x32xf32>
    %38 = vector.broadcast %37 : vector<1x32xf32> to vector<2x32xf32>
    %39 = arith.addf %36, %38 : vector<2x32xf32>
    %cst_32 = arith.constant 0.000000e+00 : f32
    %40 = vector.broadcast %cst_32 : f32 to vector<2x32xf32>
    %41 = arith.maximumf %39, %40 : vector<2x32xf32>
    %c0_33 = arith.constant 0 : index
    %c0_34 = arith.constant 0 : index
    %42 = vector.load %arg13[%c0_33, %c0_34] : memref<32x32xf32, #tpu.memory_space<vmem>>, vector<32x32xf32>
    %cst_35 = arith.constant dense<0.000000e+00> : vector<2x32xf32>
    %43 = tpu.matmul %41, %42, %cst_35 {dimension_numbers = #tpu.dot_dimension_numbers<[1], [0], [0], [1], [0, 0, 1, 1], [], []>} : vector<2x32xf32>, vector<32x32xf32>, vector<2x32xf32> -> vector<2x32xf32>
    %c0_36 = arith.constant 0 : index
    %c0_37 = arith.constant 0 : index
    %44 = vector.load %arg14[%c0_36, %c0_37] : memref<1x32xf32, #tpu.memory_space<vmem>>, vector<1x32xf32>
    %45 = vector.broadcast %44 : vector<1x32xf32> to vector<2x32xf32>
    %46 = arith.addf %43, %45 : vector<2x32xf32>
    %cst_38 = arith.constant 0.000000e+00 : f32
    %47 = vector.broadcast %cst_38 : f32 to vector<2x32xf32>
    %48 = arith.maximumf %46, %47 : vector<2x32xf32>
    %c0_39 = arith.constant 0 : index
    %c0_40 = arith.constant 0 : index
    %49 = vector.load %arg15[%c0_39, %c0_40] : memref<32x10xf32, #tpu.memory_space<vmem>>, vector<32x10xf32>
    %cst_41 = arith.constant dense<0.000000e+00> : vector<2x10xf32>
    %50 = tpu.matmul %48, %49, %cst_41 {dimension_numbers = #tpu.dot_dimension_numbers<[1], [0], [0], [1], [0, 0, 1, 1], [], []>} : vector<2x32xf32>, vector<32x10xf32>, vector<2x10xf32> -> vector<2x10xf32>
    %c0_42 = arith.constant 0 : index
    %c0_43 = arith.constant 0 : index
    %51 = vector.load %arg16[%c0_42, %c0_43] : memref<1x10xf32, #tpu.memory_space<vmem>>, vector<1x10xf32>
    %52 = vector.broadcast %51 : vector<1x10xf32> to vector<2x10xf32>
    %53 = arith.addf %50, %52 : vector<2x10xf32>
    %c0_44 = arith.constant 0 : index
    %c0_45 = arith.constant 0 : index
    %54 = vector.load %arg26[%c0_44, %c0_45] : memref<2x10xf32, #tpu.memory_space<vmem>>, vector<2x10xf32>
    tpu.vector_store %arg26[%c0_44, %c0_45], %53 {strides = array<i32>} : memref<2x10xf32, #tpu.memory_space<vmem>>, vector<2x10xf32>,
    %c0_46 = arith.constant 0 : index
    %c0_47 = arith.constant 0 : index
    %55 = vector.load %arg17[%c0_46, %c0_47] : memref<1x32xf32, #tpu.memory_space<vmem>>, vector<1x32xf32>
    %56 = vector.broadcast %55 : vector<1x32xf32> to vector<2x32xf32>
    %57 = arith.mulf %48, %56 : vector<2x32xf32>
    %cst_48 = arith.constant dense<0.000000e+00> : vector<2xf32>
    %58 = vector.multi_reduction <add>, %57, %cst_48 [1] : vector<2x32xf32> to vector<2xf32>
    %59 = vector.shape_cast %58 : vector<2xf32> to vector<2x1xf32>
    %c0_49 = arith.constant 0 : index
    %c0_50 = arith.constant 0 : index
    %60 = vector.load %arg18[%c0_49, %c0_50] : memref<1x1xf32, #tpu.memory_space<vmem>>, vector<1x1xf32>
    %61 = vector.broadcast %60 : vector<1x1xf32> to vector<2x1xf32>
    %62 = arith.addf %59, %61 : vector<2x1xf32>
    %63 = arith.negf %62 : vector<2x1xf32>
    %64 = math.exp %63 : vector<2x1xf32>
    %cst_51 = arith.constant 1.000000e+00 : f32
    %65 = vector.broadcast %cst_51 : f32 to vector<2x1xf32>
    %66 = arith.addf %65, %64 : vector<2x1xf32>
    %67 = arith.divf %65, %66 : vector<2x1xf32>
    %68 = vector.broadcast %33 : vector<2x1xf32> to vector<2x32xf32>
    %69 = arith.mulf %68, %14 : vector<2x32xf32>
    %70 = vector.broadcast %67 : vector<2x1xf32> to vector<2x32xf32>
    %71 = arith.mulf %70, %48 : vector<2x32xf32>
    %c0_52 = arith.constant 0 : index
    %c0_53 = arith.constant 0 : index
    %72 = vector.load %arg19[%c0_52, %c0_53] : memref<1x32xf32, #tpu.memory_space<vmem>>, vector<1x32xf32>
    %73 = vector.broadcast %72 : vector<1x32xf32> to vector<2x32xf32>
    %74 = arith.mulf %69, %73 : vector<2x32xf32>
    %cst_54 = arith.constant dense<0.000000e+00> : vector<2xf32>
    %75 = vector.multi_reduction <add>, %74, %cst_54 [1] : vector<2x32xf32> to vector<2xf32>
    %76 = vector.shape_cast %75 : vector<2xf32> to vector<2x1xf32>
    %c0_55 = arith.constant 0 : index
    %c0_56 = arith.constant 0 : index
    %77 = vector.load %arg20[%c0_55, %c0_56] : memref<1x1xf32, #tpu.memory_space<vmem>>, vector<1x1xf32>
    %78 = vector.broadcast %77 : vector<1x1xf32> to vector<2x1xf32>
    %79 = arith.addf %76, %78 : vector<2x1xf32>
    %c0_57 = arith.constant 0 : index
    %c0_58 = arith.constant 0 : index
    %80 = vector.load %arg19[%c0_57, %c0_58] : memref<1x32xf32, #tpu.memory_space<vmem>>, vector<1x32xf32>
    %81 = vector.broadcast %80 : vector<1x32xf32> to vector<2x32xf32>
    %82 = arith.mulf %71, %81 : vector<2x32xf32>
    %cst_59 = arith.constant dense<0.000000e+00> : vector<2xf32>
    %83 = vector.multi_reduction <add>, %82, %cst_59 [1] : vector<2x32xf32> to vector<2xf32>
    %84 = vector.shape_cast %83 : vector<2xf32> to vector<2x1xf32>
    %c0_60 = arith.constant 0 : index
    %c0_61 = arith.constant 0 : index
    %85 = vector.load %arg20[%c0_60, %c0_61] : memref<1x1xf32, #tpu.memory_space<vmem>>, vector<1x1xf32>
    %86 = vector.broadcast %85 : vector<1x1xf32> to vector<2x1xf32>
    %87 = arith.addf %84, %86 : vector<2x1xf32>
    %88 = arith.maximumf %79, %87 : vector<2x1xf32>
    %89 = arith.subf %79, %88 : vector<2x1xf32>
    %90 = math.exp %89 : vector<2x1xf32>
    %91 = arith.subf %87, %88 : vector<2x1xf32>
    %92 = math.exp %91 : vector<2x1xf32>
    %93 = arith.addf %90, %92 : vector<2x1xf32>
    %94 = tpu.reciprocal %93 {approx = true} : vector<2x1xf32> -> vector<2x1xf32>
    %95 = arith.mulf %90, %94 : vector<2x1xf32>
    %96 = vector.broadcast %95 : vector<2x1xf32> to vector<2x32xf32>
    %97 = arith.mulf %69, %96 : vector<2x32xf32>
    %98 = arith.mulf %92, %94 : vector<2x1xf32>
    %99 = vector.broadcast %98 : vector<2x1xf32> to vector<2x32xf32>
    %100 = arith.mulf %71, %99 : vector<2x32xf32>
    %101 = arith.addf %97, %100 : vector<2x32xf32>
    %c0_62 = arith.constant 0 : index
    %c0_63 = arith.constant 0 : index
    %102 = vector.load %arg29[%c0_62, %c0_63] : memref<2x32xf32, #tpu.memory_space<vmem>>, vector<2x32xf32>
    tpu.vector_store %arg29[%c0_62, %c0_63], %101 {strides = array<i32>} : memref<2x32xf32, #tpu.memory_space<vmem>>, vector<2x32xf32>,
    %c0_64 = arith.constant 0 : index
    %c0_65 = arith.constant 0 : index
    %103 = vector.load %arg2[%c0_64, %c0_65] : memref<2x32xf32, #tpu.memory_space<vmem>>, vector<2x32xf32>
    %104 = arith.subf %103, %101 : vector<2x32xf32>
    %c0_66 = arith.constant 0 : index
    %c0_67 = arith.constant 0 : index
    %105 = vector.load %arg21[%c0_66, %c0_67] : memref<32x32xf32, #tpu.memory_space<vmem>>, vector<32x32xf32>
    %cst_68 = arith.constant dense<0.000000e+00> : vector<2x32xf32>
    %106 = tpu.matmul %104, %105, %cst_68 {dimension_numbers = #tpu.dot_dimension_numbers<[1], [0], [0], [1], [0, 0, 1, 1], [], []>} : vector<2x32xf32>, vector<32x32xf32>, vector<2x32xf32> -> vector<2x32xf32>
    %c0_69 = arith.constant 0 : index
    %c0_70 = arith.constant 0 : index
    %107 = vector.load %arg22[%c0_69, %c0_70] : memref<1x32xf32, #tpu.memory_space<vmem>>, vector<1x32xf32>
    %108 = vector.broadcast %107 : vector<1x32xf32> to vector<2x32xf32>
    %109 = arith.addf %106, %108 : vector<2x32xf32>
    %cst_71 = arith.constant 0.000000e+00 : f32
    %110 = vector.broadcast %cst_71 : f32 to vector<2x32xf32>
    %111 = arith.maximumf %109, %110 : vector<2x32xf32>
    %c0_72 = arith.constant 0 : index
    %c0_73 = arith.constant 0 : index
    %112 = vector.load %arg28[%c0_72, %c0_73] : memref<2x32xf32, #tpu.memory_space<vmem>>, vector<2x32xf32>
    tpu.vector_store %arg28[%c0_72, %c0_73], %111 {strides = array<i32>} : memref<2x32xf32, #tpu.memory_space<vmem>>, vector<2x32xf32>,
    %c0_74 = arith.constant 0 : index
    %c0_75 = arith.constant 0 : index
    %113 = vector.load %arg23[%c0_74, %c0_75] : memref<32x10xf32, #tpu.memory_space<vmem>>, vector<32x10xf32>
    %cst_76 = arith.constant dense<0.000000e+00> : vector<2x10xf32>
    %114 = tpu.matmul %111, %113, %cst_76 {dimension_numbers = #tpu.dot_dimension_numbers<[1], [0], [0], [1], [0, 0, 1, 1], [], []>} : vector<2x32xf32>, vector<32x10xf32>, vector<2x10xf32> -> vector<2x10xf32>
    %c0_77 = arith.constant 0 : index
    %c0_78 = arith.constant 0 : index
    %115 = vector.load %arg24[%c0_77, %c0_78] : memref<1x10xf32, #tpu.memory_space<vmem>>, vector<1x10xf32>
    %116 = vector.broadcast %115 : vector<1x10xf32> to vector<2x10xf32>
    %117 = arith.addf %114, %116 : vector<2x10xf32>
    %c0_79 = arith.constant 0 : index
    %c0_80 = arith.constant 0 : index
    %118 = vector.load %arg27[%c0_79, %c0_80] : memref<2x10xf32, #tpu.memory_space<vmem>>, vector<2x10xf32>
    tpu.vector_store %arg27[%c0_79, %c0_80], %117 {strides = array<i32>} : memref<2x10xf32, #tpu.memory_space<vmem>>, vector<2x10xf32>,
    return
  }
}

</mosaic_0001>

<bundles_post_ra>
// kernel: model_forward.5
= control target key start
LH: loop header
LB: loop body
LE: loop exit
PB: predicated region body
PF: predicated region fallthrough
CT: control target
= control target key end

     0   :  { %vm28_vm0 = vcmask 523264   ;;  %vm60_vm1 = vcmask 261120   ;;  %vm62_vm2 = vcmask 257024   ;;  %s138_s1 = inlined_call_operand.vmem [shape: f32[64,32], index: 1, kind: input, shape index: {}]   ;;  %s139_s2 = inlined_call_operand.vmem [shape: f32[1,32], index: 2, kind: input, shape index: {}]   ;;  %s140_s0 = inlined_call_operand.vmem [shape: f32[12,64], index: 0, kind: input, shape index: {}]   ;;  %s141_s3 = inlined_call_operand.vmem [shape: f32[12,32], index: 3, kind: output, shape index: {}]  }
   0x1   :  { %v23_v0 = vld [vmem:[%s138_s1 + $0x38] sm:$0xff]  ;;  %v22_v1 = vld [vmem:[%s138_s1 + $0x30] sm:$0xff]  ;;  %v21_v2 = vld [vmem:[%s138_s1 + $0x28] sm:$0xff] }
   0x2   :  { %43 = vmatpush.msra.mxu0 %v23_v0  ;;  %70 = vmatpush.msra.mxu1 %v23_v0  ;;  %v20_v3 = vld [vmem:[%s138_s1 + $0x20] sm:$0xff]  ;;  %v19_v4 = vld [vmem:[%s138_s1 + $0x18] sm:$0xff]  ;;  %v18_v5 = vld [vmem:[%s138_s1 + $0x10] sm:$0xff] }
   0x3   :  { %v17_v6 = vld [vmem:[%s138_s1 + $0x8] sm:$0xff]  ;;  %v16_v7 = vld [vmem:[%s138_s1] sm:$0xff] }
   0x4   :  { %44 = vmatpush.msra.mxu0 %v22_v1  ;;  %71 = vmatpush.msra.mxu1 %v22_v1  ;;  %v14_v8 = vld [vmem:[%s140_s0] sm:$0xff]  ;;  %v15_v9 = vld [vmem:[%s140_s0 + $0x8] sm:$0xf] }
   0x5   :  { %v78_v10 = vld [vmem:[%s139_s2] ss:$0 sm:$0xff] }
   0x6   :  { %45 = vmatpush.msra.mxu0 %v21_v2  ;;  %72 = vmatpush.msra.mxu1 %v21_v2 }
   0x8   :  { %46 = vmatpush.msra.mxu0 %v20_v3  ;;  %73 = vmatpush.msra.mxu1 %v20_v3 }
   0xa   :  { %47 = vmatpush.msra.mxu0 %v19_v4  ;;  %74 = vmatpush.msra.mxu1 %v19_v4 }
   0xc   :  { %48 = vmatpush.msra.mxu0 %v18_v5  ;;  %75 = vmatpush.msra.mxu1 %v18_v5 }
   0xe   :  { %49 = vmatpush.msra.mxu0 %v17_v6  ;;  %76 = vmatpush.msra.mxu1 %v17_v6 }
  0x10   :  { %50 = vmatpush.msra.mxu0 %v16_v7  ;;  %77 = vmatpush.msra.mxu1 %v16_v7 }
  0x11   :  { %68 = vmatmul.msk.f32.vlgmr.msra.gmra.mxu0 %vm28_vm0, %v14_v8  ;;  %69 = vmatmul.msk.f32.vlgmr.msra.gmra.mxu1 %vm28_vm0, %v15_v9 }
  0x8e   :  { %v52_v11 = vpop.f32.mrf.mxu0  ;;  %v55_v12 = vpop.f32.mrf.mxu1 }
  0x8f   :  { %v53_v13 = vadd.f32 %v78_v10, %v52_v11  ;;  %v56_v14 = vadd.f32 %v78_v10, %v55_v12 }
  0x91   :  { %v58_v15 = vmax.f32 %v53_v13, 0.0  ;;  %v59_v16 = vmax.f32 %v56_v14, 0.0 }
  0x93   :  { %61 = vst.msk [vmem:[%s141_s3] sm:$0xff] %vm60_vm1, %v58_v15 }
  0x94   :  { %63 = vst.msk [vmem:[%s141_s3 + $0x8] sm:$0xf] %vm62_vm2, %v59_v16 }

// kernel: model_forward.4
= control target key start
LH: loop header
LB: loop body
LE: loop exit
PB: predicated region body
PF: predicated region fallthrough
CT: control target
= control target key end

     0   :  { %vm80_vm0 = vcmask 1043456   ;;  %vm73_vm1 = vcmask 359424   ;;  %v842_v33 = vmov 0.0   ;;  %s843_s21 = smov 64   ;;  %vm157_vm6 = vcmask 261120   ;;  %s1152_s1 = inlined_call_operand.vmem [shape: f32[300,128], index: 1, kind: input, shape index: {}]   ;;  %s1153_s2 = inlined_call_operand.vmem [shape: f32[32,128], index: 2, kind: input, shape index: {}]   ;;  %s1154_s0 = inlined_call_operand.vmem [shape: f32[16,300], index: 0, kind: input, shape index: {}]   ;;  %s1155_s3 = inlined_call_operand.vmem [shape: f32[1,128], index: 3, kind: input, shape index: {}]   ;;  %s1156_s5 = inlined_call_operand.vmem [shape: f32[1,32], index: 5, kind: input, shape index: {}]   ;;  %s1157_s4 = inlined_call_operand.vmem [shape: f32[32,32], index: 4, kind: input, shape index: {}]   ;;  %s1158_s6 = inlined_call_operand.vmem [shape: f32[2,32], index: 6, kind: output, shape index: {0}]   ;;  %s1159_s7 = inlined_call_operand.vmem [shape: f32[2,32], index: 7, kind: output, shape index: {1}]  }
   0x1   :  { %v46_v0 = vld [vmem:[%s1152_s1 + $0x78] sm:$0xff]  ;;  %v45_v1 = vld [vmem:[%s1152_s1 + $0x70] sm:$0xff]  ;;  %v44_v4 = vld [vmem:[%s1152_s1 + $0x68] sm:$0xff] }
   0x2   :  { %v62_v2 = vld [vmem:[%s1152_s1 + $0xf8] sm:$0xff]  ;;  %84 = vmatpush.msra.mxu0 %v46_v0  ;;  %v61_v3 = vld [vmem:[%s1152_s1 + $0xf0] sm:$0xff]  ;;  %v60_v5 = vld [vmem:[%s1152_s1 + $0xe8] sm:$0xff] }
   0x3   :  { %107 = vmatpush.msra.mxu1 %v62_v2  ;;  %v43_v6 = vld [vmem:[%s1152_s1 + $0x60] sm:$0xff]  ;;  %v42_v8 = vld [vmem:[%s1152_s1 + $0x58] sm:$0xff]  ;;  %v68_v10 = vld [vmem:[%s1152_s1 + $0x128] sm:$0xf] }
   0x4   :  { %85 = vmatpush.msra.mxu0 %v45_v1  ;;  %v59_v7 = vld [vmem:[%s1152_s1 + $0xe0] sm:$0xff]  ;;  %v58_v9 = vld [vmem:[%s1152_s1 + $0xd8] sm:$0xff]  ;;  %v41_v12 = vld [vmem:[%s1152_s1 + $0x50] sm:$0xff]  ;;  %754 = vmatpush.msk.msra.mxu2 %vm80_vm0, %v68_v10 }
   0x5   :  { %108 = vmatpush.msra.mxu1 %v61_v3  ;;  %v67_v11 = vld [vmem:[%s1152_s1 + $0x120] sm:$0xff]  ;;  %v57_v13 = vld [vmem:[%s1152_s1 + $0xd0] sm:$0xff]  ;;  %v66_v14 = vld [vmem:[%s1152_s1 + $0x118] sm:$0xff] }
   0x6   :  { %86 = vmatpush.msra.mxu0 %v44_v4  ;;  %v933_v15 = vld [vmem:[%s1153_s2 + $0x18] sm:$0xff]  ;;  %v40_v16 = vld [vmem:[%s1152_s1 + $0x48] sm:$0xff]  ;;  %141 = vmatpush.msra.mxu2 %v67_v11  ;;  %v65_v18 = vld [vmem:[%s1152_s1 + $0x110] sm:$0xff] }
   0x7   :  { %109 = vmatpush.msra.mxu1 %v60_v5  ;;  %v56_v17 = vld [vmem:[%s1152_s1 + $0xc8] sm:$0xff]  ;;  %173 = vmatpush.msra.mxu3 %v933_v15  ;;  %v948_v19 = vld [vmem:[%s1153_s2 + $0x10] sm:$0xff]  ;;  %v39_v20 = vld [vmem:[%s1152_s1 + $0x40] sm:$0xff] }
   0x8   :  { %87 = vmatpush.msra.mxu0 %v43_v6  ;;  %v55_v21 = vld [vmem:[%s1152_s1 + $0xc0] sm:$0xff]  ;;  %142 = vmatpush.msra.mxu2 %v66_v14  ;;  %v960_v22 = vld [vmem:[%s1153_s2 + $0x8] sm:$0xff]  ;;  %v38_v25 = vld [vmem:[%s1152_s1 + $0x38] sm:$0xff] }
   0x9   :  { %110 = vmatpush.msra.mxu1 %v59_v7  ;;  %174 = vmatpush.msra.mxu3 %v948_v19  ;;  %v64_v23 = vld [vmem:[%s1152_s1 + $0x108] sm:$0xff]  ;;  %v968_v24 = vld [vmem:[%s1153_s2] sm:$0xff]  ;;  %v54_v26 = vld [vmem:[%s1152_s1 + $0xb8] sm:$0xff] }
   0xa   :  { %88 = vmatpush.msra.mxu0 %v42_v8  ;;  %143 = vmatpush.msra.mxu2 %v65_v18  ;;  %v63_v27 = vld [vmem:[%s1152_s1 + $0x100] sm:$0xff]  ;;  %v37_v28 = vld [vmem:[%s1152_s1 + $0x30] sm:$0xff]  ;;  %v36_v31 = vld [vmem:[%s1152_s1 + $0x28] sm:$0xff] }
   0xb   :  { %111 = vmatpush.msra.mxu1 %v58_v9  ;;  %175 = vmatpush.msra.mxu3 %v960_v22  ;;  %v53_v29 = vld [vmem:[%s1152_s1 + $0xb0] sm:$0xff]  ;;  %v52_v32 = vld [vmem:[%s1152_s1 + $0xa8] sm:$0xff]  ;;  %v35_v34 = vld [vmem:[%s1152_s1 + $0x20] sm:$0xff] }
   0xc   :  { %89 = vmatpush.msra.mxu0 %v41_v12  ;;  %144 = vmatpush.msra.mxu2 %v64_v23  ;;  %v27_v30 = vld [vmem:[%s1154_s0 + $0x10] sm:$0xff]  ;;  %v51_v35 = vld [vmem:[%s1152_s1 + $0xa0] sm:$0xff]  ;;  %v34_v36 = vld [vmem:[%s1152_s1 + $0x18] sm:$0xff] }
   0xd   :  { %112 = vmatpush.msra.mxu1 %v57_v13  ;;  %176 = vmatpush.msra.mxu3 %v968_v24  ;;  %v50_v37 = vld [vmem:[%s1152_s1 + $0x98] sm:$0xff]  ;;  %v33_v38 = vld [vmem:[%s1152_s1 + $0x10] sm:$0xff]  ;;  %v32_v40 = vld [vmem:[%s1152_s1 + $0x8] sm:$0xff] }
   0xe   :  { %90 = vmatpush.msra.mxu0 %v40_v16  ;;  %145 = vmatpush.msra.mxu2 %v63_v27  ;;  %v49_v39 = vld [vmem:[%s1152_s1 + $0x90] sm:$0xff]  ;;  %v48_v41 = vld [vmem:[%s1152_s1 + $0x88] sm:$0xff]  ;;  %v31_v42 = vld [vmem:[%s1152_s1] sm:$0xff] }
   0xf   :  { %113 = vmatpush.msra.mxu1 %v56_v17  ;;  %177 = vmatmul.f32.vlgmr.msra.gmra.mxu3 %v842_v33  ;;  %v47_v43 = vld [vmem:[%s1152_s1 + $0x80] sm:$0xff]  ;;  %v26_v45 = vld [vmem:[%s1154_s0 + $0x8] sm:$0xff] }
  0x10   :  { %91 = vmatpush.msra.mxu0 %v39_v20  ;;  %755 = vmatmul.msk.f32.vlgmr.msra.gmra.mxu2 %vm73_vm1, %v27_v30  ;;  %v25_v44 = vld [vmem:[%s1154_s0] sm:$0xff] }
  0x11   :  { %114 = vmatpush.msra.mxu1 %v55_v21  ;;  %236 = vmatpush.msrb.mxu3 %v933_v15  ;;  %v1052_v46 = vld [vmem:[%s1155_s3] ss:$0 sm:$0xff]  ;;  %s844_s3 = smov 32  }
  0x12   :  { %92 = vmatpush.msra.mxu0 %v38_v25  ;;  %376 = vmatpush.msrb.mxu2 %v933_v15 }
  0x13   :  { %115 = vmatpush.msra.mxu1 %v54_v26  ;;  %237 = vmatpush.msrb.mxu3 %v948_v19 }
  0x14   :  { %93 = vmatpush.msra.mxu0 %v37_v28  ;;  %377 = vmatpush.msrb.mxu2 %v948_v19 }
  0x15   :  { %116 = vmatpush.msra.mxu1 %v53_v29  ;;  %238 = vmatpush.msrb.mxu3 %v960_v22 }
  0x16   :  { %94 = vmatpush.msra.mxu0 %v36_v31  ;;  %378 = vmatpush.msrb.mxu2 %v960_v22 }
  0x17   :  { %117 = vmatpush.msra.mxu1 %v52_v32  ;;  %239 = vmatpush.msrb.mxu3 %v968_v24 }
  0x18   :  { %95 = vmatpush.msra.mxu0 %v35_v34  ;;  %379 = vmatpush.msrb.mxu2 %v968_v24 }
  0x19   :  { %118 = vmatpush.msra.mxu1 %v51_v35  ;;  %306 = vmatpush.msra.mxu3 %v933_v15 }
  0x1a   :  { %96 = vmatpush.msra.mxu0 %v34_v36  ;;  %512 = vmatpush.msra.mxu2 %v933_v15 }
  0x1b   :  { %119 = vmatpush.msra.mxu1 %v50_v37  ;;  %307 = vmatpush.msra.mxu3 %v948_v19 }
  0x1c   :  { %97 = vmatpush.msra.mxu0 %v33_v38  ;;  %513 = vmatpush.msra.mxu2 %v948_v19 }
  0x1d   :  { %120 = vmatpush.msra.mxu1 %v49_v39  ;;  %308 = vmatpush.msra.mxu3 %v960_v22 }
  0x1e   :  { %98 = vmatpush.msra.mxu0 %v32_v40  ;;  %514 = vmatpush.msra.mxu2 %v960_v22 }
  0x1f   :  { %121 = vmatpush.msra.mxu1 %v48_v41  ;;  %309 = vmatpush.msra.mxu3 %v968_v24 }
  0x20   :  { %99 = vmatpush.msra.mxu0 %v31_v42  ;;  %515 = vmatpush.msra.mxu2 %v968_v24 }
  0x21   :  { %122 = vmatpush.msra.mxu1 %v47_v43  ;;  %100 = vmatmul.f32.vlgmr.msra.gmra.mxu0 %v25_v44 }
  0x22   :  { %123 = vmatmul.f32.vlgmr.msra.gmra.mxu1 %v26_v45 }
  0x92   :  { %v178_v52 = vpop.f32.mrf.mxu3 }
  0x93   :  { %v147_v50 = vpop.f32.mrf.mxu2 }
  0x9e   :  { %v101_v47 = vpop.f32.mrf.mxu0 }
  0x9f   :  { %v124_v48 = vpop.f32.mrf.mxu1  ;;  %v102_v49 = vadd.f32 %v1052_v46, %v101_v47 }
  0xa1   :  { %v125_v51 = vadd.f32 %v124_v48, %v102_v49 }
  0xa3   :  { %v1055_v53 = vadd.f32 %v147_v50, %v125_v51 }
  0xa5   :  { %v181_v54 = vadd.f32 %v178_v52, %v1055_v53 }
  0xa7   :  { %778 = vtanh.f32 %v181_v54  ;;  %v757_v56 = vmul.f32 -1.442695, %v181_v54 }
  0xa9   :  { %780 = vpow2.f32 %v757_v56 }
  0xad   :  { %v779_v55 = vpop.eup %778 }
  0xae   :  { %204 = vrot.lane.b32.xlu0 %v779_v55, %s843_s21 }
  0xaf   :  { %v781_v57 = vpop.eup %780 }
  0xb0   :  { %v185_v58 = vadd.f32 1.0, %v781_v57 }
  0xb2   :  { %782 = vrcp.f32 %v185_v58  ;;  %v197_v0 = vand.u32 2147483648, %v185_v58  ;;  %vm191_vm3 = vweird.f32 %v185_v58  ;;  %v195_v1 = vand.u32 2147483647, %v185_v58 }
  0xb4   :  { %v198_v3 = vor.u32 1.1754944e-38, %v197_v0  ;;  %vm196_vm5 = vcmp.eq.f32.partialorder %v195_v1, 8.507059e+37 }
  0xb8   :  { %v783_v59 = vpop.eup %782 }
  0xb9   :  { %v187_v60 = vmul.f32 %v783_v59, %v185_v58  ;;  %vm192_vm2 = vweird.f32 %v783_v59 }
  0xba   :  { %vm193_vm4 = vmor %vm191_vm3, %vm192_vm2 }
  0xbb   :  { %v188_v61 = vsub.f32 1.0, %v187_v60 }
  0xbd   :  { %v189_v62 = vmul.f32 %v783_v59, %v188_v61 }
  0xbf   :  { %v190_v63 = vadd.f32 %v783_v59, %v189_v62 }
  0xc1   :  { %v194_v2 = vsel %vm193_vm4, %v783_v59, %v190_v63 }
  0xc2   :  { %v199_v5 = vsel %vm196_vm5, %v198_v3, %v194_v2 }
  0xc3   :  { %v202_v7 = vmul.f32 0.0, %v199_v5 }
 0x120   :  { %v205_v4 = vpop.permute.xlu0 %204 }
 0x121   :  { %v207_v6 = vmul.f32 %v205_v4, %v199_v5 }
 0x123   :  { %209 = vrot.lane.b32.xlu0 %v207_v6, %s844_s3 }
 0x195   :  { %v210_v8 = vpop.permute.xlu0 %209 }
 0x196   :  { %v212_v9 = vadd.f32 %v210_v8, %v202_v7  ;;  %v30_v8 = vld [vmem:[%s1154_s0 + $0x28] sm:$0xff] }
 0x197   :  { %756 = vmatmul.msk.f32.gmra.mxu2 %vm73_vm1, %v30_v8 }
 0x198   :  { %784 = vtanh.f32 %v212_v9  ;;  %v269_v37 = vrot.slane %v212_v9, 6  ;;  %v28_v9 = vld [vmem:[%s1154_s0 + $0x18] sm:$0xff] }
 0x199   :  { %103 = vmatmul.f32.gmra.mxu0 %v28_v9 }
 0x19e   :  { %v785_v10 = vpop.eup %784 }
 0x19f   :  { %215 = vrot.lane.b32.xlu1 %v785_v10, %s843_s21  ;;  %v29_v10 = vld [vmem:[%s1154_s0 + $0x20] sm:$0xff] }
 0x1a0   :  { %126 = vmatmul.f32.gmra.mxu1 %v29_v10 }
 0x211   :  { %v216_v11 = vpop.permute.xlu1 %215 }
 0x212   :  { %v218_v12 = vmul.f32 %v216_v11, %v199_v5 }
 0x214   :  { %220 = vrot.lane.b32.xlu1 %v218_v12, %s844_s3 }
 0x286   :  { %v221_v13 = vpop.permute.xlu1 %220 }
 0x287   :  { %758 = vmatmul.msk.f32.vlgmr.msrb.gmra.mxu3 %vm157_vm6, %v221_v13 }
 0x288   :  { %446 = vmatpush.msrb.mxu3 %v933_v15 }
 0x28a   :  { %447 = vmatpush.msrb.mxu3 %v948_v19 }
 0x28c   :  { %448 = vmatpush.msrb.mxu3 %v960_v22 }
 0x28e   :  { %449 = vmatpush.msrb.mxu3 %v968_v24 }
 0x30a   :  { %v241_v14 = vpop.f32.mrf.mxu3 }
 0x30b   :  { %v245_v16 = vrot.slane %v241_v14, 6 }
 0x30d   :  { %v247_v17 = vadd.f32 %v245_v16, %v1055_v53  ;;  %v150_v16 = vpop.f32.mrf.mxu2 }
 0x30f   :  { %786 = vtanh.f32 %v247_v17  ;;  %v759_v20 = vmul.f32 -1.442695, %v247_v17 }
 0x311   :  { %788 = vpow2.f32 %v759_v20 }
 0x315   :  { %v787_v18 = vpop.eup %786 }
 0x316   :  { %273 = vrot.lane.b32.xlu2 %v787_v18, %s843_s21 }
 0x317   :  { %v789_v21 = vpop.eup %788 }
 0x318   :  { %v251_v23 = vadd.f32 1.0, %v789_v21 }
 0x31a   :  { %790 = vrcp.f32 %v251_v23  ;;  %v263_v30 = vand.u32 2147483648, %v251_v23  ;;  %vm257_vm8 = vweird.f32 %v251_v23  ;;  %v261_v31 = vand.u32 2147483647, %v251_v23 }
 0x31c   :  { %v264_v33 = vor.u32 1.1754944e-38, %v263_v30  ;;  %vm262_vm10 = vcmp.eq.f32.partialorder %v261_v31, 8.507059e+37 }
 0x320   :  { %v791_v25 = vpop.eup %790 }
 0x321   :  { %v253_v26 = vmul.f32 %v791_v25, %v251_v23  ;;  %vm258_vm7 = vweird.f32 %v791_v25 }
 0x322   :  { %vm259_vm9 = vmor %vm257_vm8, %vm258_vm7 }
 0x323   :  { %v254_v27 = vsub.f32 1.0, %v253_v26 }
 0x325   :  { %v255_v28 = vmul.f32 %v791_v25, %v254_v27 }
 0x327   :  { %v256_v29 = vadd.f32 %v791_v25, %v255_v28 }
 0x329   :  { %v260_v32 = vsel %vm259_vm9, %v791_v25, %v256_v29 }
 0x32a   :  { %v265_v35 = vsel %vm262_vm10, %v264_v33, %v260_v32 }
 0x32b   :  { %v271_v38 = vmul.f32 %v269_v37, %v265_v35 }
 0x370   :  { %v274_v34 = vpop.permute.xlu2 %273 }
 0x371   :  { %v276_v36 = vmul.f32 %v274_v34, %v265_v35 }
 0x373   :  { %278 = vrot.lane.b32.xlu2 %v276_v36, %s844_s3 }
 0x3cd   :  { %v279_v39 = vpop.permute.xlu2 %278 }
 0x3ce   :  { %v281_v40 = vadd.f32 %v279_v39, %v271_v38 }
 0x3d0   :  { %792 = vtanh.f32 %v281_v40  ;;  %v339_v3 = vrot.slane %v281_v40, 6 }
 0x3d6   :  { %v793_v41 = vpop.eup %792 }
 0x3d7   :  { %284 = vrot.lane.b32.xlu0 %v793_v41, %s843_s21 }
 0x449   :  { %v285_v42 = vpop.permute.xlu0 %284 }
 0x44a   :  { %v287_v43 = vmul.f32 %v285_v42, %v265_v35 }
 0x44c   :  { %v289_v44 = vrot.slane %v287_v43, 2  ;;  %v104_v43 = vpop.f32.mrf.mxu0 }
 0x44e   :  { %290 = vrot.lane.b32.xlu1 %v289_v44, %s844_s3  ;;  %v105_v44 = vadd.f32 %v1052_v46, %v104_v43 }
 0x4c0   :  { %v291_v45 = vpop.permute.xlu1 %290 }
 0x4c1   :  { %760 = vmatmul.msk.f32.vlgmr.msra.gmra.mxu3 %vm157_vm6, %v291_v45  ;;  %v127_v45 = vpop.f32.mrf.mxu1 }
 0x4c2   :  { %582 = vmatpush.msra.mxu3 %v933_v15 }
 0x4c4   :  { %583 = vmatpush.msra.mxu3 %v948_v19 }
 0x4c6   :  { %584 = vmatpush.msra.mxu3 %v960_v22 }
 0x4c8   :  { %585 = vmatpush.msra.mxu3 %v968_v24 }
 0x544   :  { %v311_v47 = vpop.f32.mrf.mxu3 }
 0x545   :  { %v315_v48 = vrot.slane %v311_v47, 4  ;;  %v128_v47 = vadd.f32 %v127_v45, %v105_v44 }
 0x547   :  { %v317_v49 = vadd.f32 %v315_v48, %v1055_v53  ;;  %v1104_v48 = vadd.f32 %v150_v16, %v128_v47 }
 0x549   :  { %794 = vtanh.f32 %v317_v49  ;;  %v761_v51 = vmul.f32 -1.442695, %v317_v49 }
 0x54b   :  { %796 = vpow2.f32 %v761_v51 }
 0x54f   :  { %v795_v50 = vpop.eup %794 }
 0x550   :  { %343 = vrot.lane.b32.xlu2 %v795_v50, %s843_s21 }
 0x551   :  { %v797_v52 = vpop.eup %796 }
 0x552   :  { %v321_v54 = vadd.f32 1.0, %v797_v52 }
 0x554   :  { %798 = vrcp.f32 %v321_v54  ;;  %v333_v60 = vand.u32 2147483648, %v321_v54  ;;  %vm327_vm12 = vweird.f32 %v321_v54  ;;  %v331_v61 = vand.u32 2147483647, %v321_v54 }
 0x556   :  { %v334_v63 = vor.u32 1.1754944e-38, %v333_v60  ;;  %vm332_vm14 = vcmp.eq.f32.partialorder %v331_v61, 8.507059e+37 }
 0x55a   :  { %v799_v55 = vpop.eup %798 }
 0x55b   :  { %v323_v56 = vmul.f32 %v799_v55, %v321_v54  ;;  %vm328_vm11 = vweird.f32 %v799_v55 }
 0x55c   :  { %vm329_vm13 = vmor %vm327_vm12, %vm328_vm11 }
 0x55d   :  { %v324_v57 = vsub.f32 1.0, %v323_v56 }
 0x55f   :  { %v325_v58 = vmul.f32 %v799_v55, %v324_v57 }
 0x561   :  { %v326_v59 = vadd.f32 %v799_v55, %v325_v58 }
 0x563   :  { %v330_v62 = vsel %vm329_vm13, %v799_v55, %v326_v59 }
 0x564   :  { %v335_v1 = vsel %vm332_vm14, %v334_v63, %v330_v62 }
 0x565   :  { %v341_v4 = vmul.f32 %v339_v3, %v335_v1 }
 0x5aa   :  { %v344_v0 = vpop.permute.xlu2 %343 }
 0x5ab   :  { %v346_v2 = vmul.f32 %v344_v0, %v335_v1 }
 0x5ad   :  { %348 = vrot.lane.b32.xlu0 %v346_v2, %s844_s3 }
 0x61f   :  { %v349_v5 = vpop.permute.xlu0 %348 }
 0x620   :  { %v351_v6 = vadd.f32 %v349_v5, %v341_v4 }
 0x622   :  { %800 = vtanh.f32 %v351_v6  ;;  %v409_v34 = vrot.slane %v351_v6, 6 }
 0x628   :  { %v801_v7 = vpop.eup %800 }
 0x629   :  { %354 = vrot.lane.b32.xlu1 %v801_v7, %s843_s21 }
 0x69b   :  { %v355_v11 = vpop.permute.xlu1 %354 }
 0x69c   :  { %v357_v12 = vmul.f32 %v355_v11, %v335_v1 }
 0x69e   :  { %v359_v13 = vrot.slane %v357_v12, 4 }
 0x6a0   :  { %360 = vrot.lane.b32.xlu2 %v359_v13, %s844_s3 }
 0x6fa   :  { %v361_v14 = vpop.permute.xlu2 %360 }
 0x6fb   :  { %762 = vmatmul.msk.f32.vlgmr.msrb.gmra.mxu2 %vm157_vm6, %v361_v14 }
 0x6fc   :  { %652 = vmatpush.msrb.mxu2 %v933_v15 }
 0x6fe   :  { %653 = vmatpush.msrb.mxu2 %v948_v19 }
 0x700   :  { %654 = vmatpush.msrb.mxu2 %v960_v22 }
 0x702   :  { %655 = vmatpush.msrb.mxu2 %v968_v24 }
 0x77e   :  { %v381_v17 = vpop.f32.mrf.mxu2 }
 0x77f   :  { %v385_v18 = vrot.slane %v381_v17, 2 }
 0x781   :  { %v387_v20 = vadd.f32 %v385_v18, %v1055_v53 }
 0x783   :  { %802 = vtanh.f32 %v387_v20  ;;  %v763_v23 = vmul.f32 -1.442695, %v387_v20 }
 0x785   :  { %804 = vpow2.f32 %v763_v23 }
 0x789   :  { %v803_v21 = vpop.eup %802 }
 0x78a   :  { %413 = vrot.lane.b32.xlu0 %v803_v21, %s843_s21 }
 0x78b   :  { %v805_v25 = vpop.eup %804 }
 0x78c   :  { %v391_v26 = vadd.f32 1.0, %v805_v25 }
 0x78e   :  { %806 = vrcp.f32 %v391_v26  ;;  %v403_v24 = vand.u32 2147483648, %v391_v26  ;;  %vm397_vm0 = vweird.f32 %v391_v26  ;;  %v401_v29 = vand.u32 2147483647, %v391_v26 }
 0x790   :  { %v404_v30 = vor.u32 1.1754944e-38, %v403_v24  ;;  %vm402_vm2 = vcmp.eq.f32.partialorder %v401_v29, 8.507059e+37 }
 0x794   :  { %v807_v15 = vpop.eup %806 }
 0x795   :  { %v393_v19 = vmul.f32 %v807_v15, %v391_v26  ;;  %vm398_vm15 = vweird.f32 %v807_v15 }
 0x796   :  { %vm399_vm1 = vmor %vm397_vm0, %vm398_vm15 }
 0x797   :  { %v394_v27 = vsub.f32 1.0, %v393_v19 }
 0x799   :  { %v395_v22 = vmul.f32 %v807_v15, %v394_v27 }
 0x79b   :  { %v396_v28 = vadd.f32 %v807_v15, %v395_v22 }
 0x79d   :  { %v400_v53 = vsel %vm399_vm1, %v807_v15, %v396_v28 }
 0x79e   :  { %v405_v32 = vsel %vm402_vm2, %v404_v30, %v400_v53 }
 0x79f   :  { %v411_v35 = vmul.f32 %v409_v34, %v405_v32 }
 0x7fc   :  { %v414_v31 = vpop.permute.xlu0 %413 }
 0x7fd   :  { %v416_v33 = vmul.f32 %v414_v31, %v405_v32 }
 0x7ff   :  { %418 = vrot.lane.b32.xlu1 %v416_v33, %s844_s3 }
 0x871   :  { %v419_v36 = vpop.permute.xlu1 %418 }
 0x872   :  { %v421_v37 = vadd.f32 %v419_v36, %v411_v35 }
 0x874   :  { %808 = vtanh.f32 %v421_v37  ;;  %v476_v3 = vrot.slane %v421_v37, 6 }
 0x87a   :  { %v809_v38 = vpop.eup %808 }
 0x87b   :  { %424 = vrot.lane.b32.xlu2 %v809_v38, %s843_s21 }
 0x8d5   :  { %v425_v39 = vpop.permute.xlu2 %424 }
 0x8d6   :  { %v427_v40 = vmul.f32 %v425_v39, %v405_v32 }
 0x8d8   :  { %v429_v41 = vrot.slane %v427_v40, 6 }
 0x8da   :  { %430 = vrot.lane.b32.xlu0 %v429_v41, %s844_s3 }
 0x94c   :  { %v431_v42 = vpop.permute.xlu0 %430 }
 0x94d   :  { %764 = vmatmul.msk.f32.vlgmr.msrb.gmra.mxu3 %vm157_vm6, %v431_v42 }
 0x9d0   :  { %v451_v49 = vpop.f32.mrf.mxu3 }
 0x9d1   :  { %v454_v50 = vadd.f32 %v451_v49, %v1104_v48 }
 0x9d3   :  { %810 = vtanh.f32 %v454_v50  ;;  %v765_v52 = vmul.f32 -1.442695, %v454_v50 }
 0x9d5   :  { %812 = vpow2.f32 %v765_v52 }
 0x9d9   :  { %v811_v51 = vpop.eup %810 }
 0x9da   :  { %480 = vrot.lane.b32.xlu1 %v811_v51, %s843_s21 }
 0x9db   :  { %v813_v54 = vpop.eup %812 }
 0x9dc   :  { %v458_v55 = vadd.f32 1.0, %v813_v54 }
 0x9de   :  { %814 = vrcp.f32 %v458_v55  ;;  %v470_v60 = vand.u32 2147483648, %v458_v55  ;;  %vm464_vm4 = vweird.f32 %v458_v55  ;;  %v468_v61 = vand.u32 2147483647, %v458_v55 }
 0x9e0   :  { %v471_v63 = vor.u32 1.1754944e-38, %v470_v60  ;;  %vm469_vm7 = vcmp.eq.f32.partialorder %v468_v61, 8.507059e+37 }
 0x9e4   :  { %v815_v56 = vpop.eup %814 }
 0x9e5   :  { %v460_v57 = vmul.f32 %v815_v56, %v458_v55  ;;  %vm465_vm3 = vweird.f32 %v815_v56 }
 0x9e6   :  { %vm466_vm5 = vmor %vm464_vm4, %vm465_vm3  ;;  %vm708_vm4 = vcmask 261126  }
 0x9e7   :  { %v461_v58 = vsub.f32 1.0, %v460_v57 }
 0x9e9   :  { %v462_v46 = vmul.f32 %v815_v56, %v461_v58 }
 0x9eb   :  { %v463_v59 = vadd.f32 %v815_v56, %v462_v46 }
 0x9ed   :  { %v467_v62 = vsel %vm466_vm5, %v815_v56, %v463_v59  ;;  %vm744_vm5 = vcmask 254976  }
 0x9ee   :  { %v472_v1 = vsel %vm469_vm7, %v471_v63, %v467_v62 }
 0x9ef   :  { %v478_v4 = vmul.f32 %v476_v3, %v472_v1 }
 0xa4c   :  { %v481_v0 = vpop.permute.xlu1 %480 }
 0xa4d   :  { %v483_v2 = vmul.f32 %v481_v0, %v472_v1 }
 0xa4f   :  { %485 = vrot.lane.b32.xlu2 %v483_v2, %s844_s3 }
 0xaa9   :  { %v486_v5 = vpop.permute.xlu2 %485 }
 0xaaa   :  { %v488_v6 = vadd.f32 %v486_v5, %v478_v4 }
 0xaac   :  { %816 = vtanh.f32 %v488_v6  ;;  %v545_v53 = vrot.slane %v488_v6, 6 }
 0xab2   :  { %v817_v7 = vpop.eup %816 }
 0xab3   :  { %491 = vrot.lane.b32.xlu0 %v817_v7, %s843_s21 }
 0xb25   :  { %v492_v8 = vpop.permute.xlu0 %491 }
 0xb26   :  { %v494_v9 = vmul.f32 %v492_v8, %v472_v1 }
 0xb28   :  { %496 = vrot.lane.b32.xlu1 %v494_v9, %s844_s3 }
 0xb9a   :  { %v497_v10 = vpop.permute.xlu1 %496 }
 0xb9b   :  { %766 = vmatmul.msk.f32.vlgmr.msra.gmra.mxu2 %vm157_vm6, %v497_v10 }
 0xc1e   :  { %v517_v11 = vpop.f32.mrf.mxu2 }
 0xc1f   :  { %v521_v12 = vrot.slane %v517_v11, 6 }
 0xc21   :  { %v523_v13 = vadd.f32 %v521_v12, %v1104_v48 }
 0xc23   :  { %818 = vtanh.f32 %v523_v13  ;;  %v767_v16 = vmul.f32 -1.442695, %v523_v13 }
 0xc25   :  { %820 = vpow2.f32 %v767_v16 }
 0xc29   :  { %v819_v14 = vpop.eup %818 }
 0xc2a   :  { %549 = vrot.lane.b32.xlu2 %v819_v14, %s843_s21 }
 0xc2b   :  { %v821_v17 = vpop.eup %820 }
 0xc2c   :  { %v527_v18 = vadd.f32 1.0, %v821_v17 }
 0xc2e   :  { %822 = vrcp.f32 %v527_v18  ;;  %v539_v15 = vand.u32 2147483648, %v527_v18  ;;  %vm533_vm9 = vweird.f32 %v527_v18  ;;  %v537_v19 = vand.u32 2147483647, %v527_v18 }
 0xc30   :  { %v540_v22 = vor.u32 1.1754944e-38, %v539_v15  ;;  %vm538_vm11 = vcmp.eq.f32.partialorder %v537_v19, 8.507059e+37 }
 0xc34   :  { %v823_v20 = vpop.eup %822 }
 0xc35   :  { %v529_v21 = vmul.f32 %v823_v20, %v527_v18  ;;  %vm534_vm8 = vweird.f32 %v823_v20 }
 0xc36   :  { %vm535_vm10 = vmor %vm533_vm9, %vm534_vm8 }
 0xc37   :  { %v530_v23 = vsub.f32 1.0, %v529_v21 }
 0xc39   :  { %v531_v25 = vmul.f32 %v823_v20, %v530_v23 }
 0xc3b   :  { %v532_v26 = vadd.f32 %v823_v20, %v531_v25 }
 0xc3d   :  { %v536_v27 = vsel %vm535_vm10, %v823_v20, %v532_v26 }
 0xc3e   :  { %v541_v24 = vsel %vm538_vm11, %v540_v22, %v536_v27 }
 0xc3f   :  { %v547_v30 = vmul.f32 %v545_v53, %v541_v24  ;;  %v713_v53 = vld [vmem:[%s1157_s4 + $0x18] sm:$0xff] }
 0xc40   :  { %735 = vmatpush.msrb.mxu0 %v713_v53 }
 0xc84   :  { %v550_v28 = vpop.permute.xlu2 %549 }
 0xc85   :  { %v552_v29 = vmul.f32 %v550_v28, %v541_v24 }
 0xc87   :  { %554 = vrot.lane.b32.xlu0 %v552_v29, %s844_s3 }
 0xcf9   :  { %v555_v31 = vpop.permute.xlu0 %554 }
 0xcfa   :  { %v557_v32 = vadd.f32 %v555_v31, %v547_v30  ;;  %v712_v30 = vld [vmem:[%s1157_s4 + $0x10] sm:$0xff]  ;;  %v711_v31 = vld [vmem:[%s1157_s4 + $0x8] sm:$0xff] }
 0xcfb   :  { %736 = vmatpush.msrb.mxu0 %v712_v30 }
 0xcfc   :  { %824 = vtanh.f32 %v557_v32  ;;  %v615_v59 = vrot.slane %v557_v32, 6  ;;  %v710_v32 = vld [vmem:[%s1157_s4] sm:$0xff] }
 0xcfd   :  { %737 = vmatpush.msrb.mxu0 %v711_v31 }
 0xcff   :  { %738 = vmatpush.msrb.mxu0 %v710_v32 }
 0xd02   :  { %v825_v33 = vpop.eup %824 }
 0xd03   :  { %560 = vrot.lane.b32.xlu1 %v825_v33, %s843_s21 }
 0xd75   :  { %v561_v34 = vpop.permute.xlu1 %560 }
 0xd76   :  { %v563_v35 = vmul.f32 %v561_v34, %v541_v24 }
 0xd78   :  { %v565_v36 = vrot.slane %v563_v35, 2  ;;  %v777_v35 = vld [vmem:[%s1156_s5] ss:$0 sm:$0xff] }
 0xd7a   :  { %566 = vrot.lane.b32.xlu2 %v565_v36, %s844_s3 }
 0xdd4   :  { %v567_v37 = vpop.permute.xlu2 %566 }
 0xdd5   :  { %768 = vmatmul.msk.f32.vlgmr.msra.gmra.mxu3 %vm157_vm6, %v567_v37 }
 0xe58   :  { %v587_v38 = vpop.f32.mrf.mxu3 }
 0xe59   :  { %v591_v39 = vrot.slane %v587_v38, 4 }
 0xe5b   :  { %v593_v40 = vadd.f32 %v591_v39, %v1104_v48 }
 0xe5d   :  { %826 = vtanh.f32 %v593_v40  ;;  %v769_v42 = vmul.f32 -1.442695, %v593_v40 }
 0xe5f   :  { %828 = vpow2.f32 %v769_v42 }
 0xe63   :  { %v827_v41 = vpop.eup %826 }
 0xe64   :  { %619 = vrot.lane.b32.xlu0 %v827_v41, %s843_s21 }
 0xe65   :  { %v829_v43 = vpop.eup %828 }
 0xe66   :  { %v597_v44 = vadd.f32 1.0, %v829_v43 }
 0xe68   :  { %830 = vrcp.f32 %v597_v44  ;;  %v609_v52 = vand.u32 2147483648, %v597_v44  ;;  %vm603_vm13 = vweird.f32 %v597_v44  ;;  %v607_v54 = vand.u32 2147483647, %v597_v44 }
 0xe6a   :  { %v610_v56 = vor.u32 1.1754944e-38, %v609_v52  ;;  %vm608_vm15 = vcmp.eq.f32.partialorder %v607_v54, 8.507059e+37 }
 0xe6e   :  { %v831_v45 = vpop.eup %830 }
 0xe6f   :  { %v599_v47 = vmul.f32 %v831_v45, %v597_v44  ;;  %vm604_vm12 = vweird.f32 %v831_v45 }
 0xe70   :  { %vm605_vm14 = vmor %vm603_vm13, %vm604_vm12 }
 0xe71   :  { %v600_v49 = vsub.f32 1.0, %v599_v47 }
 0xe73   :  { %v601_v50 = vmul.f32 %v831_v45, %v600_v49 }
 0xe75   :  { %v602_v51 = vadd.f32 %v831_v45, %v601_v50 }
 0xe77   :  { %v606_v55 = vsel %vm605_vm14, %v831_v45, %v602_v51 }
 0xe78   :  { %v611_v58 = vsel %vm608_vm15, %v610_v56, %v606_v55 }
 0xe79   :  { %v617_v60 = vmul.f32 %v615_v59, %v611_v58 }
 0xed6   :  { %v620_v57 = vpop.permute.xlu0 %619 }
 0xed7   :  { %v622_v46 = vmul.f32 %v620_v57, %v611_v58 }
 0xed9   :  { %624 = vrot.lane.b32.xlu1 %v622_v46, %s844_s3 }
 0xf4b   :  { %v625_v61 = vpop.permute.xlu1 %624 }
 0xf4c   :  { %v627_v62 = vadd.f32 %v625_v61, %v617_v60 }
 0xf4e   :  { %832 = vtanh.f32 %v627_v62  ;;  %v685_v26 = vrot.slane %v627_v62, 6 }
 0xf54   :  { %v833_v63 = vpop.eup %832 }
 0xf55   :  { %630 = vrot.lane.b32.xlu2 %v833_v63, %s843_s21 }
 0xfaf   :  { %v631_v0 = vpop.permute.xlu2 %630 }
 0xfb0   :  { %v633_v1 = vmul.f32 %v631_v0, %v611_v58 }
 0xfb2   :  { %v635_v2 = vrot.slane %v633_v1, 4 }
 0xfb4   :  { %636 = vrot.lane.b32.xlu0 %v635_v2, %s844_s3 }
0x1026   :  { %v637_v3 = vpop.permute.xlu0 %636 }
0x1027   :  { %770 = vmatmul.msk.f32.vlgmr.msrb.gmra.mxu2 %vm157_vm6, %v637_v3 }
0x10aa   :  { %v657_v4 = vpop.f32.mrf.mxu2 }
0x10ab   :  { %v661_v5 = vrot.slane %v657_v4, 2 }
0x10ad   :  { %v663_v6 = vadd.f32 %v661_v5, %v1104_v48 }
0x10af   :  { %834 = vtanh.f32 %v663_v6  ;;  %v771_v8 = vmul.f32 -1.442695, %v663_v6 }
0x10b1   :  { %836 = vpow2.f32 %v771_v8 }
0x10b5   :  { %v835_v7 = vpop.eup %834 }
0x10b6   :  { %689 = vrot.lane.b32.xlu1 %v835_v7, %s843_s21 }
0x10b7   :  { %v837_v9 = vpop.eup %836 }
0x10b8   :  { %v667_v10 = vadd.f32 1.0, %v837_v9 }
0x10ba   :  { %838 = vrcp.f32 %v667_v10  ;;  %v679_v17 = vand.u32 2147483648, %v667_v10  ;;  %vm673_vm1 = vweird.f32 %v667_v10  ;;  %v677_v18 = vand.u32 2147483647, %v667_v10 }
0x10bc   :  { %v680_v20 = vor.u32 1.1754944e-38, %v679_v17  ;;  %vm678_vm3 = vcmp.eq.f32.partialorder %v677_v18, 8.507059e+37 }
0x10c0   :  { %v839_v11 = vpop.eup %838 }
0x10c1   :  { %v669_v12 = vmul.f32 %v839_v11, %v667_v10  ;;  %vm674_vm0 = vweird.f32 %v839_v11 }
0x10c2   :  { %vm675_vm2 = vmor %vm673_vm1, %vm674_vm0 }
0x10c3   :  { %v670_v13 = vsub.f32 1.0, %v669_v12 }
0x10c5   :  { %v671_v14 = vmul.f32 %v839_v11, %v670_v13 }
0x10c7   :  { %v672_v16 = vadd.f32 %v839_v11, %v671_v14 }
0x10c9   :  { %v676_v48 = vsel %vm675_vm2, %v839_v11, %v672_v16 }
0x10ca   :  { %v681_v23 = vsel %vm678_vm3, %v680_v20, %v676_v48 }
0x10cb   :  { %v687_v15 = vmul.f32 %v685_v26, %v681_v23 }
0x1128   :  { %v690_v21 = vpop.permute.xlu1 %689 }
0x1129   :  { %v692_v25 = vmul.f32 %v690_v21, %v681_v23 }
0x112b   :  { %694 = vrot.lane.b32.xlu2 %v692_v25, %s844_s3 }
0x1185   :  { %v695_v19 = vpop.permute.xlu2 %694 }
0x1186   :  { %v697_v27 = vadd.f32 %v695_v19, %v687_v15 }
0x1188   :  { %840 = vtanh.f32 %v697_v27 }
0x118e   :  { %v841_v22 = vpop.eup %840 }
0x118f   :  { %700 = vrot.lane.b32.xlu0 %v841_v22, %s843_s21 }
0x1201   :  { %v701_v28 = vpop.permute.xlu0 %700 }
0x1202   :  { %v703_v24 = vmul.f32 %v701_v28, %v681_v23 }
0x1204   :  { %v718_v29 = vrot.slane %v703_v24, 6  ;;  %705 = vrot.lane.b32.xlu2 %v703_v24, %s844_s3 }
0x1206   :  { %719 = vrot.lane.b32.xlu1 %v718_v29, %s844_s3 }
0x125e   :  { %v706_v33 = vpop.permute.xlu2 %705 }
0x125f   :  { %709 = vst.msk [vmem:[%s1158_s6 - $0x6] sm:$0xc0] %vm708_vm4, %v706_v33 }
0x1278   :  { %v720_v34 = vpop.permute.xlu1 %719 }
0x1279   :  { %772 = vmatmul.msk.f32.vlgmr.msrb.gmra.mxu0 %vm157_vm6, %v720_v34 }
0x12f6   :  { %v740_v36 = vpop.f32.mrf.mxu0 }
0x12f7   :  { %v741_v37 = vadd.f32 %v777_v35, %v740_v36 }
0x12f9   :  { %v743_v38 = vmax.f32 %v741_v37, 0.0 }
0x12fb   :  { %745 = vst.msk [vmem:[%s1159_s7] sm:$0x3] %vm744_vm5, %v743_v38 }

// kernel: model_forward.7
= control target key start
LH: loop header
LB: loop body
LE: loop exit
PB: predicated region body
PF: predicated region fallthrough
CT: control target
= control target key end

     0   :  { %s815_s6 = smov 1   ;;  %s816_s10 = smov 2   ;;  %s1087_s0 = inlined_call_operand.smem [shape: u32[30], index: -1, kind: input, shape index: {}] }
   0x1   :  { %s858_s5 = sld [smem:[%s1087_s0]]   ;;  %s817_s14 = smov 3  }
   0x2   :  { %s863_s9 = sld [smem:[%s1087_s0 + %s815_s6]]   ;;  %s818_s18 = smov 4  }
   0x3   :  { %s868_s13 = sld [smem:[%s1087_s0 + %s816_s10]]   ;;  %s819_s22 = smov 5  }
   0x4   :  { %s873_s17 = sld [smem:[%s1087_s0 + %s817_s14]]   ;;  %s820_s26 = smov 6  }
   0x5   :  { %s878_s21 = sld [smem:[%s1087_s0 + %s818_s18]]   ;;  %s821_s30 = smov 7  }
   0x6   :  { %s883_s25 = sld [smem:[%s1087_s0 + %s819_s22]]   ;;  %s822_s4 = smov 8  }
   0x7   :  { %s888_s29 = sld [smem:[%s1087_s0 + %s820_s26]]   ;;  %s823_s10 = smov 9  }
   0x8   :  { %s893_s3 = sld [smem:[%s1087_s0 + %s821_s30]]   ;;  %s824_s15 = smov 10  }
   0x9   :  { %1093 = sst [smem:[#allocation16_spill]] %s868_s13  ;;  %s825_s20 = smov 11  }
   0xa   :  { %s898_s8 = sld [smem:[%s1087_s0 + %s822_s4]]   ;;  %s826_s26 = smov 12  }
   0xb   :  { %s903_s14 = sld [smem:[%s1087_s0 + %s823_s10]]   ;;  %s827_s1 = smov 13  }
   0xc   :  { %s594_s19 = sld [smem:[%s1087_s0 + %s824_s15]]   ;;  %s828_s7 = smov 14  }
   0xd   :  { %s911_s24 = sld [smem:[%s1087_s0 + %s825_s20]]   ;;  %s829_s15 = smov 15  }
   0xe   :  { %s916_s30 = sld [smem:[%s1087_s0 + %s826_s26]]   ;;  %s830_s22 = smov 16  }
   0xf   :  { %s921_s6 = sld [smem:[%s1087_s0 + %s827_s1]]   ;;  %s831_s28 = smov 17  }
  0x10   :  { %1094 = sst [smem:[#allocation17_spill]] %s898_s8  ;;  %s833_s16 = smov 21  }
  0x11   :  { %s926_s12 = sld [smem:[%s1087_s0 + %s828_s7]]   ;;  %s832_s7 = smov 19  }
  0x12   :  { %s931_s20 = sld [smem:[%s1087_s0 + %s829_s15]]   ;;  %v65_v0 = vstv %s594_s19  ;;  %s834_s19 = smov 22  }
  0x13   :  { %s936_s27 = sld [smem:[%s1087_s0 + %s830_s22]]   ;;  %66 = vst [vmem:[#allocation2] sm:$0x1] %v65_v0  ;;  %s837_s13 = smov 25  }
  0x14   :  { %s941_s4 = sld [smem:[%s1087_s0 + %s831_s28]]   ;;  %s835_s28 = smov 23  }
  0x15   :  { %s946_s15 = sld [smem:[%s1087_s0 + %s832_s7]]   ;;  %s836_s7 = smov 24  }
  0x16   :  { %s951_s22 = sld [smem:[%s1087_s0 + %s833_s16]]  }
  0x17   :  { %s956_s1 = sld [smem:[%s1087_s0 + %s834_s19]]   ;;  %s838_s19 = smov 26  }
  0x18   :  { %s961_s8 = sld [smem:[%s1087_s0 + %s835_s28]]   ;;  %s843_s28 = smov 20  }
  0x19   :  { %1095 = sst [smem:[#allocation18_spill]] %s936_s27  ;;  %s839_s27 = smov 27  }
  0x1b   :  { %1096 = sst [smem:[#allocation19_spill]] %s946_s15 }
  0x1c   :  { %1097 = sst [smem:[#allocation20_spill]] %s951_s22 }
  0x1d   :  { %1098 = sst [smem:[#allocation21_spill]] %s956_s1 }
  0x1e   :  { %1099 = sst [smem:[#allocation22_spill]] %s961_s8 }
  0x1f   :  { %s966_s15 = sld [smem:[%s1087_s0 + %s836_s7]]   ;;  %s840_s7 = smov 28  }
  0x20   :  { %s971_s22 = sld [smem:[%s1087_s0 + %s837_s13]]   ;;  %s841_s13 = smov 29  }
  0x21   :  { %s976_s1 = sld [smem:[%s1087_s0 + %s838_s19]]   ;;  %s842_s19 = smov 18  }
  0x22   :  { %s981_s8 = sld [smem:[%s1087_s0 + %s839_s27]]  }
  0x25   :  { %1100 = sst [smem:[#allocation23_spill]] %s966_s15 }
  0x26   :  { %1101 = sst [smem:[#allocation24_spill]] %s971_s22 }
  0x27   :  { %1102 = sst [smem:[#allocation25_spill]] %s976_s1 }
  0x28   :  { %1103 = sst [smem:[#allocation26_spill]] %s981_s8 }
  0x29   :  { %s986_s15 = sld [smem:[%s1087_s0 + %s840_s7]]  }
  0x2a   :  { %s991_s22 = sld [smem:[%s1087_s0 + %s841_s13]]  }
  0x2b   :  { %s602_s1 = sld [smem:[%s1087_s0 + %s842_s19]]  }
  0x2c   :  { %s604_s8 = sld [smem:[%s1087_s0 + %s843_s28]]  }
  0x31   :  { %v67_v1 = vstv %s602_s1 }
  0x32   :  { %68 = vst [vmem:[#allocation3] sm:$0x1] %v67_v1  ;;  %v69_v2 = vstv %s604_s8 }
  0x33   :  { %70 = vst [vmem:[#allocation4] sm:$0x1] %v69_v2 }
  0x34   :  { %71 = vsyncpa [#allocation6], 0 }
  0x35   :  { %72 = vsyncpa [#allocation8], 0  ;;  %v128_v3 = vld [vmem:[%s873_s17 + $0x18] sm:$0xff]  ;;  %v127_v4 = vld [vmem:[%s873_s17 + $0x10] sm:$0xff]  ;;  %vm133_vm0 = vcmask 261120  }
  0x36   :  { %v260_v5 = vld [vmem:[%s911_s24 + $0x18] sm:$0xff]  ;;  %149 = vmatpush.msra.mxu0 %v128_v3  ;;  %v259_v6 = vld [vmem:[%s911_s24 + $0x10] sm:$0xff]  ;;  %v126_v7 = vld [vmem:[%s873_s17 + $0x8] sm:$0xff] }
  0x37   :  { %280 = vmatpush.msra.mxu3 %v260_v5  ;;  %v125_v8 = vld [vmem:[%s873_s17] sm:$0xff]  ;;  %v258_v9 = vld [vmem:[%s911_s24 + $0x8] sm:$0xff]  ;;  %v161_v12 = vld [vmem:[%s883_s25 + $0x18] sm:$0xff] }
  0x38   :  { %150 = vmatpush.msra.mxu0 %v127_v4  ;;  %v124_v10 = vld [vmem:[%s858_s5] sm:$0x3]  ;;  %181 = vmatpush.msra.mxu1 %v161_v12 }
  0x39   :  { %281 = vmatpush.msra.mxu3 %v259_v6  ;;  %v257_v11 = vld [vmem:[%s911_s24] sm:$0xff] }
  0x3a   :  { %v256_v13 = vld [vmem:[%s863_s9] sm:$0x3]  ;;  %151 = vmatpush.msra.mxu0 %v126_v7 }
  0x3b   :  { %282 = vmatpush.msra.mxu3 %v258_v9 }
  0x3c   :  { %152 = vmatpush.msra.mxu0 %v125_v8 }
  0x3d   :  { %283 = vmatpush.msra.mxu3 %v257_v11  ;;  %614 = vmatmul.msk.f32.vlgmr.msra.gmra.mxu0 %vm133_vm0, %v124_v10 }
  0x3e   :  { %618 = vmatmul.msk.f32.vlgmr.msra.gmra.mxu3 %vm133_vm0, %v256_v13 }
  0x3f   :  { %73 = vsyncpa [#allocation11], 0  ;;  %v160_v14 = vld [vmem:[%s883_s25 + $0x10] sm:$0xff]  ;;  %v159_v15 = vld [vmem:[%s883_s25 + $0x8] sm:$0xff]  ;;  %vm228_vm1 = vcmask 254976   ;;  %s1104_s0 = sld [smem:[#allocation17_spill]] }
  0x40   :  { %182 = vmatpush.msra.mxu1 %v160_v14  ;;  %v158_v16 = vld [vmem:[%s883_s25] sm:$0xff]  ;;  %v292_v17 = vld [vmem:[%s921_s6 + $0x18] sm:$0xff]  ;;  %v291_v18 = vld [vmem:[%s921_s6 + $0x10] sm:$0xff]  ;;  %s1105_s5 = sld [smem:[#allocation18_spill]]  ;;  %v844_v51 = vmov 0   ;;  %vm221_vm2 = vcmask 74752  }
  0x41   :  { %312 = vmatpush.msrb.mxu0 %v292_v17  ;;  %v290_v19 = vld [vmem:[%s921_s6 + $0x8] sm:$0xff]  ;;  %v289_v20 = vld [vmem:[%s921_s6] sm:$0xff]  ;;  %v193_v21 = vld [vmem:[%s893_s3 + $0x18] sm:$0xff]  ;;  %659 = vset.pattern.permute.xlu1 %v844_v51  ;;  %s1106_s9 = sld [smem:[#allocation19_spill]]  ;;  %s845_s8 = smov [#allocation7]  }
  0x42   :  { %183 = vmatpush.msra.mxu1 %v159_v15  ;;  %213 = vmatpush.msra.mxu2 %v193_v21  ;;  %v661_v22 = vld [vmem:[%s878_s21] ss:$0 sm:$0xff]  ;;  %v192_v30 = vld [vmem:[%s893_s3 + $0x10] sm:$0xff]  ;;  %v191_v31 = vld [vmem:[%s893_s3 + $0x8] sm:$0xff]  ;;  %s1107_s17 = sld [smem:[#allocation20_spill]] }
  0x43   :  { %313 = vmatpush.msrb.mxu0 %v291_v18  ;;  %v662_v26 = vld [vmem:[%s916_s30] ss:$0 sm:$0xff]  ;;  %v324_v33 = vld [vmem:[%s931_s20 + $0x18] sm:$0xff]  ;;  %v323_v34 = vld [vmem:[%s931_s20 + $0x10] sm:$0xff]  ;;  %660 = vset.pattern.permute.xlu0 %v844_v51  ;;  %s1108_s21 = sld [smem:[#allocation22_spill]] }
  0x44   :  { %184 = vmatpush.msra.mxu1 %v158_v16  ;;  %214 = vmatpush.msra.mxu2 %v192_v30  ;;  %v190_v32 = vld [vmem:[%s893_s3] sm:$0xff]  ;;  %v322_v35 = vld [vmem:[%s931_s20 + $0x8] sm:$0xff]  ;;  %s1109_s25 = sld [smem:[#allocation16_spill]] }
  0x45   :  { %314 = vmatpush.msrb.mxu0 %v290_v19  ;;  %v321_v36 = vld [vmem:[%s931_s20] sm:$0xff]  ;;  %s1111_s3 = sld [smem:[#allocation25_spill]] }
  0x46   :  { %215 = vmatpush.msra.mxu2 %v191_v31  ;;  %344 = vmatpush.msrb.mxu1 %v324_v33  ;;  %v663_v37 = vld [vmem:[%s888_s29] ss:$0 sm:$0xff]  ;;  %v668_v56 = vld [vmem:[#allocation3] ss:$0 sm:$0xff]  ;;  %s1110_s29 = sld [smem:[#allocation21_spill]] }
  0x47   :  { %315 = vmatpush.msrb.mxu0 %v289_v20  ;;  %v665_v40 = vld [vmem:[%s903_s14] ss:$0 sm:$0xff]  ;;  %s523_s14 = sshll.u32 %s845_s8, 4  ;;  %s524_s14 = int_to_ptr.vmem [resolvable:$true] %s523_s14 }
  0x48   :  { %216 = vmatpush.msra.mxu2 %v190_v32  ;;  %345 = vmatpush.msrb.mxu1 %v323_v34  ;;  %v664_v42 = vld [vmem:[%s926_s12] ss:$0 sm:$0xff] }
  0x49   :  { %v666_v47 = vld [vmem:[%s941_s4] ss:$0 sm:$0xff] }
  0x4a   :  { %346 = vmatpush.msrb.mxu1 %v322_v35  ;;  %v667_v52 = vld [vmem:[#allocation2] ss:$0 sm:$0xff] }
  0x4b   :  { %v669_v59 = vld [vmem:[%s1104_s0] ss:$0 sm:$0xff]  ;;  %s525_s24 = sshll.u32 %s1111_s3, 4  ;;  %s705_s12 = scalar_lea.hbm %s1111_s3, 2  ;;  %s526_s24 = int_to_ptr.hbm [resolvable:$true] %s525_s24 }
  0x4c   :  { %347 = vmatpush.msrb.mxu1 %v321_v36  ;;  %v670_v60 = vld [vmem:[%s1105_s5] ss:$0 sm:$0xff]  ;;  %v445_v36 = vld [vmem:[%s1107_s17 + $0x18] sm:$0xff]  ;;  %s701_s30 = sshra.s32 %s526_s24, 4  ;;  %s702_s30 = int_to_ptr.hbm [resolvable:$true] %s701_s30 }
  0x4d   :  { %465 = vmatpush.msrb.mxu2 %v445_v36  ;;  %s703_s6 = scalar_lea.hbm %s702_s30, 2  ;;  %p706_p1 = scmp.lt.s32.totalorder %s702_s30, %s1111_s3 }
  0x4e   :  { %p704_p0 = scmp.ne.s32.totalorder %s702_s30, %s703_s6  ;;  %p707_p2 = scmp.lt.s32.totalorder %s705_s12, %s703_s6 }
  0x50   :  { %p708_p3 = por %p707_p2, %p706_p1 }
  0x52   :  { %p709_p4 = pnand %p708_p3, %p704_p0 }
  0xba   :  { %v154_v23 = vpop.f32.mrf.mxu0 }
  0xbb   :  { %v155_v24 = vadd.f32 %v661_v22, %v154_v23 }
  0xbd   :  { %v157_v25 = vmax.f32 %v155_v24, 0.0 }
  0xbf   :  { %615 = vmatmul.msk.f32.vlgmr.msra.gmra.mxu1 %vm133_vm0, %v157_v25 }
  0xc1   :  { %v285_v27 = vpop.f32.mrf.mxu3 }
  0xc2   :  { %v286_v28 = vadd.f32 %v662_v26, %v285_v27  ;;  %v671_v26 = vld [vmem:[%s1106_s9] ss:$0 sm:$0xff] }
  0xc4   :  { %v288_v29 = vmax.f32 %v286_v28, 0.0 }
  0xc6   :  { %619 = vmatmul.msk.f32.vlgmr.msrb.gmra.mxu0 %vm133_vm0, %v288_v29 }
 0x13c   :  { %v186_v38 = vpop.f32.mrf.mxu1 }
 0x13d   :  { %v187_v39 = vadd.f32 %v663_v37, %v186_v38  ;;  %v672_v37 = vld [vmem:[#allocation4] ss:$0 sm:$0xff] }
 0x13f   :  { %v1033_v41 = vmax.f32 %v187_v39, 0.0 }
 0x141   :  { %616 = vmatmul.msk.f32.vlgmr.msra.gmra.mxu2 %vm133_vm0, %v1033_v41  ;;  %v227_v43 = vmul.f32 %v665_v40, %v1033_v41 }
 0x143   :  { %v317_v44 = vpop.f32.mrf.mxu0  ;;  %v229_v46 = vsel %vm228_vm1, %v227_v43, 0.0 }
 0x144   :  { %v318_v45 = vadd.f32 %v664_v42, %v317_v44  ;;  %230 = vadd.xlane.f32.xlu0 %v229_v46 }
 0x146   :  { %v1041_v48 = vmax.f32 %v318_v45, 0.0 }
 0x148   :  { %620 = vmatmul.msk.f32.vlgmr.msrb.gmra.mxu1 %vm133_vm0, %v1041_v48  ;;  %v357_v49 = vmul.f32 %v666_v47, %v1041_v48 }
 0x14a   :  { %v358_v50 = vsel %vm228_vm1, %v357_v49, 0.0 }
 0x14c   :  { %359 = vadd.xlane.f32.xlu0 %v358_v50 }
 0x1b7   :  { %v231_v53 = vpop.xlane.xlu0 %230 }
 0x1b8   :  { %v236_v54 = vadd.f32 %v667_v52, %v231_v53  ;;  %v444_v52 = vld [vmem:[%s1107_s17 + $0x10] sm:$0xff]  ;;  %v443_v53 = vld [vmem:[%s1107_s17 + $0x8] sm:$0xff] }
 0x1b9   :  { %466 = vmatpush.msrb.mxu2 %v444_v52 }
 0x1ba   :  { %v617_v55 = vmul.f32 -1.442695, %v236_v54  ;;  %v442_v54 = vld [vmem:[%s1107_s17] sm:$0xff] }
 0x1bb   :  { %467 = vmatpush.msrb.mxu2 %v443_v53 }
 0x1bc   :  { %675 = vpow2.f32 %v617_v55  ;;  %v478_v55 = vld [vmem:[%s1108_s21 + $0x18] sm:$0xff] }
 0x1bd   :  { %468 = vmatpush.msrb.mxu2 %v442_v54  ;;  %498 = vmatpush.msrb.mxu3 %v478_v55 }
 0x1bf   :  { %v360_v57 = vpop.xlane.xlu0 %359 }
 0x1c0   :  { %v365_v58 = vadd.f32 %v668_v56, %v360_v57  ;;  %v477_v56 = vld [vmem:[%s1108_s21 + $0x10] sm:$0xff] }
 0x1c1   :  { %499 = vmatpush.msrb.mxu3 %v477_v56 }
 0x1c2   :  { %v676_v61 = vpop.eup %675  ;;  %v621_v62 = vmul.f32 -1.442695, %v365_v58 }
 0x1c3   :  { %v240_v63 = vadd.f32 1.0, %v676_v61  ;;  %v440_v61 = vld [vmem:[%s1109_s25] sm:$0x3] }
 0x1c4   :  { %677 = vpow2.f32 %v621_v62  ;;  %v218_v0 = vpop.f32.mrf.mxu2 }
 0x1c5   :  { %v349_v1 = vpop.f32.mrf.mxu1  ;;  %679 = vrcp.f32 %v240_v63  ;;  %v219_v2 = vadd.f32 %v669_v59, %v218_v0  ;;  %v252_v9 = vand.u32 2147483648, %v240_v63  ;;  %v250_v11 = vand.u32 2147483647, %v240_v63  ;;  %v476_v0 = vld [vmem:[%s1108_s21 + $0x8] sm:$0xff] }
 0x1c6   :  { %v350_v3 = vadd.f32 %v670_v60, %v349_v1  ;;  %vm246_vm4 = vweird.f32 %v240_v63  ;;  %500 = vmatpush.msrb.mxu3 %v476_v0  ;;  %v475_v1 = vld [vmem:[%s1108_s21] sm:$0xff] }
 0x1c7   :  { %222 = vst.msk [vmem:[#allocation5] sm:$0x3] %vm221_vm2, %v219_v2  ;;  %v253_v14 = vor.u32 1.1754944e-38, %v252_v9  ;;  %vm251_vm6 = vcmp.eq.f32.partialorder %v250_v11, 8.507059e+37  ;;  %v673_v2 = vld [vmem:[%s1110_s29] ss:$0 sm:$0xff] }
 0x1c8   :  { %352 = vst.msk [vmem:[#allocation7] sm:$0x3] %vm221_vm2, %v350_v3  ;;  %501 = vmatpush.msrb.mxu3 %v475_v1 }
 0x1ca   :  { %v678_v4 = vpop.eup %677 }
 0x1cb   :  { %v680_v5 = vpop.eup %679  ;;  %v369_v6 = vadd.f32 1.0, %v678_v4 }
 0x1cc   :  { %v242_v7 = vmul.f32 %v680_v5, %v240_v63  ;;  %vm247_vm3 = vweird.f32 %v680_v5 }
 0x1cd   :  { %681 = vrcp.f32 %v369_v6  ;;  %vm248_vm5 = vmor %vm246_vm4, %vm247_vm3  ;;  %v381_v19 = vand.u32 2147483648, %v369_v6  ;;  %v379_v21 = vand.u32 2147483647, %v369_v6  ;;  %vm375_vm8 = vweird.f32 %v369_v6 }
 0x1ce   :  { %v243_v8 = vsub.f32 1.0, %v242_v7 }
 0x1cf   :  { %v382_v23 = vor.u32 1.1754944e-38, %v381_v19  ;;  %vm380_vm10 = vcmp.eq.f32.partialorder %v379_v21, 8.507059e+37 }
 0x1d0   :  { %v244_v10 = vmul.f32 %v680_v5, %v243_v8 }
 0x1d2   :  { %v245_v12 = vadd.f32 %v680_v5, %v244_v10 }
 0x1d3   :  { %v682_v13 = vpop.eup %681 }
 0x1d4   :  { %v249_v15 = vsel %vm248_vm5, %v680_v5, %v245_v12  ;;  %v371_v16 = vmul.f32 %v682_v13, %v369_v6  ;;  %vm376_vm7 = vweird.f32 %v682_v13 }
 0x1d5   :  { %v254_v17 = vsel %vm251_vm6, %v253_v14, %v249_v15  ;;  %vm377_vm9 = vmor %vm375_vm8, %vm376_vm7 }
 0x1d6   :  { %387 = vperm.xlu1 %659, %v254_v17   ;;  %v372_v18 = vsub.f32 1.0, %v371_v16 }
 0x1d8   :  { %v373_v20 = vmul.f32 %v682_v13, %v372_v18 }
 0x1da   :  { %v374_v22 = vadd.f32 %v682_v13, %v373_v20 }
 0x1dc   :  { %v378_v24 = vsel %vm377_vm9, %v682_v13, %v374_v22 }
 0x1dd   :  { %v383_v25 = vsel %vm380_vm10, %v382_v23, %v378_v24 }
 0x1de   :  { %393 = vperm.xlu1 %659, %v383_v25  }
 0x248   :  { %v388_v27 = vpop.permute.xlu1 %387 }
 0x249   :  { %v390_v28 = vmul.f32 %v388_v27, %v1033_v41 }
 0x24b   :  { %v401_v29 = vmul.f32 %v671_v26, %v390_v28 }
 0x24d   :  { %v402_v30 = vsel %vm228_vm1, %v401_v29, 0.0 }
 0x24e   :  { %403 = vadd.xlane.f32.xlu2 %v402_v30 }
 0x250   :  { %v394_v31 = vpop.permute.xlu1 %393 }
 0x251   :  { %v396_v32 = vmul.f32 %v394_v31, %v1041_v48 }
 0x253   :  { %v410_v33 = vmul.f32 %v671_v26, %v396_v32 }
 0x255   :  { %v411_v34 = vsel %vm228_vm1, %v410_v33, 0.0 }
 0x256   :  { %412 = vadd.xlane.f32.xlu2 %v411_v34 }
 0x2c1   :  { %v404_v35 = vpop.xlane.xlu2 %403 }
 0x2c2   :  { %v409_v39 = vadd.f32 %v672_v37, %v404_v35 }
 0x2c9   :  { %v413_v38 = vpop.xlane.xlu2 %412 }
 0x2ca   :  { %v414_v40 = vadd.f32 %v672_v37, %v413_v38 }
 0x2cc   :  { %v415_v42 = vmax.f32 %v409_v39, %v414_v40 }
 0x2ce   :  { %v416_v41 = vsub.f32 %v409_v39, %v415_v42  ;;  %v419_v43 = vsub.f32 %v414_v40, %v415_v42 }
 0x2d0   :  { %v417_v44 = vmul.f32 1.442695, %v416_v41  ;;  %v420_v45 = vmul.f32 1.442695, %v419_v43 }
 0x2d2   :  { %683 = vpow2.f32 %v417_v44 }
 0x2d3   :  { %685 = vpow2.f32 %v420_v45 }
 0x2d8   :  { %v684_v46 = vpop.eup %683 }
 0x2d9   :  { %v686_v47 = vpop.eup %685 }
 0x2da   :  { %v422_v48 = vadd.f32 %v686_v47, %v684_v46 }
 0x2dc   :  { %687 = vrcp.f32 %v422_v48 }
 0x2e2   :  { %v688_v49 = vpop.eup %687 }
 0x2e3   :  { %v431_v50 = vmul.f32 %v688_v49, %v686_v47  ;;  %v424_v51 = vmul.f32 %v688_v49, %v684_v46 }
 0x2e5   :  { %434 = vperm.xlu1 %659, %v431_v50   ;;  %427 = vperm.xlu0 %660, %v424_v51  }
 0x357   :  { %v435_v57 = vpop.permute.xlu1 %434  ;;  %v428_v58 = vpop.permute.xlu0 %427 }
 0x358   :  { %v437_v59 = vmul.f32 %v435_v57, %v396_v32  ;;  %v430_v60 = vmul.f32 %v428_v58, %v390_v28 }
 0x35a   :  { %v438_v62 = vadd.f32 %v437_v59, %v430_v60 }
 0x35c   :  { %v441_v63 = vsub.f32 %v440_v61, %v438_v62  ;;  %439 = vst.msk [vmem:[#allocation12] sm:$0x3] %vm228_vm1, %v438_v62 }
 0x35e   :  { %622 = vmatmul.msk.f32.vlgmr.msrb.gmra.mxu2 %vm133_vm0, %v441_v63 }
 0x3e1   :  { %v470_v3 = vpop.f32.mrf.mxu2 }
 0x3e2   :  { %v471_v4 = vadd.f32 %v673_v2, %v470_v3 }
 0x3e4   :  { %v473_v5 = vmax.f32 %v471_v4, 0.0 }
 0x3e6   :  { %474 = vst.msk [vmem:[#allocation10] sm:$0x3] %vm228_vm1, %v473_v5  ;;  %623 = vmatmul.msk.f32.vlgmr.msrb.gmra.mxu3 %vm133_vm0, %v473_v5 }
 0x3e7   :  { %712 = shalt.err (!%p709_p4)
}
 0x3e8   :  { %528 = dma.vmem_to_hbm [thread:$0]  %s524_s14, 32, %s526_s24, [#allocation8]  }
 0x3e9   :  { %s846_s20 = smov [#allocation10]   ;;  %s547_s1 = sshll.u32 %s986_s15, 4  ;;  %s548_s1 = int_to_ptr.hbm [resolvable:$true] %s547_s1 }
 0x3ea   :  { %s545_s4 = sshll.u32 %s846_s20, 4  ;;  %s725_s7 = sshra.s32 %s548_s1, 4  ;;  %s546_s4 = int_to_ptr.vmem [resolvable:$true] %s545_s4  ;;  %s726_s7 = int_to_ptr.hbm [resolvable:$true] %s725_s7 }
 0x3eb   :  { %s727_s10 = scalar_lea.hbm %s726_s7, 2  ;;  %s729_s11 = scalar_lea.hbm %s986_s15, 2 }
 0x3ec   :  { %p728_p5 = scmp.ne.s32.totalorder %s726_s7, %s727_s10  ;;  %p730_p6 = scmp.lt.s32.totalorder %s726_s7, %s986_s15 }
 0x3ed   :  { %p731_p7 = scmp.lt.s32.totalorder %s729_s11, %s727_s10 }
 0x3ef   :  { %p732_p8 = por %p731_p7, %p730_p6 }
 0x3f1   :  { %p733_p9 = pnand %p732_p8, %p728_p5 }
 0x3f3   :  { %736 = shalt.err (!%p733_p9)
}
 0x3f4   :  { %550 = dma.vmem_to_hbm [thread:$0]  %s546_s4, 32, %s548_s1, [#allocation11]  }
 0x3f5   :  { %s1112_s13 = sld [smem:[#allocation24_spill]]  ;;  %s847_s18 = smov [#allocation5]  }
 0x3f6   :  { %s512_s19 = sshll.u32 %s847_s18, 4  ;;  %s513_s19 = int_to_ptr.vmem [resolvable:$true] %s512_s19 }
 0x3fb   :  { %s514_s16 = sshll.u32 %s1112_s13, 4  ;;  %s753_s28 = scalar_lea.hbm %s1112_s13, 2  ;;  %s515_s16 = int_to_ptr.hbm [resolvable:$true] %s514_s16 }
 0x3fc   :  { %s749_s23 = sshra.s32 %s515_s16, 4  ;;  %s750_s23 = int_to_ptr.hbm [resolvable:$true] %s749_s23 }
 0x3fd   :  { %s751_s26 = scalar_lea.hbm %s750_s23, 2  ;;  %p754_p11 = scmp.lt.s32.totalorder %s750_s23, %s1112_s13 }
 0x3fe   :  { %p752_p10 = scmp.ne.s32.totalorder %s750_s23, %s751_s26  ;;  %p755_p12 = scmp.lt.s32.totalorder %s753_s28, %s751_s26 }
 0x400   :  { %p756_p13 = por %p755_p12, %p754_p11 }
 0x402   :  { %p757_p0 = pnand %p756_p13, %p752_p10 }
 0x404   :  { %760 = shalt.err (!%p757_p0)
}
 0x405   :  { %517 = dma.vmem_to_hbm [thread:$0]  %s513_s19, 32, %s515_s16, [#allocation6]  }
 0x406   :  { %s558_s15 = sshll.u32 %s991_s22, 4  ;;  %s848_s27 = smov [#allocation12]   ;;  %s559_s15 = int_to_ptr.hbm [resolvable:$true] %s558_s15 }
 0x407   :  { %s556_s2 = sshll.u32 %s848_s27, 4  ;;  %s773_s0 = sshra.s32 %s559_s15, 4  ;;  %s557_s2 = int_to_ptr.vmem [resolvable:$true] %s556_s2  ;;  %s774_s0 = int_to_ptr.hbm [resolvable:$true] %s773_s0 }
 0x408   :  { %s775_s5 = scalar_lea.hbm %s774_s0, 2  ;;  %s777_s9 = scalar_lea.hbm %s991_s22, 2 }
 0x409   :  { %p776_p1 = scmp.ne.s32.totalorder %s774_s0, %s775_s5  ;;  %p778_p2 = scmp.lt.s32.totalorder %s774_s0, %s991_s22 }
 0x40a   :  { %p779_p3 = scmp.lt.s32.totalorder %s777_s9, %s775_s5 }
 0x40c   :  { %p780_p4 = por %p779_p3, %p778_p2 }
 0x40e   :  { %p781_p5 = pnand %p780_p4, %p776_p1 }
 0x410   :  { %784 = shalt.err (!%p781_p5)
}
 0x411   :  { %561 = dma.vmem_to_hbm [thread:$0]  %s557_s2, 32, %s559_s15, [#allocation11]  }
 0x412   :  { %s1113_s17 = sld [smem:[#allocation23_spill]]  ;;  %s849_s25 = smov [#allocation9]  }
 0x413   :  { %s1114_s21 = sld [smem:[#allocation26_spill]]  ;;  %s534_s29 = sshll.u32 %s849_s25, 4  ;;  %s535_s29 = int_to_ptr.vmem [resolvable:$true] %s534_s29 }
 0x418   :  { %v674_v6 = vld [vmem:[%s1113_s17] ss:$0 sm:$0xff] }
 0x419   :  { %s536_s3 = sshll.u32 %s1114_s21, 4  ;;  %s801_s14 = scalar_lea.hbm %s1114_s21, 2  ;;  %s537_s3 = int_to_ptr.hbm [resolvable:$true] %s536_s3 }
 0x41a   :  { %s797_s22 = sshra.s32 %s537_s3, 4  ;;  %s798_s22 = int_to_ptr.hbm [resolvable:$true] %s797_s22 }
 0x41b   :  { %s799_s8 = scalar_lea.hbm %s798_s22, 2  ;;  %p802_p7 = scmp.lt.s32.totalorder %s798_s22, %s1114_s21 }
 0x41c   :  { %p800_p6 = scmp.ne.s32.totalorder %s798_s22, %s799_s8  ;;  %p803_p8 = scmp.lt.s32.totalorder %s801_s14, %s799_s8 }
 0x41e   :  { %p804_p9 = por %p803_p8, %p802_p7 }
 0x420   :  { %p805_p10 = pnand %p804_p9, %p800_p6 }
 0x469   :  { %v503_v7 = vpop.f32.mrf.mxu3 }
 0x46a   :  { %v504_v8 = vadd.f32 %v674_v6, %v503_v7 }
 0x46c   :  { %506 = vst.msk [vmem:[#allocation9] sm:$0x3] %vm221_vm2, %v504_v8 }
 0x46d   :  { %808 = shalt.err (!%p805_p10)
}
 0x46e   :  { %539 = dma.vmem_to_hbm [thread:$0]  %s535_s29, 32, %s537_s3, [#allocation8]  }
 0x46f   :  { %809 = dma.done.wait [#allocation6], 32  }
 0x470   :  { %810 = vsyncadd [#allocation6], 4294967264 }
 0x471   :  { %811 = dma.done.wait [#allocation8], 64  }
 0x472   :  { %812 = vsyncadd [#allocation8], 4294967232 }
 0x473   :  { %813 = dma.done.wait [#allocation11], 64  }
 0x474   :  { %814 = vsyncadd [#allocation11], 4294967232 }
 0x475   :  { %582 = vsyncpa [#allocation6], 1 }
 0x476   :  { %583 = vsyncpa [#allocation8], 1 }
 0x477   :  { %584 = vsyncpa [#allocation11], 1 }

// kernel: model_forward.6
= control target key start
LH: loop header
LB: loop body
LE: loop exit
PB: predicated region body
PF: predicated region fallthrough
CT: control target
= control target key end

     0   :  { %vm73_vm0 = vcmask 261120   ;;  %vm332_vm1 = vcmask 259072   ;;  %vm376_vm2 = vcmask 1041409   ;;  %vm378_vm3 = vcmask 1042434   ;;  %s1867_s2 = inlined_call_operand.vmem [shape: f32[2,32,32], index: 2, kind: input, shape index: {}]   ;;  %s1868_s0 = inlined_call_operand.vmem [shape: f32[36,32], index: 0, kind: input, shape index: {}]   ;;  %s1869_s4 = inlined_call_operand.vmem [shape: f32[2,32,32], index: 4, kind: input, shape index: {}]   ;;  %s1870_s3 = inlined_call_operand.vmem [shape: f32[2,32], index: 3, kind: input, shape index: {}]   ;;  %s1871_s1 = inlined_call_operand.vmem [shape: f32[6,32], index: 1, kind: input, shape index: {}]   ;;  %s1872_s5 = inlined_call_operand.vmem [shape: f32[2,32], index: 5, kind: input, shape index: {}]   ;;  %s1873_s6 = inlined_call_operand.vmem [shape: f32[2,32], index: 6, kind: input, shape index: {}]   ;;  %s1874_s7 = inlined_call_operand.vmem [shape: f32[2,1], index: 7, kind: input, shape index: {}]   ;;  %s1875_s9 = inlined_call_operand.vmem [shape: f32[1,64], index: 9, kind: input, shape index: {}]   ;;  %s1876_s8 = inlined_call_operand.vmem [shape: f32[32,64], index: 8, kind: input, shape index: {}]   ;;  %s1877_s10 = inlined_call_operand.vmem [shape: f32[64,10], index: 10, kind: input, shape index: {}]   ;;  %s1878_s12 = inlined_call_operand.vmem [shape: f32[6,32], index: 12, kind: output, shape index: {0}]   ;;  %s1879_s11 = inlined_call_operand.vmem [shape: f32[1,10], index: 11, kind: input, shape index: {}]   ;;  %s1880_s13 = inlined_call_operand.vmem [shape: f32[6,10], index: 13, kind: output, shape index: {1}]  }
   0x1   :  { %v70_v0 = vld [vmem:[%s1867_s2 + $0x18] sm:$0xff]  ;;  %v69_v1 = vld [vmem:[%s1867_s2 + $0x10] sm:$0xff]  ;;  %v68_v2 = vld [vmem:[%s1867_s2 + $0x8] sm:$0xff]  ;;  %vm380_vm4 = vcmask 1043459   ;;  %vm382_vm5 = vcmask 1044484   ;;  %vm384_vm6 = vcmask 1045509  }
   0x2   :  { %96 = vmatpush.msra.mxu0 %v70_v0  ;;  %1230 = vmatpush.msra.mxu1 %v70_v0  ;;  %v67_v3 = vld [vmem:[%s1867_s2] sm:$0xff]  ;;  %v119_v6 = vld [vmem:[%s1869_s4 + $0x18] sm:$0xff]  ;;  %v118_v7 = vld [vmem:[%s1869_s4 + $0x10] sm:$0xff]  ;;  %vm387_vm7 = vcmask 46080   ;;  %vm1174_vm8 = vcmask 523264   ;;  %vm1198_vm9 = vcmask 78848  }
   0x3   :  { %v1440_v4 = vld [vmem:[%s1868_s0] sm:$0xff]  ;;  %v117_v8 = vld [vmem:[%s1869_s4 + $0x8] sm:$0xff]  ;;  %v1480_v12 = vld [vmem:[%s1868_s0 + $0x10] sm:$0xff] }
   0x4   :  { %97 = vmatpush.msra.mxu0 %v69_v1  ;;  %1231 = vmatpush.msra.mxu1 %v69_v1  ;;  %v1445_v5 = vld [vmem:[%s1868_s0 + $0x20] sm:$0xf]  ;;  %v1466_v10 = vld [vmem:[%s1868_s0 + $0x8] sm:$0xff]  ;;  %v1487_v13 = vld [vmem:[%s1868_s0 + $0x18] sm:$0xff] }
   0x5   :  { %v116_v9 = vld [vmem:[%s1869_s4] sm:$0xff] }
   0x6   :  { %98 = vmatpush.msra.mxu0 %v68_v2  ;;  %1232 = vmatpush.msra.mxu1 %v68_v2  ;;  %v1471_v11 = vld [vmem:[%s1871_s1] sm:$0x3f] }
   0x7   :  { %v1247_v16 = vld [vmem:[%s1872_s5] ss:$0 sm:$0xff] }
   0x8   :  { %99 = vmatpush.msra.mxu0 %v67_v3  ;;  %1233 = vmatpush.msra.mxu1 %v67_v3  ;;  %v1499_v17 = vld [vmem:[%s1870_s3] ss:$0 sm:$0xff] }
   0x9   :  { %1208 = vmatmul.msk.f32.vlgmr.msra.gmra.mxu0 %vm73_vm0, %v1440_v4  ;;  %1212 = vmatmul.msk.f32.vlgmr.msra.gmra.mxu1 %vm73_vm0, %v1445_v5  ;;  %v1516_v44 = vld [vmem:[%s1873_s6] ss:$0 sm:$0xff] }
   0xa   :  { %137 = vmatpush.msrb.mxu1 %v119_v6  ;;  %v1521_v51 = vrot.slane %v1516_v44, 2  ;;  %v1524_v58 = vrot.slane %v1516_v44, 4 }
   0xc   :  { %138 = vmatpush.msrb.mxu1 %v118_v7 }
   0xe   :  { %139 = vmatpush.msrb.mxu1 %v117_v8 }
  0x10   :  { %140 = vmatpush.msrb.mxu1 %v116_v9 }
  0x11   :  { %1209 = vmatmul.msk.f32.gmra.mxu0 %vm73_vm0, %v1466_v10  ;;  %1213 = vmatmul.msk.f32.vlgmr.msrb.gmra.mxu1 %vm73_vm0, %v1471_v11 }
  0x19   :  { %1210 = vmatmul.msk.f32.gmra.mxu0 %vm73_vm0, %v1480_v12 }
  0x21   :  { %1211 = vmatmul.msk.f32.gmra.mxu0 %vm73_vm0, %v1487_v13 }
  0x86   :  { %v101_v14 = vpop.f32.mrf.mxu0  ;;  %v1491_v15 = vpop.f32.mrf.mxu1 }
  0x87   :  { %v102_v18 = vadd.f32 %v1499_v17, %v101_v14 }
  0x89   :  { %v150_v24 = vrot.slane %v102_v18, 2  ;;  %v151_v27 = vrot.slane %v102_v18, 4  ;;  %v152_v28 = vrot.slane %v102_v18, 6 }
  0x8e   :  { %v104_v19 = vpop.f32.mrf.mxu0  ;;  %v142_v20 = vpop.f32.mrf.mxu1 }
  0x8f   :  { %v1503_v21 = vadd.f32 %v1499_v17, %v104_v19  ;;  %v1505_v22 = vadd.f32 %v1247_v16, %v142_v20 }
  0x91   :  { %v177_v23 = vrot.slane %v1505_v22, 1  ;;  %v182_v25 = vperm.slane %v1505_v22, 0  ;;  %v178_v26 = vrot.slane %v1505_v22, 2  ;;  %v153_v29 = vrot.slane %v1503_v21, 2 }
  0x92   :  { %v179_v34 = vrot.slane %v1505_v22, 3  ;;  %v154_v46 = vrot.slane %v1503_v21, 4  ;;  %v155_v60 = vrot.slane %v1503_v21, 6  ;;  %v180_v6 = vrot.slane %v1505_v22, 4 }
  0x93   :  { %v183_v30 = vperm.slane %v177_v23, 0  ;;  %v194_v31 = vrot.slane %v182_v25, 2  ;;  %v195_v32 = vrot.slane %v182_v25, 4  ;;  %v218_v33 = vadd.f32 %v182_v25, %v102_v18 }
  0x94   :  { %v184_v38 = vperm.slane %v178_v26, 0  ;;  %v185_v47 = vperm.slane %v179_v34, 0  ;;  %v181_v7 = vrot.slane %v1505_v22, 5  ;;  %v186_v25 = vperm.slane %v180_v6, 0 }
  0x95   :  { %v196_v35 = vrot.slane %v183_v30, 2  ;;  %v197_v36 = vrot.slane %v183_v30, 4  ;;  %v221_v37 = vadd.f32 %v183_v30, %v152_v28  ;;  %v219_v39 = vadd.f32 %v194_v31, %v150_v24 }
  0x96   :  { %v220_v40 = vadd.f32 %v195_v32, %v151_v27  ;;  %1254 = vtanh.f32 %v218_v33  ;;  %v107_v41 = vpop.f32.mrf.mxu0  ;;  %v199_v49 = vrot.slane %v184_v38, 4  ;;  %v198_v55 = vrot.slane %v184_v38, 2 }
  0x97   :  { %v222_v42 = vadd.f32 %v196_v35, %v1503_v21  ;;  %v223_v43 = vadd.f32 %v197_v36, %v153_v29  ;;  %1256 = vtanh.f32 %v221_v37  ;;  %v108_v45 = vadd.f32 %v1499_v17, %v107_v41 }
  0x98   :  { %1258 = vtanh.f32 %v219_v39  ;;  %v200_v56 = vrot.slane %v185_v47, 2  ;;  %v224_v57 = vadd.f32 %v184_v38, %v154_v46  ;;  %v201_v62 = vrot.slane %v185_v47, 4 }
  0x99   :  { %1260 = vtanh.f32 %v220_v40  ;;  %v156_v48 = vrot.slane %v108_v45, 2  ;;  %v157_v50 = vrot.slane %v108_v45, 4  ;;  %v158_v52 = vrot.slane %v108_v45, 6 }
  0x9a   :  { %1262 = vtanh.f32 %v222_v42  ;;  %v226_v53 = vadd.f32 %v199_v49, %v108_v45  ;;  %v225_v19 = vadd.f32 %v198_v55, %v155_v60  ;;  %v187_v26 = vperm.slane %v181_v7, 0 }
  0x9b   :  { %1264 = vtanh.f32 %v223_v43  ;;  %v227_v63 = vadd.f32 %v185_v47, %v156_v48  ;;  %v228_v1 = vadd.f32 %v200_v56, %v157_v50  ;;  %v229_v14 = vadd.f32 %v201_v62, %v158_v52 }
  0x9c   :  { %v1255_v54 = vpop.eup %1254  ;;  %1266 = vtanh.f32 %v226_v53  ;;  %v114_v30 = vadd.f32 %v1499_v17, %v1491_v15  ;;  %v202_v33 = vrot.slane %v186_v25, 2  ;;  %v204_v34 = vrot.slane %v187_v26, 2 }
  0x9d   :  { %v1257_v59 = vpop.eup %1256  ;;  %v261_v61 = vmul.f32 %v1255_v54, %v1516_v44  ;;  %1268 = vtanh.f32 %v224_v57  ;;  %v203_v38 = vrot.slane %v186_v25, 4  ;;  %v205_v39 = vrot.slane %v187_v26, 4 }
  0x9e   :  { %v1259_v0 = vpop.eup %1258  ;;  %v264_v2 = vmul.f32 %v1257_v59, %v1516_v44  ;;  %v110_v3 = vpop.f32.mrf.mxu0  ;;  %1270 = vtanh.f32 %v227_v63  ;;  %v162_v47 = vrot.slane %v114_v30, 2  ;;  %v234_v52 = vadd.f32 %v204_v34, %v114_v30 }
  0x9f   :  { %v1261_v8 = vpop.eup %1260  ;;  %v262_v9 = vmul.f32 %v1259_v0, %v1521_v51  ;;  %297 = vst [vmem:[#allocation1] ss:$4 sm:$0xff] %v261_v61  ;;  %v111_v16 = vadd.f32 %v1499_v17, %v110_v3  ;;  %1272 = vtanh.f32 %v228_v1 }
  0xa0   :  { %v1263_v18 = vpop.eup %1262  ;;  %v263_v20 = vmul.f32 %v1261_v8, %v1524_v58  ;;  %304 = vst [vmem:[#allocation1 + $0x20] ss:$4 sm:$0xff] %v264_v2  ;;  %1274 = vtanh.f32 %v229_v14  ;;  %v235_v54 = vadd.f32 %v205_v39, %v162_v47 }
  0xa1   :  { %v1265_v21 = vpop.eup %1264  ;;  %299 = vst [vmem:[#allocation1 + $0x1] ss:$4 sm:$0xff] %v262_v9  ;;  %v265_v23 = vmul.f32 %v1263_v18, %v1521_v51  ;;  %v161_v24 = vrot.slane %v111_v16, 6  ;;  %1276 = vtanh.f32 %v225_v19  ;;  %v159_v28 = vrot.slane %v111_v16, 2 }
  0xa2   :  { %v266_v22 = vmul.f32 %v1265_v21, %v1524_v58  ;;  %301 = vst [vmem:[#allocation1 + $0x2] ss:$4 sm:$0xff] %v263_v20  ;;  %v1267_v27 = vpop.eup %1266  ;;  %v160_v31 = vrot.slane %v111_v16, 4  ;;  %v230_v40 = vadd.f32 %v186_v25, %v111_v16  ;;  %v54_v16 = vrot.slane %v1440_v4, 4 }
  0xa3   :  { %306 = vst [vmem:[#allocation1 + $0x21] ss:$4 sm:$0xff] %v265_v23  ;;  %v1269_v29 = vpop.eup %1268  ;;  %v233_v35 = vadd.f32 %v187_v26, %v161_v24  ;;  %v269_v37 = vmul.f32 %v1267_v27, %v1524_v58  ;;  %v231_v45 = vadd.f32 %v202_v33, %v159_v28  ;;  %v55_v19 = vrot.slane %v1440_v4, 6  ;;  %v351_v23 = vld [vmem:[%s1874_s7] sm:$0x1] }
  0xa4   :  { %308 = vst [vmem:[#allocation1 + $0x22] ss:$4 sm:$0xff] %v266_v22  ;;  %v1271_v32 = vpop.eup %1270  ;;  %v267_v42 = vmul.f32 %v1269_v29, %v1516_v44  ;;  %v232_v17 = vadd.f32 %v203_v38, %v160_v31  ;;  %v56_v21 = vrot.slane %v1466_v10, 2  ;;  %v57_v22 = vrot.slane %v1466_v10, 4 }
  0xa5   :  { %v1273_v36 = vpop.eup %1272  ;;  %v270_v15 = vmul.f32 %v1271_v32, %v1516_v44  ;;  %1278 = vtanh.f32 %v233_v35  ;;  %1238 = vpush %v351_v23  ;;  %v58_v24 = vrot.slane %v1466_v10, 6  ;;  %v59_v26 = vrot.slane %v1480_v12, 2 }
  0xa6   :  { %v1275_v41 = vpop.eup %1274  ;;  %v271_v49 = vmul.f32 %v1273_v36, %v1521_v51  ;;  %1280 = vtanh.f32 %v230_v40  ;;  %v60_v28 = vrot.slane %v1480_v12, 4  ;;  %v61_v29 = vrot.slane %v1480_v12, 6 }
  0xa7   :  { %v1277_v46 = vpop.eup %1276  ;;  %v272_v53 = vmul.f32 %v1275_v41, %v1524_v58  ;;  %1282 = vtanh.f32 %v231_v45  ;;  %v62_v31 = vrot.slane %v1487_v13, 2  ;;  %v63_v32 = vrot.slane %v1487_v13, 4 }
  0xa8   :  { %v268_v55 = vmul.f32 %v1277_v46, %v1521_v51  ;;  %1284 = vtanh.f32 %v232_v17  ;;  %v64_v33 = vrot.slane %v1487_v13, 6  ;;  %v65_v35 = vrot.slane %v1445_v5, 2 }
  0xa9   :  { %v302_v43 = vld.sshfl [vmem:[#allocation1] sm:$0xff pattern:$0x73625140]  ;;  %1286 = vtanh.f32 %v234_v52  ;;  %v368_v40 = vlaneseq }
  0xaa   :  { %312 = vst [vmem:[#allocation1 + $0x2] ss:$4 sm:$0xff] %v269_v37  ;;  %v333_v48 = vsel %vm332_vm1, %v302_v43, 0.0  ;;  %1288 = vtanh.f32 %v235_v54 }
  0xab   :  { %v309_v50 = vld.sshfl [vmem:[#allocation1 + $0x20] sm:$0xff pattern:$0x73625140]  ;;  %310 = vst [vmem:[#allocation1] ss:$4 sm:$0xff] %v267_v42  ;;  %334 = vadd.xlane.f32.xlu0 %v333_v48  ;;  %v1279_v56 = vpop.eup %1278  ;;  %v1611_v45 = vand.u32 127, %v368_v40 }
  0xac   :  { %314 = vst [vmem:[#allocation1 + $0x20] ss:$4 sm:$0xff] %v270_v15  ;;  %v1281_v57 = vpop.eup %1280  ;;  %v336_v59 = vsel %vm332_vm1, %v309_v50, 0.0  ;;  %v276_v62 = vmul.f32 %v1279_v56, %v1516_v44 }
  0xad   :  { %315 = vst [vmem:[#allocation1 + $0x21] ss:$4 sm:$0xff] %v271_v49  ;;  %v1283_v60 = vpop.eup %1282  ;;  %v273_v1 = vmul.f32 %v1281_v57, %v1516_v44  ;;  %v53_v44 = vrot.slane %v1440_v4, 2 }
  0xae   :  { %316 = vst [vmem:[#allocation1 + $0x22] ss:$4 sm:$0xff] %v272_v53  ;;  %v1285_v61 = vpop.eup %1284  ;;  %v274_v3 = vmul.f32 %v1283_v60, %v1521_v51 }
  0xaf   :  { %311 = vst [vmem:[#allocation1 + $0x1] ss:$4 sm:$0xff] %v268_v55  ;;  %v1287_v63 = vpop.eup %1286  ;;  %v275_v7 = vmul.f32 %v1285_v61, %v1524_v58 }
  0xb0   :  { %v1289_v2 = vpop.eup %1288  ;;  %v277_v9 = vmul.f32 %v1287_v63, %v1521_v51 }
  0xb1   :  { %v278_v14 = vmul.f32 %v1289_v2, %v1524_v58 }
  0xb3   :  { %337 = vadd.xlane.f32.xlu0 %v336_v59 }
  0xb5   :  { %v317_v0 = vld.sshfl [vmem:[#allocation1 + $0x20] sm:$0xff pattern:$0x73625140] }
  0xb6   :  { %v313_v6 = vld.sshfl [vmem:[#allocation1] sm:$0xff pattern:$0x73625140]  ;;  %322 = vst [vmem:[#allocation1 + $0x20] ss:$4 sm:$0xff] %v276_v62  ;;  %v342_v18 = vsel %vm332_vm1, %v317_v0, 0.0 }
  0xb7   :  { %318 = vst [vmem:[#allocation1] ss:$4 sm:$0xff] %v273_v1  ;;  %v339_v8 = vsel %vm332_vm1, %v313_v6, 0.0  ;;  %v1354_v1 = vmov 0  }
  0xb8   :  { %319 = vst [vmem:[#allocation1 + $0x1] ss:$4 sm:$0xff] %v274_v3  ;;  %340 = vadd.xlane.f32.xlu1 %v339_v8  ;;  %1245 = vset.pattern.permute.xlu0 %v1354_v1 }
  0xb9   :  { %320 = vst [vmem:[#allocation1 + $0x2] ss:$4 sm:$0xff] %v275_v7  ;;  %1244 = vset.pattern.permute.xlu2 %v1354_v1  ;;  %1243 = vset.pattern.permute.xlu1 %v1354_v1 }
  0xba   :  { %323 = vst [vmem:[#allocation1 + $0x21] ss:$4 sm:$0xff] %v277_v9 }
  0xbb   :  { %324 = vst [vmem:[#allocation1 + $0x22] ss:$4 sm:$0xff] %v278_v14 }
  0xc0   :  { %v321_v20 = vld.sshfl [vmem:[#allocation1] sm:$0xff pattern:$0x73625140]  ;;  %343 = vadd.xlane.f32.xlu1 %v342_v18 }
  0xc1   :  { %511 = vst [vmem:[#allocation1] ss:$4 sm:$0xff] %v1440_v4  ;;  %v345_v51 = vsel %vm332_vm1, %v321_v20, 0.0 }
  0xc2   :  { %513 = vst [vmem:[#allocation1 + $0x1] ss:$4 sm:$0xff] %v53_v44  ;;  %346 = vadd.xlane.f32.xlu2 %v345_v51  ;;  %v325_v58 = vld.sshfl [vmem:[#allocation1 + $0x20] sm:$0xff pattern:$0x73625140] }
  0xc3   :  { %515 = vst [vmem:[#allocation1 + $0x2] ss:$4 sm:$0xff] %v54_v16  ;;  %v348_v25 = vsel %vm332_vm1, %v325_v58, 0.0 }
  0xc4   :  { %518 = vst [vmem:[#allocation1 + $0x20] ss:$4 sm:$0xff] %v55_v19 }
  0xc5   :  { %520 = vst [vmem:[#allocation1 + $0x21] ss:$4 sm:$0xff] %v1466_v10 }
  0xc6   :  { %522 = vst [vmem:[#allocation1 + $0x22] ss:$4 sm:$0xff] %v56_v21 }
  0xca   :  { %v1576_v27 = vld.sshfl [vmem:[#allocation1] sm:$0xff pattern:$0x73625140]  ;;  %349 = vadd.xlane.f32.xlu2 %v348_v25 }
  0xcb   :  { %524 = vst [vmem:[#allocation1] ss:$4 sm:$0xff] %v57_v22 }
  0xcc   :  { %525 = vst [vmem:[#allocation1 + $0x1] ss:$4 sm:$0xff] %v58_v24 }
  0xcd   :  { %v1584_v30 = vld.sshfl [vmem:[#allocation1 + $0x20] sm:$0xff pattern:$0x73625140]  ;;  %526 = vst [vmem:[#allocation1 + $0x2] ss:$4 sm:$0xff] %v1480_v12 }
  0xce   :  { %528 = vst [vmem:[#allocation1 + $0x20] ss:$4 sm:$0xff] %v59_v26 }
  0xcf   :  { %529 = vst [vmem:[#allocation1 + $0x21] ss:$4 sm:$0xff] %v60_v28 }
  0xd0   :  { %530 = vst [vmem:[#allocation1 + $0x22] ss:$4 sm:$0xff] %v61_v29 }
  0xd4   :  { %v1596_v34 = vld.sshfl [vmem:[#allocation1] sm:$0xff pattern:$0x73625140] }
  0xd5   :  { %532 = vst [vmem:[#allocation1] ss:$4 sm:$0xff] %v1487_v13 }
  0xd6   :  { %533 = vst [vmem:[#allocation1 + $0x1] ss:$4 sm:$0xff] %v62_v31  ;;  %s1239_s25 = spop %1238 }
  0xd7   :  { %v1602_v36 = vld.sshfl [vmem:[#allocation1 + $0x20] sm:$0xff pattern:$0x73625140]  ;;  %534 = vst [vmem:[#allocation1 + $0x2] ss:$4 sm:$0xff] %v63_v32  ;;  %v354_v41 = vstv %s1239_s25 }
  0xd8   :  { %536 = vst [vmem:[#allocation1 + $0x20] ss:$4 sm:$0xff] %v64_v33 }
  0xd9   :  { %537 = vst [vmem:[#allocation1 + $0x21] ss:$4 sm:$0xff] %v1445_v5 }
  0xda   :  { %538 = vst [vmem:[#allocation1 + $0x22] ss:$4 sm:$0xff] %v65_v35 }
 0x11e   :  { %v335_v37 = vpop.xlane.xlu0 %334 }
 0x11f   :  { %v356_v46 = vadd.f32 %v354_v41, %v335_v37 }
 0x121   :  { %v370_v49 = vperm.slane %v356_v46, %v1611_v45 }
 0x126   :  { %v338_v39 = vpop.xlane.xlu0 %337 }
 0x127   :  { %v357_v42 = vadd.f32 %v354_v41, %v338_v39 }
 0x129   :  { %v371_v17 = vperm.slane %v357_v42, %v1611_v45 }
 0x12b   :  { %v341_v38 = vpop.xlane.xlu1 %340  ;;  %v377_v53 = vsel %vm376_vm2, %v371_v17, %v370_v49 }
 0x12c   :  { %v358_v47 = vadd.f32 %v354_v41, %v341_v38 }
 0x12e   :  { %v372_v50 = vperm.slane %v358_v47, %v1611_v45 }
 0x130   :  { %v379_v55 = vsel %vm378_vm3, %v372_v50, %v377_v53 }
 0x133   :  { %v344_v43 = vpop.xlane.xlu1 %343 }
 0x134   :  { %v359_v48 = vadd.f32 %v354_v41, %v344_v43 }
 0x135   :  { %v347_v15 = vpop.xlane.xlu2 %346 }
 0x136   :  { %v360_v52 = vadd.f32 %v354_v41, %v347_v15  ;;  %v373_v54 = vperm.slane %v359_v48, %v1611_v45 }
 0x138   :  { %v374_v56 = vperm.slane %v360_v52, %v1611_v45  ;;  %v381_v60 = vsel %vm380_vm4, %v373_v54, %v379_v55 }
 0x13a   :  { %v383_v62 = vsel %vm382_vm5, %v374_v56, %v381_v60 }
 0x13d   :  { %v350_v57 = vpop.xlane.xlu2 %349 }
 0x13e   :  { %v361_v59 = vadd.f32 %v354_v41, %v350_v57 }
 0x140   :  { %v375_v61 = vperm.slane %v361_v59, %v1611_v45 }
 0x142   :  { %v385_v63 = vsel %vm384_vm6, %v375_v61, %v383_v62 }
 0x143   :  { %v388_v0 = vsel %vm387_vm7, %v385_v63, -inf }
 0x144   :  { %389 = vmax.xlane.f32.xlu0 %v388_v0 }
 0x1b7   :  { %v390_v2 = vpop.xlane.xlu0 %389 }
 0x1b8   :  { %v392_v3 = vperm.slane %v390_v2, 0  ;;  %v393_v6 = vperm.slane %v390_v2, 1  ;;  %v394_v7 = vperm.slane %v390_v2, 2  ;;  %v396_v8 = vperm.slane %v390_v2, 4 }
 0x1b9   :  { %v395_v20 = vperm.slane %v390_v2, 3  ;;  %v397_v39 = vperm.slane %v390_v2, 5 }
 0x1ba   :  { %v404_v9 = vsub.f32 %v356_v46, %v392_v3  ;;  %v405_v14 = vsub.f32 %v357_v42, %v393_v6  ;;  %v406_v18 = vsub.f32 %v358_v47, %v394_v7  ;;  %v408_v25 = vsub.f32 %v360_v52, %v396_v8 }
 0x1bb   :  { %v407_v37 = vsub.f32 %v359_v48, %v395_v20  ;;  %v409_v42 = vsub.f32 %v361_v59, %v397_v39 }
 0x1bc   :  { %v410_v51 = vmul.f32 1.442695, %v404_v9  ;;  %v412_v58 = vmul.f32 1.442695, %v405_v14  ;;  %v414_v23 = vmul.f32 1.442695, %v406_v18 }
 0x1bd   :  { %v418_v38 = vmul.f32 1.442695, %v408_v25  ;;  %v416_v40 = vmul.f32 1.442695, %v407_v37  ;;  %v420_v46 = vmul.f32 1.442695, %v409_v42 }
 0x1be   :  { %1290 = vpow2.f32 %v410_v51 }
 0x1bf   :  { %1292 = vpow2.f32 %v412_v58 }
 0x1c0   :  { %1294 = vpow2.f32 %v414_v23 }
 0x1c1   :  { %1296 = vpow2.f32 %v418_v38 }
 0x1c2   :  { %1298 = vpow2.f32 %v416_v40 }
 0x1c3   :  { %1300 = vpow2.f32 %v420_v46  ;;  %v1214_v46 = vld [vmem:[%s1867_s2 + $0x20] sm:$0xff] }
 0x1c4   :  { %v1291_v41 = vpop.eup %1290 }
 0x1c5   :  { %v1293_v43 = vpop.eup %1292  ;;  %429 = vperm.xlu1 %1243, %v1291_v41  }
 0x1c6   :  { %v1295_v15 = vpop.eup %1294  ;;  %432 = vperm.xlu2 %1244, %v1293_v43  }
 0x1c7   :  { %435 = vperm.xlu0 %1245, %v1295_v15   ;;  %v1297_v47 = vpop.eup %1296 }
 0x1c8   :  { %v1299_v17 = vpop.eup %1298 }
 0x1c9   :  { %v1301_v48 = vpop.eup %1300 }
 0x1cd   :  { %441 = vperm.xlu1 %1243, %v1297_v47  }
 0x1ce   :  { %438 = vperm.xlu2 %1244, %v1299_v17  }
 0x1d6   :  { %444 = vperm.xlu2 %1244, %v1301_v48  }
 0x220   :  { %v433_v49 = vpop.permute.xlu2 %432 }
 0x221   :  { %v447_v54 = vperm.slane %v433_v49, %v1611_v45  ;;  %v1226_v49 = vld [vmem:[%s1869_s4 + $0x38] sm:$0xff] }
 0x222   :  { %668 = vmatpush.msra.mxu3 %v1226_v49 }
 0x228   :  { %v439_v50 = vpop.permute.xlu2 %438 }
 0x229   :  { %v449_v61 = vperm.slane %v439_v50, %v1611_v45  ;;  %v1225_v50 = vld [vmem:[%s1869_s4 + $0x30] sm:$0xff] }
 0x22a   :  { %669 = vmatpush.msra.mxu3 %v1225_v50 }
 0x230   :  { %v445_v59 = vpop.permute.xlu2 %444 }
 0x231   :  { %v451_v0 = vperm.slane %v445_v59, %v1611_v45 }
 0x237   :  { %v430_v52 = vpop.permute.xlu1 %429 }
 0x238   :  { %v446_v53 = vperm.slane %v430_v52, %v1611_v45  ;;  %v535_v52 = vld.sshfl [vmem:[#allocation1] sm:$0xff pattern:$0x73625140] }
 0x239   :  { %v436_v55 = vpop.permute.xlu0 %435 }
 0x23a   :  { %v448_v56 = vperm.slane %v436_v55, %v1611_v45  ;;  %v452_v57 = vsel %vm376_vm2, %v447_v54, %v446_v53 }
 0x23c   :  { %v453_v60 = vsel %vm378_vm3, %v448_v56, %v452_v57 }
 0x23d   :  { %v454_v1 = vsel %vm380_vm4, %v449_v61, %v453_v60  ;;  %v1223_v60 = vld [vmem:[%s1869_s4 + $0x20] sm:$0xff] }
 0x23f   :  { %v442_v62 = vpop.permute.xlu1 %441 }
 0x240   :  { %v450_v63 = vperm.slane %v442_v62, %v1611_v45 }
 0x242   :  { %v455_v2 = vsel %vm382_vm5, %v450_v63, %v454_v1 }
 0x243   :  { %v456_v3 = vsel %vm384_vm6, %v451_v0, %v455_v2 }
 0x244   :  { %v458_v6 = vsel %vm387_vm7, %v456_v3, 0.0 }
 0x245   :  { %459 = vadd.xlane.f32.xlu1 %v458_v6 }
 0x2b8   :  { %v460_v7 = vpop.xlane.xlu1 %459 }
 0x2b9   :  { %1302 = vrcp.f32 %v460_v7 }
 0x2bf   :  { %v1303_v8 = vpop.eup %1302 }
 0x2c0   :  { %v464_v9 = vperm.slane %v1303_v8, 1  ;;  %v463_v14 = vperm.slane %v1303_v8, 0  ;;  %v466_v51 = vperm.slane %v1303_v8, 3  ;;  %v465_v58 = vperm.slane %v1303_v8, 2 }
 0x2c1   :  { %v468_v37 = vperm.slane %v1303_v8, 5  ;;  %v467_v38 = vperm.slane %v1303_v8, 4 }
 0x2c2   :  { %v476_v18 = vmul.f32 %v1293_v43, %v464_v9  ;;  %v475_v20 = vmul.f32 %v1291_v41, %v463_v14  ;;  %v478_v23 = vmul.f32 %v1299_v17, %v466_v51  ;;  %v477_v25 = vmul.f32 %v1295_v15, %v465_v58  ;;  %v1217_v43 = vld [vmem:[%s1867_s2 + $0x38] sm:$0xff]  ;;  %v1216_v41 = vld [vmem:[%s1867_s2 + $0x30] sm:$0xff]  ;;  %v1215_v15 = vld [vmem:[%s1867_s2 + $0x28] sm:$0xff] }
 0x2c3   :  { %v480_v39 = vmul.f32 %v1301_v48, %v468_v37  ;;  %v479_v40 = vmul.f32 %v1297_v47, %v467_v38  ;;  %1234 = vmatpush.msra.mxu2 %v1217_v43  ;;  %626 = vmatpush.msra.mxu1 %v1217_v43 }
 0x2c4   :  { %488 = vperm.xlu0 %1245, %v476_v18   ;;  %483 = vperm.xlu2 %1244, %v475_v20  }
 0x2c5   :  { %1235 = vmatpush.msra.mxu2 %v1216_v41  ;;  %627 = vmatpush.msra.mxu1 %v1216_v41 }
 0x2c7   :  { %1236 = vmatpush.msra.mxu2 %v1215_v15  ;;  %628 = vmatpush.msra.mxu1 %v1215_v15 }
 0x2c9   :  { %1237 = vmatpush.msra.mxu2 %v1214_v46  ;;  %629 = vmatpush.msra.mxu1 %v1214_v46 }
 0x2ca   :  { %1219 = vmatmul.msk.f32.vlgmr.msra.gmra.mxu2 %vm73_vm0, %v1466_v10  ;;  %1218 = vmatmul.msk.f32.vlgmr.msra.gmra.mxu1 %vm73_vm0, %v1440_v4 }
 0x2cc   :  { %498 = vperm.xlu0 %1245, %v478_v23   ;;  %493 = vperm.xlu2 %1244, %v477_v25   ;;  %v539_v23 = vld.sshfl [vmem:[#allocation1 + $0x20] sm:$0xff pattern:$0x73625140] }
 0x2d2   :  { %1220 = vmatmul.msk.f32.gmra.mxu2 %vm73_vm0, %v1480_v12 }
 0x2d4   :  { %508 = vperm.xlu0 %1245, %v480_v39   ;;  %503 = vperm.xlu2 %1244, %v479_v40  }
 0x2da   :  { %1221 = vmatmul.msk.f32.gmra.mxu2 %vm73_vm0, %v1487_v13 }
 0x2e2   :  { %1222 = vmatmul.msk.f32.gmra.mxu2 %vm73_vm0, %v1445_v5 }
 0x31e   :  { %v484_v42 = vpop.permute.xlu2 %483 }
 0x31f   :  { %v546_v17 = vmul.f32 %v1576_v27, %v484_v42  ;;  %v1224_v27 = vld [vmem:[%s1869_s4 + $0x28] sm:$0xff] }
 0x320   :  { %670 = vmatpush.msra.mxu3 %v1224_v27 }
 0x321   :  { %v552_v53 = vsel %vm332_vm1, %v546_v17, 0.0 }
 0x322   :  { %v553_v56 = vrot.slane %v552_v53, 4  ;;  %671 = vmatpush.msra.mxu3 %v1223_v60 }
 0x324   :  { %v554_v0 = vadd.f32 %v553_v56, %v552_v53 }
 0x326   :  { %v494_v47 = vpop.permute.xlu2 %493  ;;  %v555_v9 = vrot.slane %v554_v0, 2 }
 0x327   :  { %v548_v48 = vmul.f32 %v1596_v34, %v494_v47 }
 0x328   :  { %v556_v25 = vadd.f32 %v555_v9, %v554_v0 }
 0x329   :  { %v566_v57 = vsel %vm332_vm1, %v548_v48, 0.0 }
 0x32a   :  { %v567_v63 = vrot.slane %v566_v57, 4 }
 0x32c   :  { %v568_v6 = vadd.f32 %v567_v63, %v566_v57 }
 0x32e   :  { %v504_v54 = vpop.permute.xlu2 %503  ;;  %v569_v51 = vrot.slane %v568_v6, 2 }
 0x32f   :  { %v550_v59 = vmul.f32 %v535_v52, %v504_v54 }
 0x330   :  { %v570_v42 = vadd.f32 %v569_v51, %v568_v6 }
 0x331   :  { %v580_v1 = vsel %vm332_vm1, %v550_v59, 0.0 }
 0x332   :  { %v581_v7 = vrot.slane %v580_v1, 4  ;;  %v571_v49 = vrot.slane %v570_v42, 1 }
 0x334   :  { %v582_v58 = vadd.f32 %v581_v7, %v580_v1 }
 0x336   :  { %v489_v55 = vpop.permute.xlu0 %488  ;;  %v583_v43 = vrot.slane %v582_v58, 2 }
 0x337   :  { %v547_v34 = vmul.f32 %v1584_v30, %v489_v55 }
 0x338   :  { %v584_v50 = vadd.f32 %v583_v43, %v582_v58 }
 0x339   :  { %v559_v61 = vsel %vm332_vm1, %v547_v34, 0.0  ;;  %v572_v34 = vadd.f32 %v571_v49, %v570_v42 }
 0x33a   :  { %v560_v62 = vrot.slane %v559_v61, 4  ;;  %v585_v56 = vrot.slane %v584_v50, 1 }
 0x33c   :  { %v561_v2 = vadd.f32 %v560_v62, %v559_v61  ;;  %v586_v62 = vadd.f32 %v585_v56, %v584_v50 }
 0x33e   :  { %v562_v30 = vrot.slane %v561_v2, 2  ;;  %v499_v3 = vpop.permute.xlu0 %498 }
 0x33f   :  { %v549_v8 = vmul.f32 %v1602_v36, %v499_v3  ;;  %v557_v36 = vrot.slane %v556_v25, 1  ;;  %v1250_v3 = vld [vmem:[%s1872_s5 + $0x1] ss:$0 sm:$0xff] }
 0x340   :  { %v563_v18 = vadd.f32 %v562_v30, %v561_v2 }
 0x341   :  { %v573_v14 = vsel %vm332_vm1, %v549_v8, 0.0  ;;  %v558_v52 = vadd.f32 %v557_v36, %v556_v25  ;;  %v1699_v8 = vld [vmem:[%s1870_s3 + $0x1] ss:$0 sm:$0xff] }
 0x342   :  { %v574_v20 = vrot.slane %v573_v14, 4  ;;  %v564_v38 = vrot.slane %v563_v18, 1 }
 0x344   :  { %v575_v37 = vadd.f32 %v574_v20, %v573_v14  ;;  %v565_v47 = vadd.f32 %v564_v38, %v563_v18 }
 0x346   :  { %v576_v39 = vrot.slane %v575_v37, 2  ;;  %v509_v40 = vpop.permute.xlu0 %508  ;;  %v600_v54 = vsel %vm376_vm2, %v565_v47, %v558_v52 }
 0x347   :  { %v551_v41 = vmul.f32 %v539_v23, %v509_v40  ;;  %v601_v59 = vsel %vm378_vm3, %v572_v34, %v600_v54  ;;  %v631_v9 = vpop.f32.mrf.mxu1  ;;  %v1711_v54 = vld [vmem:[%s1873_s6 + $0x1] ss:$0 sm:$0xff] }
 0x348   :  { %v577_v15 = vadd.f32 %v576_v39, %v575_v37  ;;  %v632_v18 = vadd.f32 %v1699_v8, %v631_v9 }
 0x349   :  { %v587_v46 = vsel %vm332_vm1, %v551_v41, 0.0 }
 0x34a   :  { %v578_v17 = vrot.slane %v577_v15, 1  ;;  %v588_v48 = vrot.slane %v587_v46, 4  ;;  %v681_v23 = vrot.slane %v632_v18, 2  ;;  %v682_v37 = vrot.slane %v632_v18, 4 }
 0x34b   :  { %v683_v40 = vrot.slane %v632_v18, 6 }
 0x34c   :  { %v589_v53 = vadd.f32 %v588_v48, %v587_v46  ;;  %v579_v55 = vadd.f32 %v578_v17, %v577_v15 }
 0x34d   :  { %v634_v30 = vpop.f32.mrf.mxu2 }
 0x34e   :  { %v590_v27 = vrot.slane %v589_v53, 2  ;;  %v602_v61 = vsel %vm380_vm4, %v579_v55, %v601_v59  ;;  %v635_v39 = vadd.f32 %v1699_v8, %v634_v30 }
 0x34f   :  { %v603_v0 = vsel %vm382_vm5, %v586_v62, %v602_v61 }
 0x350   :  { %v591_v57 = vadd.f32 %v590_v27, %v589_v53  ;;  %v684_v36 = vrot.slane %v635_v39, 2  ;;  %v685_v52 = vrot.slane %v635_v39, 4  ;;  %v686_v27 = vrot.slane %v635_v39, 6 }
 0x352   :  { %v592_v60 = vrot.slane %v591_v57, 1 }
 0x354   :  { %v593_v63 = vadd.f32 %v592_v60, %v591_v57 }
 0x355   :  { %v637_v14 = vpop.f32.mrf.mxu2 }
 0x356   :  { %v604_v1 = vsel %vm384_vm6, %v593_v63, %v603_v0  ;;  %v638_v17 = vadd.f32 %v1699_v8, %v637_v14 }
 0x357   :  { %v1687_v2 = vadd.f32 %v604_v1, %v1471_v11  ;;  %v1715_v1 = vrot.slane %v1711_v54, 2 }
 0x358   :  { %v687_v57 = vrot.slane %v638_v17, 2  ;;  %v688_v60 = vrot.slane %v638_v17, 4  ;;  %v689_v61 = vrot.slane %v638_v17, 6 }
 0x359   :  { %1227 = vmatmul.msk.f32.vlgmr.msra.gmra.mxu3 %vm73_vm0, %v1687_v2 }
 0x35d   :  { %v640_v48 = vpop.f32.mrf.mxu2 }
 0x3dc   :  { %v673_v6 = vpop.f32.mrf.mxu3 }
 0x3dd   :  { %v1694_v7 = vadd.f32 %v1250_v3, %v673_v6  ;;  %v1718_v6 = vrot.slane %v1711_v54, 4 }
 0x3df   :  { %v708_v11 = vrot.slane %v1694_v7, 1  ;;  %v713_v20 = vperm.slane %v1694_v7, 0  ;;  %v709_v58 = vrot.slane %v1694_v7, 2  ;;  %v710_v42 = vrot.slane %v1694_v7, 3 }
 0x3e0   :  { %v711_v62 = vrot.slane %v1694_v7, 4 }
 0x3e1   :  { %v714_v51 = vperm.slane %v708_v11, 0  ;;  %v725_v25 = vrot.slane %v713_v20, 2  ;;  %v726_v38 = vrot.slane %v713_v20, 4  ;;  %v749_v41 = vadd.f32 %v713_v20, %v632_v18 }
 0x3e2   :  { %v715_v15 = vperm.slane %v709_v58, 0  ;;  %v716_v53 = vperm.slane %v710_v42, 0  ;;  %v712_v11 = vrot.slane %v1694_v7, 5  ;;  %v717_v20 = vperm.slane %v711_v62, 0 }
 0x3e3   :  { %v727_v43 = vrot.slane %v714_v51, 2  ;;  %v728_v46 = vrot.slane %v714_v51, 4  ;;  %v750_v47 = vadd.f32 %v725_v25, %v681_v23  ;;  %v751_v49 = vadd.f32 %v726_v38, %v682_v37 }
 0x3e4   :  { %v752_v50 = vadd.f32 %v714_v51, %v683_v40  ;;  %1304 = vtanh.f32 %v749_v41  ;;  %v729_v34 = vrot.slane %v715_v15, 2  ;;  %v730_v59 = vrot.slane %v715_v15, 4 }
 0x3e5   :  { %v753_v55 = vadd.f32 %v727_v43, %v635_v39  ;;  %v754_v56 = vadd.f32 %v728_v46, %v684_v36  ;;  %1306 = vtanh.f32 %v750_v47  ;;  %v731_v63 = vrot.slane %v716_v53, 2  ;;  %v643_v39 = vpop.f32.mrf.mxu2 }
 0x3e6   :  { %1308 = vtanh.f32 %v751_v49  ;;  %v755_v0 = vadd.f32 %v715_v15, %v685_v52  ;;  %v732_v30 = vrot.slane %v716_v53, 4  ;;  %v756_v3 = vadd.f32 %v729_v34, %v686_v27 }
 0x3e7   :  { %1310 = vtanh.f32 %v752_v50  ;;  %v757_v14 = vadd.f32 %v730_v59, %v638_v17  ;;  %v758_v51 = vadd.f32 %v716_v53, %v687_v57  ;;  %v641_v25 = vadd.f32 %v1699_v8, %v640_v48 }
 0x3e8   :  { %1312 = vtanh.f32 %v753_v55  ;;  %v759_v37 = vadd.f32 %v731_v63, %v688_v60  ;;  %v760_v42 = vadd.f32 %v732_v30, %v689_v61  ;;  %v718_v15 = vperm.slane %v712_v11, 0 }
 0x3e9   :  { %1314 = vtanh.f32 %v754_v56  ;;  %v690_v41 = vrot.slane %v641_v25, 2  ;;  %v733_v47 = vrot.slane %v717_v20, 2  ;;  %v644_v48 = vadd.f32 %v1699_v8, %v643_v39  ;;  %v881_v39 = vld [vmem:[%s1874_s7 + $0x1] sm:$0x1] }
 0x3ea   :  { %v1305_v9 = vpop.eup %1304  ;;  %1316 = vtanh.f32 %v755_v0  ;;  %v691_v49 = vrot.slane %v641_v25, 4  ;;  %v734_v50 = vrot.slane %v717_v20, 4  ;;  %v692_v53 = vrot.slane %v641_v25, 6  ;;  %1240 = vpush %v881_v39 }
 0x3eb   :  { %v1307_v18 = vpop.eup %1306  ;;  %v792_v58 = vmul.f32 %v1305_v9, %v1711_v54  ;;  %1318 = vtanh.f32 %v756_v3  ;;  %v761_v27 = vadd.f32 %v717_v20, %v641_v25  ;;  %v735_v34 = vrot.slane %v718_v15, 2 }
 0x3ec   :  { %v1309_v23 = vpop.eup %1308  ;;  %v793_v38 = vmul.f32 %v1307_v18, %v1715_v1  ;;  %1320 = vtanh.f32 %v757_v14  ;;  %v762_v57 = vadd.f32 %v733_v47, %v690_v41  ;;  %v693_v59 = vrot.slane %v644_v48, 2 }
 0x3ed   :  { %v1311_v40 = vpop.eup %1310  ;;  %v794_v43 = vmul.f32 %v1309_v23, %v1718_v6  ;;  %828 = vst [vmem:[#allocation1] ss:$4 sm:$0xff] %v792_v58  ;;  %1322 = vtanh.f32 %v758_v51  ;;  %v736_v60 = vrot.slane %v718_v15, 4  ;;  %v763_v62 = vadd.f32 %v734_v50, %v691_v49 }
 0x3ee   :  { %v1313_v7 = vpop.eup %1312  ;;  %v795_v36 = vmul.f32 %v1311_v40, %v1711_v54  ;;  %830 = vst [vmem:[#allocation1 + $0x1] ss:$4 sm:$0xff] %v793_v38  ;;  %1324 = vtanh.f32 %v759_v37  ;;  %v764_v0 = vadd.f32 %v718_v15, %v692_v53  ;;  %v765_v14 = vadd.f32 %v735_v34, %v644_v48 }
 0x3ef   :  { %v1315_v46 = vpop.eup %1314  ;;  %v796_v17 = vmul.f32 %v1313_v7, %v1715_v1  ;;  %832 = vst [vmem:[#allocation1 + $0x2] ss:$4 sm:$0xff] %v794_v43  ;;  %1326 = vtanh.f32 %v760_v42  ;;  %v766_v20 = vadd.f32 %v736_v60, %v693_v59 }
 0x3f0   :  { %v797_v52 = vmul.f32 %v1315_v46, %v1718_v6  ;;  %835 = vst [vmem:[#allocation1 + $0x20] ss:$4 sm:$0xff] %v795_v36  ;;  %v1317_v55 = vpop.eup %1316  ;;  %1328 = vtanh.f32 %v761_v27 }
 0x3f1   :  { %837 = vst [vmem:[#allocation1 + $0x21] ss:$4 sm:$0xff] %v796_v17  ;;  %v1319_v56 = vpop.eup %1318  ;;  %v798_v63 = vmul.f32 %v1317_v55, %v1711_v54  ;;  %1330 = vtanh.f32 %v762_v57 }
 0x3f2   :  { %839 = vst [vmem:[#allocation1 + $0x22] ss:$4 sm:$0xff] %v797_v52  ;;  %v1321_v61 = vpop.eup %1320  ;;  %v799_v3 = vmul.f32 %v1319_v56, %v1715_v1  ;;  %1332 = vtanh.f32 %v763_v62 }
 0x3f3   :  { %v1323_v8 = vpop.eup %1322  ;;  %v800_v18 = vmul.f32 %v1321_v61, %v1718_v6  ;;  %1334 = vtanh.f32 %v764_v0 }
 0x3f4   :  { %v1325_v30 = vpop.eup %1324  ;;  %v801_v58 = vmul.f32 %v1323_v8, %v1711_v54  ;;  %1336 = vtanh.f32 %v765_v14 }
 0x3f5   :  { %v1327_v11 = vpop.eup %1326  ;;  %v802_v23 = vmul.f32 %v1325_v30, %v1715_v1  ;;  %1338 = vtanh.f32 %v766_v20 }
 0x3f6   :  { %v833_v9 = vld.sshfl [vmem:[#allocation1] sm:$0xff pattern:$0x73625140]  ;;  %v803_v37 = vmul.f32 %v1327_v11, %v1718_v6  ;;  %v1329_v40 = vpop.eup %1328 }
 0x3f7   :  { %841 = vst [vmem:[#allocation1] ss:$4 sm:$0xff] %v798_v63  ;;  %v863_v51 = vsel %vm332_vm1, %v833_v9, 0.0  ;;  %v1331_v42 = vpop.eup %1330  ;;  %v804_v41 = vmul.f32 %v1329_v40, %v1711_v54 }
 0x3f8   :  { %842 = vst [vmem:[#allocation1 + $0x1] ss:$4 sm:$0xff] %v799_v3  ;;  %864 = vadd.xlane.f32.xlu2 %v863_v51  ;;  %v1333_v43 = vpop.eup %1332  ;;  %v805_v15 = vmul.f32 %v1331_v42, %v1715_v1 }
 0x3f9   :  { %v840_v25 = vld.sshfl [vmem:[#allocation1 + $0x20] sm:$0xff pattern:$0x73625140]  ;;  %843 = vst [vmem:[#allocation1 + $0x2] ss:$4 sm:$0xff] %v800_v18  ;;  %v1335_v7 = vpop.eup %1334  ;;  %v806_v17 = vmul.f32 %v1333_v43, %v1718_v6 }
 0x3fa   :  { %845 = vst [vmem:[#allocation1 + $0x20] ss:$4 sm:$0xff] %v801_v58  ;;  %v866_v38 = vsel %vm332_vm1, %v840_v25, 0.0  ;;  %v1337_v36 = vpop.eup %1336  ;;  %v807_v49 = vmul.f32 %v1335_v7, %v1711_v54 }
 0x3fb   :  { %846 = vst [vmem:[#allocation1 + $0x21] ss:$4 sm:$0xff] %v802_v23  ;;  %867 = vadd.xlane.f32.xlu0 %v866_v38  ;;  %v1339_v47 = vpop.eup %1338  ;;  %v808_v50 = vmul.f32 %v1337_v36, %v1715_v1 }
 0x3fc   :  { %847 = vst [vmem:[#allocation1 + $0x22] ss:$4 sm:$0xff] %v803_v37  ;;  %v809_v53 = vmul.f32 %v1339_v47, %v1718_v6 }
 0x400   :  { %v844_v46 = vld.sshfl [vmem:[#allocation1] sm:$0xff pattern:$0x73625140] }
 0x401   :  { %v869_v48 = vsel %vm332_vm1, %v844_v46, 0.0  ;;  %849 = vst [vmem:[#allocation1] ss:$4 sm:$0xff] %v804_v41 }
 0x402   :  { %870 = vadd.xlane.f32.xlu1 %v869_v48  ;;  %850 = vst [vmem:[#allocation1 + $0x1] ss:$4 sm:$0xff] %v805_v15 }
 0x403   :  { %851 = vst [vmem:[#allocation1 + $0x2] ss:$4 sm:$0xff] %v806_v17  ;;  %v848_v52 = vld.sshfl [vmem:[#allocation1 + $0x20] sm:$0xff pattern:$0x73625140] }
 0x404   :  { %853 = vst [vmem:[#allocation1 + $0x20] ss:$4 sm:$0xff] %v807_v49  ;;  %v872_v55 = vsel %vm332_vm1, %v848_v52, 0.0 }
 0x405   :  { %854 = vst [vmem:[#allocation1 + $0x21] ss:$4 sm:$0xff] %v808_v50 }
 0x406   :  { %855 = vst [vmem:[#allocation1 + $0x22] ss:$4 sm:$0xff] %v809_v53 }
 0x40a   :  { %873 = vadd.xlane.f32.xlu1 %v872_v55  ;;  %v852_v27 = vld.sshfl [vmem:[#allocation1] sm:$0xff pattern:$0x73625140] }
 0x40b   :  { %1033 = vst [vmem:[#allocation1] ss:$4 sm:$0xff] %v1440_v4  ;;  %v875_v1 = vsel %vm332_vm1, %v852_v27, 0.0 }
 0x40c   :  { %1035 = vst [vmem:[#allocation1 + $0x1] ss:$4 sm:$0xff] %v53_v44 }
 0x40d   :  { %1037 = vst [vmem:[#allocation1 + $0x2] ss:$4 sm:$0xff] %v54_v16  ;;  %v856_v54 = vld.sshfl [vmem:[#allocation1 + $0x20] sm:$0xff pattern:$0x73625140] }
 0x40e   :  { %1040 = vst [vmem:[#allocation1 + $0x20] ss:$4 sm:$0xff] %v55_v19  ;;  %v878_v6 = vsel %vm332_vm1, %v856_v54, 0.0 }
 0x40f   :  { %1042 = vst [vmem:[#allocation1 + $0x21] ss:$4 sm:$0xff] %v1466_v10  ;;  %v1133_v10 = vld [vmem:[%s1876_s8 + $0x18] sm:$0xff] }
 0x410   :  { %1044 = vst [vmem:[#allocation1 + $0x22] ss:$4 sm:$0xff] %v56_v21  ;;  %1153 = vmatpush.msrb.mxu1 %v1133_v10 }
 0x412   :  { %876 = vadd.xlane.f32.xlu1 %v875_v1 }
 0x41a   :  { %879 = vadd.xlane.f32.xlu1 %v878_v6 }
 0x41b   :  { %s1241_s7 = spop %1240 }
 0x41c   :  { %v884_v16 = vstv %s1241_s7 }
 0x46b   :  { %v865_v57 = vpop.xlane.xlu2 %864 }
 0x46c   :  { %v886_v60 = vadd.f32 %v884_v16, %v865_v57 }
 0x46e   :  { %v868_v56 = vpop.xlane.xlu0 %867  ;;  %v898_v63 = vperm.slane %v886_v60, %v1611_v45 }
 0x46f   :  { %v887_v4 = vadd.f32 %v884_v16, %v868_v56 }
 0x471   :  { %v899_v21 = vperm.slane %v887_v4, %v1611_v45 }
 0x473   :  { %v904_v9 = vsel %vm376_vm2, %v899_v21, %v898_v63 }
 0x475   :  { %v871_v34 = vpop.xlane.xlu1 %870 }
 0x476   :  { %v888_v19 = vadd.f32 %v884_v16, %v871_v34 }
 0x478   :  { %v900_v8 = vperm.slane %v888_v19, %v1611_v45 }
 0x47a   :  { %v905_v11 = vsel %vm378_vm3, %v900_v8, %v904_v9 }
 0x47d   :  { %v874_v44 = vpop.xlane.xlu1 %873 }
 0x47e   :  { %v889_v61 = vadd.f32 %v884_v16, %v874_v44 }
 0x480   :  { %v901_v0 = vperm.slane %v889_v61, %v1611_v45 }
 0x482   :  { %v906_v20 = vsel %vm380_vm4, %v901_v0, %v905_v11  ;;  %v1045_v11 = vld.sshfl [vmem:[#allocation1 + $0x20] sm:$0xff pattern:$0x73625140] }
 0x483   :  { %1050 = vst [vmem:[#allocation1 + $0x20] ss:$4 sm:$0xff] %v59_v26 }
 0x484   :  { %1051 = vst [vmem:[#allocation1 + $0x21] ss:$4 sm:$0xff] %v60_v28 }
 0x485   :  { %v877_v59 = vpop.xlane.xlu1 %876  ;;  %1052 = vst [vmem:[#allocation1 + $0x22] ss:$4 sm:$0xff] %v61_v29 }
 0x486   :  { %v890_v62 = vadd.f32 %v884_v16, %v877_v59 }
 0x488   :  { %v902_v30 = vperm.slane %v890_v62, %v1611_v45 }
 0x48a   :  { %v907_v51 = vsel %vm382_vm5, %v902_v30, %v906_v20 }
 0x48c   :  { %v1053_v29 = vld.sshfl [vmem:[#allocation1 + $0x20] sm:$0xff pattern:$0x73625140] }
 0x48d   :  { %v880_v3 = vpop.xlane.xlu1 %879  ;;  %1058 = vst [vmem:[#allocation1 + $0x20] ss:$4 sm:$0xff] %v64_v33 }
 0x48e   :  { %v891_v14 = vadd.f32 %v884_v16, %v880_v3  ;;  %1059 = vst [vmem:[#allocation1 + $0x21] ss:$4 sm:$0xff] %v1445_v5 }
 0x48f   :  { %1060 = vst [vmem:[#allocation1 + $0x22] ss:$4 sm:$0xff] %v65_v35 }
 0x490   :  { %v903_v18 = vperm.slane %v891_v14, %v1611_v45 }
 0x492   :  { %v908_v58 = vsel %vm384_vm6, %v903_v18, %v907_v51 }
 0x493   :  { %v910_v23 = vsel %vm387_vm7, %v908_v58, -inf }
 0x494   :  { %911 = vmax.xlane.f32.xlu2 %v910_v23 }
 0x507   :  { %v912_v25 = vpop.xlane.xlu2 %911 }
 0x508   :  { %v914_v37 = vperm.slane %v912_v25, 0  ;;  %v915_v38 = vperm.slane %v912_v25, 1  ;;  %v916_v39 = vperm.slane %v912_v25, 2  ;;  %v917_v40 = vperm.slane %v912_v25, 3 }
 0x509   :  { %v918_v41 = vperm.slane %v912_v25, 4  ;;  %v919_v36 = vperm.slane %v912_v25, 5 }
 0x50a   :  { %v926_v42 = vsub.f32 %v886_v60, %v914_v37  ;;  %v927_v43 = vsub.f32 %v887_v4, %v915_v38  ;;  %v928_v7 = vsub.f32 %v888_v19, %v916_v39  ;;  %v929_v17 = vsub.f32 %v889_v61, %v917_v40 }
 0x50b   :  { %v931_v48 = vsub.f32 %v891_v14, %v919_v36  ;;  %v930_v49 = vsub.f32 %v890_v62, %v918_v41 }
 0x50c   :  { %v932_v15 = vmul.f32 1.442695, %v926_v42  ;;  %v934_v46 = vmul.f32 1.442695, %v927_v43  ;;  %v936_v47 = vmul.f32 1.442695, %v928_v7 }
 0x50d   :  { %v938_v50 = vmul.f32 1.442695, %v929_v17  ;;  %v942_v52 = vmul.f32 1.442695, %v931_v48  ;;  %v940_v55 = vmul.f32 1.442695, %v930_v49 }
 0x50e   :  { %1340 = vpow2.f32 %v932_v15  ;;  %v1038_v43 = vld.sshfl [vmem:[#allocation1] sm:$0xff pattern:$0x73625140]  ;;  %v1169_v48 = vld [vmem:[%s1877_s10 + $0x38] sm:$0xff]  ;;  %v1168_v49 = vld [vmem:[%s1877_s10 + $0x30] sm:$0xff] }
 0x50f   :  { %1342 = vpow2.f32 %v934_v46  ;;  %1046 = vst [vmem:[#allocation1] ss:$4 sm:$0xff] %v57_v22  ;;  %v1061_v22 = vld.sshfl [vmem:[#allocation1 + $0x20] sm:$0xff pattern:$0x73625140]  ;;  %1186 = vmatpush.msrb.mxu3 %v1169_v48 }
 0x510   :  { %1344 = vpow2.f32 %v936_v47  ;;  %1047 = vst [vmem:[#allocation1 + $0x1] ss:$4 sm:$0xff] %v58_v24  ;;  %v1130_v17 = vld [vmem:[%s1876_s8] sm:$0xff] }
 0x511   :  { %1346 = vpow2.f32 %v938_v50  ;;  %1048 = vst [vmem:[#allocation1 + $0x2] ss:$4 sm:$0xff] %v1480_v12  ;;  %v1132_v12 = vld [vmem:[%s1876_s8 + $0x10] sm:$0xff]  ;;  %1187 = vmatpush.msrb.mxu3 %v1168_v49 }
 0x512   :  { %1348 = vpow2.f32 %v942_v52  ;;  %1154 = vmatpush.msrb.mxu1 %v1132_v12 }
 0x513   :  { %1350 = vpow2.f32 %v940_v55 }
 0x514   :  { %v1341_v53 = vpop.eup %1340 }
 0x515   :  { %v1343_v27 = vpop.eup %1342  ;;  %951 = vperm.xlu1 %1243, %v1341_v53  }
 0x516   :  { %v1345_v54 = vpop.eup %1344  ;;  %954 = vperm.xlu2 %1244, %v1343_v27  }
 0x517   :  { %957 = vperm.xlu0 %1245, %v1345_v54   ;;  %v1347_v1 = vpop.eup %1346 }
 0x518   :  { %v1349_v6 = vpop.eup %1348  ;;  %v1049_v41 = vld.sshfl [vmem:[#allocation1] sm:$0xff pattern:$0x73625140] }
 0x519   :  { %v1351_v34 = vpop.eup %1350  ;;  %1054 = vst [vmem:[#allocation1] ss:$4 sm:$0xff] %v1487_v13  ;;  %v1131_v13 = vld [vmem:[%s1876_s8 + $0x8] sm:$0xff] }
 0x51a   :  { %1055 = vst [vmem:[#allocation1 + $0x1] ss:$4 sm:$0xff] %v62_v31  ;;  %1155 = vmatpush.msrb.mxu1 %v1131_v13 }
 0x51b   :  { %1056 = vst [vmem:[#allocation1 + $0x2] ss:$4 sm:$0xff] %v63_v32 }
 0x51c   :  { %1156 = vmatpush.msrb.mxu1 %v1130_v17 }
 0x51d   :  { %960 = vperm.xlu1 %1243, %v1347_v1  }
 0x51e   :  { %966 = vperm.xlu2 %1244, %v1349_v6  }
 0x51f   :  { %963 = vperm.xlu0 %1245, %v1351_v34  }
 0x570   :  { %v955_v44 = vpop.permute.xlu2 %954 }
 0x571   :  { %v969_v59 = vperm.slane %v955_v44, %v1611_v45 }
 0x578   :  { %v967_v61 = vpop.permute.xlu2 %966 }
 0x579   :  { %v973_v30 = vperm.slane %v967_v61, %v1611_v45 }
 0x587   :  { %v952_v56 = vpop.permute.xlu1 %951 }
 0x588   :  { %v968_v57 = vperm.slane %v952_v56, %v1611_v45  ;;  %v1165_v56 = vld [vmem:[%s1877_s10 + $0x18] sm:$0xff] }
 0x589   :  { %v958_v16 = vpop.permute.xlu0 %957 }
 0x58a   :  { %v970_v4 = vperm.slane %v958_v16, %v1611_v45  ;;  %v974_v19 = vsel %vm376_vm2, %v969_v59, %v968_v57 }
 0x58c   :  { %v975_v8 = vsel %vm378_vm3, %v970_v4, %v974_v19 }
 0x58f   :  { %v961_v60 = vpop.permute.xlu1 %960 }
 0x590   :  { %v971_v62 = vperm.slane %v961_v60, %v1611_v45 }
 0x591   :  { %v964_v21 = vpop.permute.xlu0 %963 }
 0x592   :  { %v972_v63 = vperm.slane %v964_v21, %v1611_v45  ;;  %v976_v0 = vsel %vm380_vm4, %v971_v62, %v975_v8  ;;  %v1057_v62 = vld.sshfl [vmem:[#allocation1] sm:$0xff pattern:$0x73625140] }
 0x594   :  { %v977_v3 = vsel %vm382_vm5, %v972_v63, %v976_v0 }
 0x595   :  { %v978_v9 = vsel %vm384_vm6, %v973_v30, %v977_v3 }
 0x596   :  { %v980_v14 = vsel %vm387_vm7, %v978_v9, 0.0 }
 0x597   :  { %981 = vadd.xlane.f32.xlu1 %v980_v14 }
 0x60a   :  { %v982_v18 = vpop.xlane.xlu1 %981 }
 0x60b   :  { %1352 = vrcp.f32 %v982_v18 }
 0x611   :  { %v1353_v45 = vpop.eup %1352 }
 0x612   :  { %v986_v20 = vperm.slane %v1353_v45, 1  ;;  %v985_v51 = vperm.slane %v1353_v45, 0  ;;  %v988_v25 = vperm.slane %v1353_v45, 3  ;;  %v987_v37 = vperm.slane %v1353_v45, 2 }
 0x613   :  { %v990_v26 = vperm.slane %v1353_v45, 5  ;;  %v989_v28 = vperm.slane %v1353_v45, 4 }
 0x614   :  { %v998_v58 = vmul.f32 %v1343_v27, %v986_v20  ;;  %v997_v23 = vmul.f32 %v1341_v53, %v985_v51  ;;  %v1000_v38 = vmul.f32 %v1347_v1, %v988_v25  ;;  %v999_v39 = vmul.f32 %v1345_v54, %v987_v37  ;;  %v1167_v53 = vld [vmem:[%s1877_s10 + $0x28] sm:$0xff]  ;;  %v1166_v1 = vld [vmem:[%s1877_s10 + $0x20] sm:$0xff] }
 0x615   :  { %v1002_v40 = vmul.f32 %v1349_v6, %v990_v26  ;;  %v1001_v42 = vmul.f32 %v1351_v34, %v989_v28  ;;  %1188 = vmatpush.msrb.mxu3 %v1167_v53 }
 0x616   :  { %1010 = vperm.xlu2 %1244, %v998_v58   ;;  %1005 = vperm.xlu0 %1245, %v997_v23  }
 0x617   :  { %1189 = vmatpush.msrb.mxu3 %v1166_v1 }
 0x619   :  { %1190 = vmatpush.msrb.mxu3 %v1165_v56 }
 0x61e   :  { %1020 = vperm.xlu2 %1244, %v1000_v38   ;;  %1015 = vperm.xlu0 %1245, %v999_v39  }
 0x626   :  { %1030 = vperm.xlu2 %1244, %v1002_v40   ;;  %1025 = vperm.xlu0 %1245, %v1001_v42  }
 0x670   :  { %v1011_v7 = vpop.permute.xlu2 %1010 }
 0x671   :  { %v1069_v33 = vmul.f32 %v1045_v11, %v1011_v7 }
 0x673   :  { %v1081_v31 = vsel %vm332_vm1, %v1069_v33, 0.0 }
 0x674   :  { %v1082_v50 = vrot.slane %v1081_v31, 4 }
 0x676   :  { %v1083_v6 = vadd.f32 %v1082_v50, %v1081_v31  ;;  %v1163_v31 = vld [vmem:[%s1877_s10 + $0x8] sm:$0xff] }
 0x678   :  { %v1021_v5 = vpop.permute.xlu2 %1020  ;;  %v1084_v19 = vrot.slane %v1083_v6, 2 }
 0x679   :  { %v1071_v15 = vmul.f32 %v1053_v29, %v1021_v5 }
 0x67a   :  { %v1085_v30 = vadd.f32 %v1084_v19, %v1083_v6 }
 0x67b   :  { %v1095_v52 = vsel %vm332_vm1, %v1071_v15, 0.0  ;;  %v1252_v15 = vld [vmem:[%s1875_s9] ss:$0 sm:$0xff] }
 0x67c   :  { %v1096_v34 = vrot.slane %v1095_v52, 4  ;;  %v1086_v58 = vrot.slane %v1085_v30, 1 }
 0x67e   :  { %v1097_v60 = vadd.f32 %v1096_v34, %v1095_v52  ;;  %v1087_v28 = vadd.f32 %v1086_v58, %v1085_v30 }
 0x680   :  { %v1031_v24 = vpop.permute.xlu2 %1030  ;;  %v1098_v3 = vrot.slane %v1097_v60, 2 }
 0x681   :  { %v1073_v46 = vmul.f32 %v1061_v22, %v1031_v24 }
 0x682   :  { %v1099_v23 = vadd.f32 %v1098_v3, %v1097_v60 }
 0x683   :  { %v1109_v27 = vsel %vm332_vm1, %v1073_v46, 0.0 }
 0x684   :  { %v1110_v16 = vrot.slane %v1109_v27, 4  ;;  %v1100_v40 = vrot.slane %v1099_v23, 1 }
 0x686   :  { %v1111_v21 = vadd.f32 %v1110_v16, %v1109_v27  ;;  %v1101_v5 = vadd.f32 %v1100_v40, %v1099_v23 }
 0x688   :  { %v1006_v35 = vpop.permute.xlu0 %1005  ;;  %v1112_v11 = vrot.slane %v1111_v21, 2 }
 0x689   :  { %v1068_v36 = vmul.f32 %v1038_v43, %v1006_v35 }
 0x68a   :  { %v1113_v37 = vadd.f32 %v1112_v11, %v1111_v21 }
 0x68b   :  { %v1074_v32 = vsel %vm332_vm1, %v1068_v36, 0.0  ;;  %v1164_v36 = vld [vmem:[%s1877_s10 + $0x10] sm:$0xff] }
 0x68c   :  { %v1075_v47 = vrot.slane %v1074_v32, 4  ;;  %v1114_v29 = vrot.slane %v1113_v37, 1  ;;  %1191 = vmatpush.msrb.mxu3 %v1164_v36 }
 0x68e   :  { %v1076_v55 = vadd.f32 %v1075_v47, %v1074_v32  ;;  %v1115_v35 = vadd.f32 %v1114_v29, %v1113_v37  ;;  %1192 = vmatpush.msrb.mxu3 %v1163_v31  ;;  %v1253_v47 = vld [vmem:[%s1879_s11] ss:$0 sm:$0xff] }
 0x690   :  { %v1016_v54 = vpop.permute.xlu0 %1015  ;;  %v1077_v57 = vrot.slane %v1076_v55, 2 }
 0x691   :  { %v1070_v44 = vmul.f32 %v1049_v41, %v1016_v54 }
 0x692   :  { %v1078_v8 = vadd.f32 %v1077_v57, %v1076_v55 }
 0x693   :  { %v1088_v59 = vsel %vm332_vm1, %v1070_v44, 0.0 }
 0x694   :  { %v1089_v4 = vrot.slane %v1088_v59, 4  ;;  %v1079_v18 = vrot.slane %v1078_v8, 1 }
 0x696   :  { %v1090_v61 = vadd.f32 %v1089_v4, %v1088_v59  ;;  %v1080_v38 = vadd.f32 %v1079_v18, %v1078_v8 }
 0x698   :  { %v1091_v63 = vrot.slane %v1090_v61, 2  ;;  %v1026_v0 = vpop.permute.xlu0 %1025  ;;  %v1122_v43 = vsel %vm376_vm2, %v1087_v28, %v1080_v38 }
 0x699   :  { %v1072_v9 = vmul.f32 %v1057_v62, %v1026_v0 }
 0x69a   :  { %v1092_v14 = vadd.f32 %v1091_v63, %v1090_v61 }
 0x69b   :  { %v1102_v45 = vsel %vm332_vm1, %v1072_v9, 0.0 }
 0x69c   :  { %v1093_v20 = vrot.slane %v1092_v14, 1  ;;  %v1103_v51 = vrot.slane %v1102_v45, 4 }
 0x69e   :  { %v1104_v25 = vadd.f32 %v1103_v51, %v1102_v45  ;;  %v1094_v39 = vadd.f32 %v1093_v20, %v1092_v14 }
 0x6a0   :  { %v1105_v26 = vrot.slane %v1104_v25, 2  ;;  %v1123_v7 = vsel %vm378_vm3, %v1094_v39, %v1122_v43 }
 0x6a1   :  { %v1124_v10 = vsel %vm380_vm4, %v1101_v5, %v1123_v7 }
 0x6a2   :  { %v1106_v42 = vadd.f32 %v1105_v26, %v1104_v25 }
 0x6a4   :  { %v1107_v41 = vrot.slane %v1106_v42, 1 }
 0x6a6   :  { %v1108_v33 = vadd.f32 %v1107_v41, %v1106_v42 }
 0x6a8   :  { %v1125_v12 = vsel %vm382_vm5, %v1108_v33, %v1124_v10 }
 0x6a9   :  { %v1126_v22 = vsel %vm384_vm6, %v1115_v35, %v1125_v12 }
 0x6aa   :  { %v1128_v24 = vadd.f32 %v1126_v22, %v1687_v2  ;;  %v1162_v2 = vld [vmem:[%s1877_s10] sm:$0xff] }
 0x6ab   :  { %1193 = vmatpush.msrb.mxu3 %v1162_v2 }
 0x6ac   :  { %1129 = vst.msk [vmem:[%s1878_s12] sm:$0x3f] %vm332_vm1, %v1128_v24  ;;  %1228 = vmatmul.msk.f32.vlgmr.msrb.gmra.mxu1 %vm73_vm0, %v1128_v24 }
 0x729   :  { %v1158_v13 = vpop.f32.mrf.mxu1 }
 0x72a   :  { %v1159_v32 = vadd.f32 %v1252_v15, %v1158_v13 }
 0x72c   :  { %v1161_v46 = vmax.f32 %v1159_v32, 0.0 }
 0x72e   :  { %1229 = vmatmul.msk.f32.vlgmr.msrb.gmra.mxu3 %vm1174_vm8, %v1161_v46 }
 0x7b1   :  { %v1195_v17 = vpop.f32.mrf.mxu3 }
 0x7b2   :  { %v1196_v48 = vadd.f32 %v1253_v47, %v1195_v17 }
 0x7b4   :  { %1199 = vst.msk [vmem:[%s1880_s13] sm:$0x3f] %vm1198_vm9, %v1196_v48 }

</bundles_post_ra>
